<compile_context>
chip_gen: v7x
topology: tpu7x:2x2x1
jax: 0.10.0
libtpu: 0.0.40
codegen_flags: <defaults>
</compile_context>

<pallas_src>
import jax
import jax.numpy as jnp
from jax.experimental import pallas as pl
from jax.experimental.pallas import tpu as pltpu
import numpy as np


def encoder_gru_kernel(toks_ref,      # SMEM (T,)  int32  scalar-prefetch token ids
                       emb_ref,       # VMEM (V,1,H) f32  embedding table (resident)
                       w_i_ref,       # VMEM (H,3H)  f32  W_ih^T  (gate cols [r|z|n])
                       w_h_rz_ref,    # VMEM (H,2H)  f32  W_hh[:2H]^T
                       w_hn_ref,      # VMEM (H,H)   f32  W_hh[2H:]^T
                       b_i_ref,       # VMEM (1,3H)  f32  b_ih
                       b_h_rz_ref,    # VMEM (1,2H)  f32  b_hh[:2H]
                       b_hn_ref,      # VMEM (1,H)   f32  b_hh[2H:]
                       h0_ref,        # VMEM (1,H)   f32  initial hidden
                       out_ref):      # VMEM (T,H)   f32  GRU outputs (h_t for every t)
    T, H = out_ref.shape

    # ---- Embedding gather (table is VMEM-resident; dynamic leading-dim index).
    xs = [emb_ref[toks_ref[t]] for t in range(T)]          # T x (1, H)
    x = jnp.concatenate(xs, axis=0) if T > 1 else xs[0]    # (T, H)

    # ---- Hoisted input projection: ONE (T,H)@(H,3H) matmul, f32 accumulate.
    gi = jnp.dot(x, w_i_ref[...],
                 preferred_element_type=jnp.float32) + b_i_ref[...]   # (T, 3H)

    # ---- Load recurrent weights once (they are small; stay in vregs/VMEM).
    w_h_rz = w_h_rz_ref[...]
    w_hn = w_hn_ref[...]
    b_h_rz = b_h_rz_ref[...]
    b_hn = b_hn_ref[...]

    # ---- Recurrence: statically-unrolled time loop, only h-dependent matmuls.
    h = h0_ref[...]                                          # (1, H) f32
    rows = []
    for t in range(T):
        gi_t = gi[t:t + 1, :]                                # (1, 3H), static slice
        gh_rz = jnp.dot(h, w_h_rz,
                        preferred_element_type=jnp.float32) + b_h_rz   # (1, 2H)
        r = jax.nn.sigmoid(gi_t[:, 0:H] + gh_rz[:, 0:H])
        z = jax.nn.sigmoid(gi_t[:, H:2 * H] + gh_rz[:, H:2 * H])
        h_n = jnp.dot(h, w_hn,
                      preferred_element_type=jnp.float32) + b_hn       # (1, H)
        n = jnp.tanh(gi_t[:, 2 * H:3 * H] + r * h_n)
        h = (1.0 - z) * n + z * h
        rows.append(h)

    out_block = jnp.concatenate(rows, axis=0) if T > 1 else rows[0]    # (T, H)
    out_ref[...] = out_block.astype(out_ref.dtype)           # one dense store


def encoder_rnn_forward_sequence(tokens, hidden, params):
    """Run the EncoderRNN over a whole token sequence in one pallas_call.

    tokens: (T,) int32   hidden: (1, 1, H) f32
    returns: outputs (T, 1, H) f32, final hidden (1, 1, H) f32
    """
    emb = params["embedding"]                    # (V, 1, H) f32
    H = emb.shape[-1]
    T = int(tokens.shape[0])
    toks = jnp.asarray(tokens, jnp.int32)
    h0 = hidden.reshape(1, H).astype(jnp.float32)

    grid_spec = pltpu.PrefetchScalarGridSpec(
        num_scalar_prefetch=1,
        grid=(1,),                               # single grid step; loop is in-kernel
        in_specs=[
            # All operands use constant index_maps -> fetched exactly once.
            pl.BlockSpec(emb.shape, lambda i, toks: (0, 0, 0)),
            pl.BlockSpec((H, 3 * H), lambda i, toks: (0, 0)),
            pl.BlockSpec((H, 2 * H), lambda i, toks: (0, 0)),
            pl.BlockSpec((H, H), lambda i, toks: (0, 0)),
            pl.BlockSpec((1, 3 * H), lambda i, toks: (0, 0)),
            pl.BlockSpec((1, 2 * H), lambda i, toks: (0, 0)),
            pl.BlockSpec((1, H), lambda i, toks: (0, 0)),
            pl.BlockSpec((1, H), lambda i, toks: (0, 0)),
        ],
        out_specs=pl.BlockSpec((T, H), lambda i, toks: (0, 0)),
    )

    outs = pl.pallas_call(
        encoder_gru_kernel,
        grid_spec=grid_spec,
        out_shape=jax.ShapeDtypeStruct((T, H), jnp.float32),
        compiler_params=pltpu.CompilerParams(
            dimension_semantics=("arbitrary",)),     # recurrent -> sequential
    )(toks, emb, params["w_i"], params["w_h_rz"], params["w_hn"],
      params["b_i"], params["b_h_rz"], params["b_hn"], h0)

    outputs = outs.reshape(T, 1, H)
    final_hidden = outs[T - 1].reshape(1, 1, H)
    return outputs, final_hidden


def encoder_rnn_forward(token, hidden, params):
    """Single-step form, mirroring EncoderRNN.forward(input, hidden)."""
    toks = jnp.asarray(token, jnp.int32).reshape(1)
    outputs, new_hidden = encoder_rnn_forward_sequence(toks, hidden, params)
    return outputs.reshape(1, 1, -1), new_hidden


def init_raw_params(key, input_size, hidden_size):
    """PyTorch-shaped parameters (f32), used for the reference and for packing."""
    k_emb, k_wih, k_whh, k_bih, k_bhh = jax.random.split(key, 5)
    H = hidden_size
    bound = 1.0 / np.sqrt(H)
    return {
        "embedding": jax.random.normal(k_emb, (input_size, H), jnp.float32),
        "w_ih": jax.random.uniform(k_wih, (3 * H, H), jnp.float32, -bound, bound),
        "w_hh": jax.random.uniform(k_whh, (3 * H, H), jnp.float32, -bound, bound),
        "b_ih": jax.random.uniform(k_bih, (3 * H,), jnp.float32, -bound, bound),
        "b_hh": jax.random.uniform(k_bhh, (3 * H,), jnp.float32, -bound, bound),
    }


def pack_params(raw):
    """One-time re-layout: transpose weights into row-vector @ matrix form."""
    V, H = raw["embedding"].shape
    w_ih, w_hh = raw["w_ih"], raw["w_hh"]
    b_ih, b_hh = raw["b_ih"], raw["b_hh"]
    return {
        # (V, 1, H): leading dim is untiled -> cheap dynamic in-kernel row select.
        "embedding": raw["embedding"].reshape(V, 1, H).astype(jnp.float32),
        "w_i": w_ih.T.astype(jnp.float32),                       # (H, 3H) [r|z|n]
        "w_h_rz": w_hh[:2 * H].T.astype(jnp.float32),            # (H, 2H)
        "w_hn": w_hh[2 * H:].T.astype(jnp.float32),              # (H, H)
        "b_i": b_ih.reshape(1, 3 * H).astype(jnp.float32),
        "b_h_rz": b_hh[:2 * H].reshape(1, 2 * H).astype(jnp.float32),
        "b_hn": b_hh[2 * H:].reshape(1, H).astype(jnp.float32),
    }


def _reference_forward_sequence(tokens, hidden, raw):
    """Exact f32 numpy reference of PyTorch nn.GRU run token-by-token."""
    emb = np.asarray(raw["embedding"], np.float32)
    w_ih = np.asarray(raw["w_ih"], np.float32)
    w_hh = np.asarray(raw["w_hh"], np.float32)
    b_ih = np.asarray(raw["b_ih"], np.float32)
    b_hh = np.asarray(raw["b_hh"], np.float32)
    H = emb.shape[1]
    h = np.asarray(hidden, np.float32).reshape(1, H)
    outs = []
    for tok in np.asarray(tokens):
        x = emb[int(tok)].reshape(1, H)
        gi = x @ w_ih.T + b_ih
        gh = h @ w_hh.T + b_hh
        i_r, i_z, i_n = gi[:, :H], gi[:, H:2 * H], gi[:, 2 * H:]
        h_r, h_z, h_n = gh[:, :H], gh[:, H:2 * H], gh[:, 2 * H:]
        r = 1.0 / (1.0 + np.exp(-(i_r + h_r)))
        z = 1.0 / (1.0 + np.exp(-(i_z + h_z)))
        n = np.tanh(i_n + r * h_n)
        h = (1.0 - z) * n + z * h
        outs.append(h.copy())
    return (np.stack(outs).reshape(len(outs), 1, H).astype(np.float32),
            h.reshape(1, 1, H).astype(np.float32))


if __name__ == "__main__":
    INPUT_SIZE = 20      # vocabulary size
    HIDDEN_SIZE = 256    # matches the module's hidden_size (lane-aligned)
    SEQ_LEN = 8

    key = jax.random.PRNGKey(0)
    k_params, k_tok = jax.random.split(key)
    raw = init_raw_params(k_params, INPUT_SIZE, HIDDEN_SIZE)
    params = pack_params(raw)                       # packed once, not per forward

    tokens = jax.random.randint(k_tok, (SEQ_LEN,), 0, INPUT_SIZE, jnp.int32)
    hidden = jnp.zeros((1, 1, HIDDEN_SIZE), jnp.float32)   # EncoderRNN.initHidden()

    outputs, new_hidden = encoder_rnn_forward_sequence(tokens, hidden, params)
    outputs = jax.block_until_ready(outputs)
    new_hidden = jax.block_until_ready(new_hidden)

    # Validate against the exact f32 numpy reference (small slack for MXU
    # default-precision matmul passes inside the kernel).
    ref_outs, ref_hid = _reference_forward_sequence(tokens, hidden, raw)
    np.testing.assert_allclose(np.asarray(outputs), ref_outs, rtol=2e-2, atol=2e-2)
    np.testing.assert_allclose(np.asarray(new_hidden), ref_hid, rtol=2e-2, atol=2e-2)

    # Single-step form (the literal EncoderRNN.forward signature) still works.
    step_out, step_hid = encoder_rnn_forward(tokens[0], hidden, params)
    step_out = jax.block_until_ready(step_out)
    np.testing.assert_allclose(np.asarray(step_out), ref_outs[0:1],
                               rtol=2e-2, atol=2e-2)

    print("KERNEL_OK")
</pallas_src>

<mosaic_0001>
module attributes {stable_mosaic.version = 11 : i64} {
  func.func @encoder_gru_kernel(%arg0: i32, %arg1: memref<8xi32, #tpu.memory_space<smem>>, %arg2: memref<20x1x256xf32, #tpu.memory_space<vmem>>, %arg3: memref<256x768xf32, #tpu.memory_space<vmem>>, %arg4: memref<256x512xf32, #tpu.memory_space<vmem>>, %arg5: memref<256x256xf32, #tpu.memory_space<vmem>>, %arg6: memref<1x768xf32, #tpu.memory_space<vmem>>, %arg7: memref<1x512xf32, #tpu.memory_space<vmem>>, %arg8: memref<1x256xf32, #tpu.memory_space<vmem>>, %arg9: memref<1x256xf32, #tpu.memory_space<vmem>>, %arg10: memref<8x256xf32, #tpu.memory_space<vmem>>) attributes {dimension_semantics = [#tpu.dimension_semantics<arbitrary>], iteration_bounds = array<i64: 1>, scalar_prefetch = 1 : i64, scratch_operands = 0 : i64, tpu.core_type = #tpu.core_type<tc>, window_params = [{pipeline_mode = #tpu.pipeline_mode<synchronous>, transform_indices = @transform_0, window_bounds = array<i64: 20, 1, 256>}, {pipeline_mode = #tpu.pipeline_mode<synchronous>, transform_indices = @transform_1, window_bounds = array<i64: 256, 768>}, {pipeline_mode = #tpu.pipeline_mode<synchronous>, transform_indices = @transform_2, window_bounds = array<i64: 256, 512>}, {pipeline_mode = #tpu.pipeline_mode<synchronous>, transform_indices = @transform_3, window_bounds = array<i64: 256, 256>}, {pipeline_mode = #tpu.pipeline_mode<synchronous>, transform_indices = @transform_4, window_bounds = array<i64: 1, 768>}, {pipeline_mode = #tpu.pipeline_mode<synchronous>, transform_indices = @transform_5, window_bounds = array<i64: 1, 512>}, {pipeline_mode = #tpu.pipeline_mode<synchronous>, transform_indices = @transform_6, window_bounds = array<i64: 1, 256>}, {pipeline_mode = #tpu.pipeline_mode<synchronous>, transform_indices = @transform_7, window_bounds = array<i64: 1, 256>}, {pipeline_mode = #tpu.pipeline_mode<synchronous>, transform_indices = @transform_8, window_bounds = array<i64: 8, 256>}]} {
    %c0 = arith.constant 0 : index
    %0 = memref.load %arg1[%c0] : memref<8xi32, #tpu.memory_space<smem>>
    %1 = arith.index_cast %0 : i32 to index
    %c0_0 = arith.constant 0 : index
    %c0_1 = arith.constant 0 : index
    %2 = vector.load %arg2[%1, %c0_0, %c0_1] : memref<20x1x256xf32, #tpu.memory_space<vmem>>, vector<1x1x256xf32>
    %3 = vector.shape_cast %2 : vector<1x1x256xf32> to vector<1x256xf32>
    %c1 = arith.constant 1 : index
    %4 = memref.load %arg1[%c1] : memref<8xi32, #tpu.memory_space<smem>>
    %5 = arith.index_cast %4 : i32 to index
    %c0_2 = arith.constant 0 : index
    %c0_3 = arith.constant 0 : index
    %6 = vector.load %arg2[%5, %c0_2, %c0_3] : memref<20x1x256xf32, #tpu.memory_space<vmem>>, vector<1x1x256xf32>
    %7 = vector.shape_cast %6 : vector<1x1x256xf32> to vector<1x256xf32>
    %c2 = arith.constant 2 : index
    %8 = memref.load %arg1[%c2] : memref<8xi32, #tpu.memory_space<smem>>
    %9 = arith.index_cast %8 : i32 to index
    %c0_4 = arith.constant 0 : index
    %c0_5 = arith.constant 0 : index
    %10 = vector.load %arg2[%9, %c0_4, %c0_5] : memref<20x1x256xf32, #tpu.memory_space<vmem>>, vector<1x1x256xf32>
    %11 = vector.shape_cast %10 : vector<1x1x256xf32> to vector<1x256xf32>
    %c3 = arith.constant 3 : index
    %12 = memref.load %arg1[%c3] : memref<8xi32, #tpu.memory_space<smem>>
    %13 = arith.index_cast %12 : i32 to index
    %c0_6 = arith.constant 0 : index
    %c0_7 = arith.constant 0 : index
    %14 = vector.load %arg2[%13, %c0_6, %c0_7] : memref<20x1x256xf32, #tpu.memory_space<vmem>>, vector<1x1x256xf32>
    %15 = vector.shape_cast %14 : vector<1x1x256xf32> to vector<1x256xf32>
    %c4 = arith.constant 4 : index
    %16 = memref.load %arg1[%c4] : memref<8xi32, #tpu.memory_space<smem>>
    %17 = arith.index_cast %16 : i32 to index
    %c0_8 = arith.constant 0 : index
    %c0_9 = arith.constant 0 : index
    %18 = vector.load %arg2[%17, %c0_8, %c0_9] : memref<20x1x256xf32, #tpu.memory_space<vmem>>, vector<1x1x256xf32>
    %19 = vector.shape_cast %18 : vector<1x1x256xf32> to vector<1x256xf32>
    %c5 = arith.constant 5 : index
    %20 = memref.load %arg1[%c5] : memref<8xi32, #tpu.memory_space<smem>>
    %21 = arith.index_cast %20 : i32 to index
    %c0_10 = arith.constant 0 : index
    %c0_11 = arith.constant 0 : index
    %22 = vector.load %arg2[%21, %c0_10, %c0_11] : memref<20x1x256xf32, #tpu.memory_space<vmem>>, vector<1x1x256xf32>
    %23 = vector.shape_cast %22 : vector<1x1x256xf32> to vector<1x256xf32>
    %c6 = arith.constant 6 : index
    %24 = memref.load %arg1[%c6] : memref<8xi32, #tpu.memory_space<smem>>
    %25 = arith.index_cast %24 : i32 to index
    %c0_12 = arith.constant 0 : index
    %c0_13 = arith.constant 0 : index
    %26 = vector.load %arg2[%25, %c0_12, %c0_13] : memref<20x1x256xf32, #tpu.memory_space<vmem>>, vector<1x1x256xf32>
    %27 = vector.shape_cast %26 : vector<1x1x256xf32> to vector<1x256xf32>
    %c7 = arith.constant 7 : index
    %28 = memref.load %arg1[%c7] : memref<8xi32, #tpu.memory_space<smem>>
    %29 = arith.index_cast %28 : i32 to index
    %c0_14 = arith.constant 0 : index
    %c0_15 = arith.constant 0 : index
    %30 = vector.load %arg2[%29, %c0_14, %c0_15] : memref<20x1x256xf32, #tpu.memory_space<vmem>>, vector<1x1x256xf32>
    %31 = vector.shape_cast %30 : vector<1x1x256xf32> to vector<1x256xf32>
    %32 = tpu.concatenate %3, %7, %11, %15, %19, %23, %27, %31 in 0 : vector<1x256xf32>, vector<1x256xf32>, vector<1x256xf32>, vector<1x256xf32>, vector<1x256xf32>, vector<1x256xf32>, vector<1x256xf32>, vector<1x256xf32> -> vector<8x256xf32>
    %c0_16 = arith.constant 0 : index
    %c0_17 = arith.constant 0 : index
    %33 = vector.load %arg3[%c0_16, %c0_17] : memref<256x768xf32, #tpu.memory_space<vmem>>, vector<256x768xf32>
    %cst = arith.constant dense<0.000000e+00> : vector<8x768xf32>
    %34 = tpu.matmul %32, %33, %cst {dimension_numbers = #tpu.dot_dimension_numbers<[1], [0], [0], [1], [0, 0, 1, 1], [], []>} : vector<8x256xf32>, vector<256x768xf32>, vector<8x768xf32> -> vector<8x768xf32>
    %c0_18 = arith.constant 0 : index
    %c0_19 = arith.constant 0 : index
    %35 = vector.load %arg6[%c0_18, %c0_19] : memref<1x768xf32, #tpu.memory_space<vmem>>, vector<1x768xf32>
    %36 = vector.broadcast %35 : vector<1x768xf32> to vector<8x768xf32>
    %37 = arith.addf %34, %36 : vector<8x768xf32>
    %c0_20 = arith.constant 0 : index
    %c0_21 = arith.constant 0 : index
    %38 = vector.load %arg4[%c0_20, %c0_21] : memref<256x512xf32, #tpu.memory_space<vmem>>, vector<256x512xf32>
    %c0_22 = arith.constant 0 : index
    %c0_23 = arith.constant 0 : index
    %39 = vector.load %arg5[%c0_22, %c0_23] : memref<256x256xf32, #tpu.memory_space<vmem>>, vector<256x256xf32>
    %c0_24 = arith.constant 0 : index
    %c0_25 = arith.constant 0 : index
    %40 = vector.load %arg7[%c0_24, %c0_25] : memref<1x512xf32, #tpu.memory_space<vmem>>, vector<1x512xf32>
    %c0_26 = arith.constant 0 : index
    %c0_27 = arith.constant 0 : index
    %41 = vector.load %arg8[%c0_26, %c0_27] : memref<1x256xf32, #tpu.memory_space<vmem>>, vector<1x256xf32>
    %c0_28 = arith.constant 0 : index
    %c0_29 = arith.constant 0 : index
    %42 = vector.load %arg9[%c0_28, %c0_29] : memref<1x256xf32, #tpu.memory_space<vmem>>, vector<1x256xf32>
    %43 = vector.extract_strided_slice %37 {offsets = [0, 0], sizes = [1, 768], strides = [1, 1]} : vector<8x768xf32> to vector<1x768xf32>
    %cst_30 = arith.constant dense<0.000000e+00> : vector<1x512xf32>
    %44 = tpu.matmul %42, %38, %cst_30 {dimension_numbers = #tpu.dot_dimension_numbers<[1], [0], [0], [1], [0, 0, 1, 1], [], []>} : vector<1x256xf32>, vector<256x512xf32>, vector<1x512xf32> -> vector<1x512xf32>
    %45 = arith.addf %44, %40 : vector<1x512xf32>
    %46 = vector.extract_strided_slice %43 {offsets = [0, 0], sizes = [1, 256], strides = [1, 1]} : vector<1x768xf32> to vector<1x256xf32>
    %47 = vector.extract_strided_slice %45 {offsets = [0, 0], sizes = [1, 256], strides = [1, 1]} : vector<1x512xf32> to vector<1x256xf32>
    %48 = arith.addf %46, %47 : vector<1x256xf32>
    %49 = arith.negf %48 : vector<1x256xf32>
    %50 = math.exp %49 : vector<1x256xf32>
    %cst_31 = arith.constant 1.000000e+00 : f32
    %51 = vector.broadcast %cst_31 : f32 to vector<1x256xf32>
    %52 = arith.addf %51, %50 : vector<1x256xf32>
    %53 = arith.divf %51, %52 : vector<1x256xf32>
    %54 = vector.extract_strided_slice %43 {offsets = [0, 256], sizes = [1, 256], strides = [1, 1]} : vector<1x768xf32> to vector<1x256xf32>
    %55 = vector.extract_strided_slice %45 {offsets = [0, 256], sizes = [1, 256], strides = [1, 1]} : vector<1x512xf32> to vector<1x256xf32>
    %56 = arith.addf %54, %55 : vector<1x256xf32>
    %57 = arith.negf %56 : vector<1x256xf32>
    %58 = math.exp %57 : vector<1x256xf32>
    %cst_32 = arith.constant 1.000000e+00 : f32
    %59 = vector.broadcast %cst_32 : f32 to vector<1x256xf32>
    %60 = arith.addf %59, %58 : vector<1x256xf32>
    %61 = arith.divf %59, %60 : vector<1x256xf32>
    %cst_33 = arith.constant dense<0.000000e+00> : vector<1x256xf32>
    %62 = tpu.matmul %42, %39, %cst_33 {dimension_numbers = #tpu.dot_dimension_numbers<[1], [0], [0], [1], [0, 0, 1, 1], [], []>} : vector<1x256xf32>, vector<256x256xf32>, vector<1x256xf32> -> vector<1x256xf32>
    %63 = arith.addf %62, %41 : vector<1x256xf32>
    %64 = vector.extract_strided_slice %43 {offsets = [0, 512], sizes = [1, 256], strides = [1, 1]} : vector<1x768xf32> to vector<1x256xf32>
    %65 = arith.mulf %53, %63 : vector<1x256xf32>
    %66 = arith.addf %64, %65 : vector<1x256xf32>
    %67 = math.tanh %66 : vector<1x256xf32>
    %cst_34 = arith.constant 1.000000e+00 : f32
    %68 = vector.broadcast %cst_34 : f32 to vector<1x256xf32>
    %69 = arith.subf %68, %61 : vector<1x256xf32>
    %70 = arith.mulf %69, %67 : vector<1x256xf32>
    %71 = arith.mulf %61, %42 : vector<1x256xf32>
    %72 = arith.addf %70, %71 : vector<1x256xf32>
    %73 = vector.extract_strided_slice %37 {offsets = [1, 0], sizes = [1, 768], strides = [1, 1]} : vector<8x768xf32> to vector<1x768xf32>
    %cst_35 = arith.constant dense<0.000000e+00> : vector<1x512xf32>
    %74 = tpu.matmul %72, %38, %cst_35 {dimension_numbers = #tpu.dot_dimension_numbers<[1], [0], [0], [1], [0, 0, 1, 1], [], []>} : vector<1x256xf32>, vector<256x512xf32>, vector<1x512xf32> -> vector<1x512xf32>
    %75 = arith.addf %74, %40 : vector<1x512xf32>
    %76 = vector.extract_strided_slice %73 {offsets = [0, 0], sizes = [1, 256], strides = [1, 1]} : vector<1x768xf32> to vector<1x256xf32>
    %77 = vector.extract_strided_slice %75 {offsets = [0, 0], sizes = [1, 256], strides = [1, 1]} : vector<1x512xf32> to vector<1x256xf32>
    %78 = arith.addf %76, %77 : vector<1x256xf32>
    %79 = arith.negf %78 : vector<1x256xf32>
    %80 = math.exp %79 : vector<1x256xf32>
    %cst_36 = arith.constant 1.000000e+00 : f32
    %81 = vector.broadcast %cst_36 : f32 to vector<1x256xf32>
    %82 = arith.addf %81, %80 : vector<1x256xf32>
    %83 = arith.divf %81, %82 : vector<1x256xf32>
    %84 = vector.extract_strided_slice %73 {offsets = [0, 256], sizes = [1, 256], strides = [1, 1]} : vector<1x768xf32> to vector<1x256xf32>
    %85 = vector.extract_strided_slice %75 {offsets = [0, 256], sizes = [1, 256], strides = [1, 1]} : vector<1x512xf32> to vector<1x256xf32>
    %86 = arith.addf %84, %85 : vector<1x256xf32>
    %87 = arith.negf %86 : vector<1x256xf32>
    %88 = math.exp %87 : vector<1x256xf32>
    %cst_37 = arith.constant 1.000000e+00 : f32
    %89 = vector.broadcast %cst_37 : f32 to vector<1x256xf32>
    %90 = arith.addf %89, %88 : vector<1x256xf32>
    %91 = arith.divf %89, %90 : vector<1x256xf32>
    %cst_38 = arith.constant dense<0.000000e+00> : vector<1x256xf32>
    %92 = tpu.matmul %72, %39, %cst_38 {dimension_numbers = #tpu.dot_dimension_numbers<[1], [0], [0], [1], [0, 0, 1, 1], [], []>} : vector<1x256xf32>, vector<256x256xf32>, vector<1x256xf32> -> vector<1x256xf32>
    %93 = arith.addf %92, %41 : vector<1x256xf32>
    %94 = vector.extract_strided_slice %73 {offsets = [0, 512], sizes = [1, 256], strides = [1, 1]} : vector<1x768xf32> to vector<1x256xf32>
    %95 = arith.mulf %83, %93 : vector<1x256xf32>
    %96 = arith.addf %94, %95 : vector<1x256xf32>
    %97 = math.tanh %96 : vector<1x256xf32>
    %cst_39 = arith.constant 1.000000e+00 : f32
    %98 = vector.broadcast %cst_39 : f32 to vector<1x256xf32>
    %99 = arith.subf %98, %91 : vector<1x256xf32>
    %100 = arith.mulf %99, %97 : vector<1x256xf32>
    %101 = arith.mulf %91, %72 : vector<1x256xf32>
    %102 = arith.addf %100, %101 : vector<1x256xf32>
    %103 = vector.extract_strided_slice %37 {offsets = [2, 0], sizes = [1, 768], strides = [1, 1]} : vector<8x768xf32> to vector<1x768xf32>
    %cst_40 = arith.constant dense<0.000000e+00> : vector<1x512xf32>
    %104 = tpu.matmul %102, %38, %cst_40 {dimension_numbers = #tpu.dot_dimension_numbers<[1], [0], [0], [1], [0, 0, 1, 1], [], []>} : vector<1x256xf32>, vector<256x512xf32>, vector<1x512xf32> -> vector<1x512xf32>
    %105 = arith.addf %104, %40 : vector<1x512xf32>
    %106 = vector.extract_strided_slice %103 {offsets = [0, 0], sizes = [1, 256], strides = [1, 1]} : vector<1x768xf32> to vector<1x256xf32>
    %107 = vector.extract_strided_slice %105 {offsets = [0, 0], sizes = [1, 256], strides = [1, 1]} : vector<1x512xf32> to vector<1x256xf32>
    %108 = arith.addf %106, %107 : vector<1x256xf32>
    %109 = arith.negf %108 : vector<1x256xf32>
    %110 = math.exp %109 : vector<1x256xf32>
    %cst_41 = arith.constant 1.000000e+00 : f32
    %111 = vector.broadcast %cst_41 : f32 to vector<1x256xf32>
    %112 = arith.addf %111, %110 : vector<1x256xf32>
    %113 = arith.divf %111, %112 : vector<1x256xf32>
    %114 = vector.extract_strided_slice %103 {offsets = [0, 256], sizes = [1, 256], strides = [1, 1]} : vector<1x768xf32> to vector<1x256xf32>
    %115 = vector.extract_strided_slice %105 {offsets = [0, 256], sizes = [1, 256], strides = [1, 1]} : vector<1x512xf32> to vector<1x256xf32>
    %116 = arith.addf %114, %115 : vector<1x256xf32>
    %117 = arith.negf %116 : vector<1x256xf32>
    %118 = math.exp %117 : vector<1x256xf32>
    %cst_42 = arith.constant 1.000000e+00 : f32
    %119 = vector.broadcast %cst_42 : f32 to vector<1x256xf32>
    %120 = arith.addf %119, %118 : vector<1x256xf32>
    %121 = arith.divf %119, %120 : vector<1x256xf32>
    %cst_43 = arith.constant dense<0.000000e+00> : vector<1x256xf32>
    %122 = tpu.matmul %102, %39, %cst_43 {dimension_numbers = #tpu.dot_dimension_numbers<[1], [0], [0], [1], [0, 0, 1, 1], [], []>} : vector<1x256xf32>, vector<256x256xf32>, vector<1x256xf32> -> vector<1x256xf32>
    %123 = arith.addf %122, %41 : vector<1x256xf32>
    %124 = vector.extract_strided_slice %103 {offsets = [0, 512], sizes = [1, 256], strides = [1, 1]} : vector<1x768xf32> to vector<1x256xf32>
    %125 = arith.mulf %113, %123 : vector<1x256xf32>
    %126 = arith.addf %124, %125 : vector<1x256xf32>
    %127 = math.tanh %126 : vector<1x256xf32>
    %cst_44 = arith.constant 1.000000e+00 : f32
    %128 = vector.broadcast %cst_44 : f32 to vector<1x256xf32>
    %129 = arith.subf %128, %121 : vector<1x256xf32>
    %130 = arith.mulf %129, %127 : vector<1x256xf32>
    %131 = arith.mulf %121, %102 : vector<1x256xf32>
    %132 = arith.addf %130, %131 : vector<1x256xf32>
    %133 = vector.extract_strided_slice %37 {offsets = [3, 0], sizes = [1, 768], strides = [1, 1]} : vector<8x768xf32> to vector<1x768xf32>
    %cst_45 = arith.constant dense<0.000000e+00> : vector<1x512xf32>
    %134 = tpu.matmul %132, %38, %cst_45 {dimension_numbers = #tpu.dot_dimension_numbers<[1], [0], [0], [1], [0, 0, 1, 1], [], []>} : vector<1x256xf32>, vector<256x512xf32>, vector<1x512xf32> -> vector<1x512xf32>
    %135 = arith.addf %134, %40 : vector<1x512xf32>
    %136 = vector.extract_strided_slice %133 {offsets = [0, 0], sizes = [1, 256], strides = [1, 1]} : vector<1x768xf32> to vector<1x256xf32>
    %137 = vector.extract_strided_slice %135 {offsets = [0, 0], sizes = [1, 256], strides = [1, 1]} : vector<1x512xf32> to vector<1x256xf32>
    %138 = arith.addf %136, %137 : vector<1x256xf32>
    %139 = arith.negf %138 : vector<1x256xf32>
    %140 = math.exp %139 : vector<1x256xf32>
    %cst_46 = arith.constant 1.000000e+00 : f32
    %141 = vector.broadcast %cst_46 : f32 to vector<1x256xf32>
    %142 = arith.addf %141, %140 : vector<1x256xf32>
    %143 = arith.divf %141, %142 : vector<1x256xf32>
    %144 = vector.extract_strided_slice %133 {offsets = [0, 256], sizes = [1, 256], strides = [1, 1]} : vector<1x768xf32> to vector<1x256xf32>
    %145 = vector.extract_strided_slice %135 {offsets = [0, 256], sizes = [1, 256], strides = [1, 1]} : vector<1x512xf32> to vector<1x256xf32>
    %146 = arith.addf %144, %145 : vector<1x256xf32>
    %147 = arith.negf %146 : vector<1x256xf32>
    %148 = math.exp %147 : vector<1x256xf32>
    %cst_47 = arith.constant 1.000000e+00 : f32
    %149 = vector.broadcast %cst_47 : f32 to vector<1x256xf32>
    %150 = arith.addf %149, %148 : vector<1x256xf32>
    %151 = arith.divf %149, %150 : vector<1x256xf32>
    %cst_48 = arith.constant dense<0.000000e+00> : vector<1x256xf32>
    %152 = tpu.matmul %132, %39, %cst_48 {dimension_numbers = #tpu.dot_dimension_numbers<[1], [0], [0], [1], [0, 0, 1, 1], [], []>} : vector<1x256xf32>, vector<256x256xf32>, vector<1x256xf32> -> vector<1x256xf32>
    %153 = arith.addf %152, %41 : vector<1x256xf32>
    %154 = vector.extract_strided_slice %133 {offsets = [0, 512], sizes = [1, 256], strides = [1, 1]} : vector<1x768xf32> to vector<1x256xf32>
    %155 = arith.mulf %143, %153 : vector<1x256xf32>
    %156 = arith.addf %154, %155 : vector<1x256xf32>
    %157 = math.tanh %156 : vector<1x256xf32>
    %cst_49 = arith.constant 1.000000e+00 : f32
    %158 = vector.broadcast %cst_49 : f32 to vector<1x256xf32>
    %159 = arith.subf %158, %151 : vector<1x256xf32>
    %160 = arith.mulf %159, %157 : vector<1x256xf32>
    %161 = arith.mulf %151, %132 : vector<1x256xf32>
    %162 = arith.addf %160, %161 : vector<1x256xf32>
    %163 = vector.extract_strided_slice %37 {offsets = [4, 0], sizes = [1, 768], strides = [1, 1]} : vector<8x768xf32> to vector<1x768xf32>
    %cst_50 = arith.constant dense<0.000000e+00> : vector<1x512xf32>
    %164 = tpu.matmul %162, %38, %cst_50 {dimension_numbers = #tpu.dot_dimension_numbers<[1], [0], [0], [1], [0, 0, 1, 1], [], []>} : vector<1x256xf32>, vector<256x512xf32>, vector<1x512xf32> -> vector<1x512xf32>
    %165 = arith.addf %164, %40 : vector<1x512xf32>
    %166 = vector.extract_strided_slice %163 {offsets = [0, 0], sizes = [1, 256], strides = [1, 1]} : vector<1x768xf32> to vector<1x256xf32>
    %167 = vector.extract_strided_slice %165 {offsets = [0, 0], sizes = [1, 256], strides = [1, 1]} : vector<1x512xf32> to vector<1x256xf32>
    %168 = arith.addf %166, %167 : vector<1x256xf32>
    %169 = arith.negf %168 : vector<1x256xf32>
    %170 = math.exp %169 : vector<1x256xf32>
    %cst_51 = arith.constant 1.000000e+00 : f32
    %171 = vector.broadcast %cst_51 : f32 to vector<1x256xf32>
    %172 = arith.addf %171, %170 : vector<1x256xf32>
    %173 = arith.divf %171, %172 : vector<1x256xf32>
    %174 = vector.extract_strided_slice %163 {offsets = [0, 256], sizes = [1, 256], strides = [1, 1]} : vector<1x768xf32> to vector<1x256xf32>
    %175 = vector.extract_strided_slice %165 {offsets = [0, 256], sizes = [1, 256], strides = [1, 1]} : vector<1x512xf32> to vector<1x256xf32>
    %176 = arith.addf %174, %175 : vector<1x256xf32>
    %177 = arith.negf %176 : vector<1x256xf32>
    %178 = math.exp %177 : vector<1x256xf32>
    %cst_52 = arith.constant 1.000000e+00 : f32
    %179 = vector.broadcast %cst_52 : f32 to vector<1x256xf32>
    %180 = arith.addf %179, %178 : vector<1x256xf32>
    %181 = arith.divf %179, %180 : vector<1x256xf32>
    %cst_53 = arith.constant dense<0.000000e+00> : vector<1x256xf32>
    %182 = tpu.matmul %162, %39, %cst_53 {dimension_numbers = #tpu.dot_dimension_numbers<[1], [0], [0], [1], [0, 0, 1, 1], [], []>} : vector<1x256xf32>, vector<256x256xf32>, vector<1x256xf32> -> vector<1x256xf32>
    %183 = arith.addf %182, %41 : vector<1x256xf32>
    %184 = vector.extract_strided_slice %163 {offsets = [0, 512], sizes = [1, 256], strides = [1, 1]} : vector<1x768xf32> to vector<1x256xf32>
    %185 = arith.mulf %173, %183 : vector<1x256xf32>
    %186 = arith.addf %184, %185 : vector<1x256xf32>
    %187 = math.tanh %186 : vector<1x256xf32>
    %cst_54 = arith.constant 1.000000e+00 : f32
    %188 = vector.broadcast %cst_54 : f32 to vector<1x256xf32>
    %189 = arith.subf %188, %181 : vector<1x256xf32>
    %190 = arith.mulf %189, %187 : vector<1x256xf32>
    %191 = arith.mulf %181, %162 : vector<1x256xf32>
    %192 = arith.addf %190, %191 : vector<1x256xf32>
    %193 = vector.extract_strided_slice %37 {offsets = [5, 0], sizes = [1, 768], strides = [1, 1]} : vector<8x768xf32> to vector<1x768xf32>
    %cst_55 = arith.constant dense<0.000000e+00> : vector<1x512xf32>
    %194 = tpu.matmul %192, %38, %cst_55 {dimension_numbers = #tpu.dot_dimension_numbers<[1], [0], [0], [1], [0, 0, 1, 1], [], []>} : vector<1x256xf32>, vector<256x512xf32>, vector<1x512xf32> -> vector<1x512xf32>
    %195 = arith.addf %194, %40 : vector<1x512xf32>
    %196 = vector.extract_strided_slice %193 {offsets = [0, 0], sizes = [1, 256], strides = [1, 1]} : vector<1x768xf32> to vector<1x256xf32>
    %197 = vector.extract_strided_slice %195 {offsets = [0, 0], sizes = [1, 256], strides = [1, 1]} : vector<1x512xf32> to vector<1x256xf32>
    %198 = arith.addf %196, %197 : vector<1x256xf32>
    %199 = arith.negf %198 : vector<1x256xf32>
    %200 = math.exp %199 : vector<1x256xf32>
    %cst_56 = arith.constant 1.000000e+00 : f32
    %201 = vector.broadcast %cst_56 : f32 to vector<1x256xf32>
    %202 = arith.addf %201, %200 : vector<1x256xf32>
    %203 = arith.divf %201, %202 : vector<1x256xf32>
    %204 = vector.extract_strided_slice %193 {offsets = [0, 256], sizes = [1, 256], strides = [1, 1]} : vector<1x768xf32> to vector<1x256xf32>
    %205 = vector.extract_strided_slice %195 {offsets = [0, 256], sizes = [1, 256], strides = [1, 1]} : vector<1x512xf32> to vector<1x256xf32>
    %206 = arith.addf %204, %205 : vector<1x256xf32>
    %207 = arith.negf %206 : vector<1x256xf32>
    %208 = math.exp %207 : vector<1x256xf32>
    %cst_57 = arith.constant 1.000000e+00 : f32
    %209 = vector.broadcast %cst_57 : f32 to vector<1x256xf32>
    %210 = arith.addf %209, %208 : vector<1x256xf32>
    %211 = arith.divf %209, %210 : vector<1x256xf32>
    %cst_58 = arith.constant dense<0.000000e+00> : vector<1x256xf32>
    %212 = tpu.matmul %192, %39, %cst_58 {dimension_numbers = #tpu.dot_dimension_numbers<[1], [0], [0], [1], [0, 0, 1, 1], [], []>} : vector<1x256xf32>, vector<256x256xf32>, vector<1x256xf32> -> vector<1x256xf32>
    %213 = arith.addf %212, %41 : vector<1x256xf32>
    %214 = vector.extract_strided_slice %193 {offsets = [0, 512], sizes = [1, 256], strides = [1, 1]} : vector<1x768xf32> to vector<1x256xf32>
    %215 = arith.mulf %203, %213 : vector<1x256xf32>
    %216 = arith.addf %214, %215 : vector<1x256xf32>
    %217 = math.tanh %216 : vector<1x256xf32>
    %cst_59 = arith.constant 1.000000e+00 : f32
    %218 = vector.broadcast %cst_59 : f32 to vector<1x256xf32>
    %219 = arith.subf %218, %211 : vector<1x256xf32>
    %220 = arith.mulf %219, %217 : vector<1x256xf32>
    %221 = arith.mulf %211, %192 : vector<1x256xf32>
    %222 = arith.addf %220, %221 : vector<1x256xf32>
    %223 = vector.extract_strided_slice %37 {offsets = [6, 0], sizes = [1, 768], strides = [1, 1]} : vector<8x768xf32> to vector<1x768xf32>
    %cst_60 = arith.constant dense<0.000000e+00> : vector<1x512xf32>
    %224 = tpu.matmul %222, %38, %cst_60 {dimension_numbers = #tpu.dot_dimension_numbers<[1], [0], [0], [1], [0, 0, 1, 1], [], []>} : vector<1x256xf32>, vector<256x512xf32>, vector<1x512xf32> -> vector<1x512xf32>
    %225 = arith.addf %224, %40 : vector<1x512xf32>
    %226 = vector.extract_strided_slice %223 {offsets = [0, 0], sizes = [1, 256], strides = [1, 1]} : vector<1x768xf32> to vector<1x256xf32>
    %227 = vector.extract_strided_slice %225 {offsets = [0, 0], sizes = [1, 256], strides = [1, 1]} : vector<1x512xf32> to vector<1x256xf32>
    %228 = arith.addf %226, %227 : vector<1x256xf32>
    %229 = arith.negf %228 : vector<1x256xf32>
    %230 = math.exp %229 : vector<1x256xf32>
    %cst_61 = arith.constant 1.000000e+00 : f32
    %231 = vector.broadcast %cst_61 : f32 to vector<1x256xf32>
    %232 = arith.addf %231, %230 : vector<1x256xf32>
    %233 = arith.divf %231, %232 : vector<1x256xf32>
    %234 = vector.extract_strided_slice %223 {offsets = [0, 256], sizes = [1, 256], strides = [1, 1]} : vector<1x768xf32> to vector<1x256xf32>
    %235 = vector.extract_strided_slice %225 {offsets = [0, 256], sizes = [1, 256], strides = [1, 1]} : vector<1x512xf32> to vector<1x256xf32>
    %236 = arith.addf %234, %235 : vector<1x256xf32>
    %237 = arith.negf %236 : vector<1x256xf32>
    %238 = math.exp %237 : vector<1x256xf32>
    %cst_62 = arith.constant 1.000000e+00 : f32
    %239 = vector.broadcast %cst_62 : f32 to vector<1x256xf32>
    %240 = arith.addf %239, %238 : vector<1x256xf32>
    %241 = arith.divf %239, %240 : vector<1x256xf32>
    %cst_63 = arith.constant dense<0.000000e+00> : vector<1x256xf32>
    %242 = tpu.matmul %222, %39, %cst_63 {dimension_numbers = #tpu.dot_dimension_numbers<[1], [0], [0], [1], [0, 0, 1, 1], [], []>} : vector<1x256xf32>, vector<256x256xf32>, vector<1x256xf32> -> vector<1x256xf32>
    %243 = arith.addf %242, %41 : vector<1x256xf32>
    %244 = vector.extract_strided_slice %223 {offsets = [0, 512], sizes = [1, 256], strides = [1, 1]} : vector<1x768xf32> to vector<1x256xf32>
    %245 = arith.mulf %233, %243 : vector<1x256xf32>
    %246 = arith.addf %244, %245 : vector<1x256xf32>
    %247 = math.tanh %246 : vector<1x256xf32>
    %cst_64 = arith.constant 1.000000e+00 : f32
    %248 = vector.broadcast %cst_64 : f32 to vector<1x256xf32>
    %249 = arith.subf %248, %241 : vector<1x256xf32>
    %250 = arith.mulf %249, %247 : vector<1x256xf32>
    %251 = arith.mulf %241, %222 : vector<1x256xf32>
    %252 = arith.addf %250, %251 : vector<1x256xf32>
    %253 = vector.extract_strided_slice %37 {offsets = [7, 0], sizes = [1, 768], strides = [1, 1]} : vector<8x768xf32> to vector<1x768xf32>
    %cst_65 = arith.constant dense<0.000000e+00> : vector<1x512xf32>
    %254 = tpu.matmul %252, %38, %cst_65 {dimension_numbers = #tpu.dot_dimension_numbers<[1], [0], [0], [1], [0, 0, 1, 1], [], []>} : vector<1x256xf32>, vector<256x512xf32>, vector<1x512xf32> -> vector<1x512xf32>
    %255 = arith.addf %254, %40 : vector<1x512xf32>
    %256 = vector.extract_strided_slice %253 {offsets = [0, 0], sizes = [1, 256], strides = [1, 1]} : vector<1x768xf32> to vector<1x256xf32>
    %257 = vector.extract_strided_slice %255 {offsets = [0, 0], sizes = [1, 256], strides = [1, 1]} : vector<1x512xf32> to vector<1x256xf32>
    %258 = arith.addf %256, %257 : vector<1x256xf32>
    %259 = arith.negf %258 : vector<1x256xf32>
    %260 = math.exp %259 : vector<1x256xf32>
    %cst_66 = arith.constant 1.000000e+00 : f32
    %261 = vector.broadcast %cst_66 : f32 to vector<1x256xf32>
    %262 = arith.addf %261, %260 : vector<1x256xf32>
    %263 = arith.divf %261, %262 : vector<1x256xf32>
    %264 = vector.extract_strided_slice %253 {offsets = [0, 256], sizes = [1, 256], strides = [1, 1]} : vector<1x768xf32> to vector<1x256xf32>
    %265 = vector.extract_strided_slice %255 {offsets = [0, 256], sizes = [1, 256], strides = [1, 1]} : vector<1x512xf32> to vector<1x256xf32>
    %266 = arith.addf %264, %265 : vector<1x256xf32>
    %267 = arith.negf %266 : vector<1x256xf32>
    %268 = math.exp %267 : vector<1x256xf32>
    %cst_67 = arith.constant 1.000000e+00 : f32
    %269 = vector.broadcast %cst_67 : f32 to vector<1x256xf32>
    %270 = arith.addf %269, %268 : vector<1x256xf32>
    %271 = arith.divf %269, %270 : vector<1x256xf32>
    %cst_68 = arith.constant dense<0.000000e+00> : vector<1x256xf32>
    %272 = tpu.matmul %252, %39, %cst_68 {dimension_numbers = #tpu.dot_dimension_numbers<[1], [0], [0], [1], [0, 0, 1, 1], [], []>} : vector<1x256xf32>, vector<256x256xf32>, vector<1x256xf32> -> vector<1x256xf32>
    %273 = arith.addf %272, %41 : vector<1x256xf32>
    %274 = vector.extract_strided_slice %253 {offsets = [0, 512], sizes = [1, 256], strides = [1, 1]} : vector<1x768xf32> to vector<1x256xf32>
    %275 = arith.mulf %263, %273 : vector<1x256xf32>
    %276 = arith.addf %274, %275 : vector<1x256xf32>
    %277 = math.tanh %276 : vector<1x256xf32>
    %cst_69 = arith.constant 1.000000e+00 : f32
    %278 = vector.broadcast %cst_69 : f32 to vector<1x256xf32>
    %279 = arith.subf %278, %271 : vector<1x256xf32>
    %280 = arith.mulf %279, %277 : vector<1x256xf32>
    %281 = arith.mulf %271, %252 : vector<1x256xf32>
    %282 = arith.addf %280, %281 : vector<1x256xf32>
    %283 = tpu.concatenate %72, %102, %132, %162, %192, %222, %252, %282 in 0 : vector<1x256xf32>, vector<1x256xf32>, vector<1x256xf32>, vector<1x256xf32>, vector<1x256xf32>, vector<1x256xf32>, vector<1x256xf32>, vector<1x256xf32> -> vector<8x256xf32>
    %c0_70 = arith.constant 0 : index
    %c0_71 = arith.constant 0 : index
    %284 = vector.load %arg10[%c0_70, %c0_71] : memref<8x256xf32, #tpu.memory_space<vmem>>, vector<8x256xf32>
    tpu.vector_store %arg10[%c0_70, %c0_71], %283 {strides = array<i32>} : memref<8x256xf32, #tpu.memory_space<vmem>>, vector<8x256xf32>,
    return
  }
  func.func @transform_0(%arg0: i32, %arg1: memref<8xi32, #tpu.memory_space<smem>>) -> (i32, i32, i32) {
    %c0_i32 = arith.constant 0 : i32
    %c0_i32_0 = arith.constant 0 : i32
    %c0_i32_1 = arith.constant 0 : i32
    %c0_i32_2 = arith.constant 0 : i32
    return %c0_i32, %c0_i32_0, %c0_i32_1 : i32, i32, i32
  }
  func.func @transform_1(%arg0: i32, %arg1: memref<8xi32, #tpu.memory_space<smem>>) -> (i32, i32) {
    %c0_i32 = arith.constant 0 : i32
    %c0_i32_0 = arith.constant 0 : i32
    %c0_i32_1 = arith.constant 0 : i32
    return %c0_i32, %c0_i32_0 : i32, i32
  }
  func.func @transform_2(%arg0: i32, %arg1: memref<8xi32, #tpu.memory_space<smem>>) -> (i32, i32) {
    %c0_i32 = arith.constant 0 : i32
    %c0_i32_0 = arith.constant 0 : i32
    %c0_i32_1 = arith.constant 0 : i32
    return %c0_i32, %c0_i32_0 : i32, i32
  }
  func.func @transform_3(%arg0: i32, %arg1: memref<8xi32, #tpu.memory_space<smem>>) -> (i32, i32) {
    %c0_i32 = arith.constant 0 : i32
    %c0_i32_0 = arith.constant 0 : i32
    %c0_i32_1 = arith.constant 0 : i32
    return %c0_i32, %c0_i32_0 : i32, i32
  }
  func.func @transform_4(%arg0: i32, %arg1: memref<8xi32, #tpu.memory_space<smem>>) -> (i32, i32) {
    %c0_i32 = arith.constant 0 : i32
    %c0_i32_0 = arith.constant 0 : i32
    %c0_i32_1 = arith.constant 0 : i32
    return %c0_i32, %c0_i32_0 : i32, i32
  }
  func.func @transform_5(%arg0: i32, %arg1: memref<8xi32, #tpu.memory_space<smem>>) -> (i32, i32) {
    %c0_i32 = arith.constant 0 : i32
    %c0_i32_0 = arith.constant 0 : i32
    %c0_i32_1 = arith.constant 0 : i32
    return %c0_i32, %c0_i32_0 : i32, i32
  }
  func.func @transform_6(%arg0: i32, %arg1: memref<8xi32, #tpu.memory_space<smem>>) -> (i32, i32) {
    %c0_i32 = arith.constant 0 : i32
    %c0_i32_0 = arith.constant 0 : i32
    %c0_i32_1 = arith.constant 0 : i32
    return %c0_i32, %c0_i32_0 : i32, i32
  }
  func.func @transform_7(%arg0: i32, %arg1: memref<8xi32, #tpu.memory_space<smem>>) -> (i32, i32) {
    %c0_i32 = arith.constant 0 : i32
    %c0_i32_0 = arith.constant 0 : i32
    %c0_i32_1 = arith.constant 0 : i32
    return %c0_i32, %c0_i32_0 : i32, i32
  }
  func.func @transform_8(%arg0: i32, %arg1: memref<8xi32, #tpu.memory_space<smem>>) -> (i32, i32) {
    %c0_i32 = arith.constant 0 : i32
    %c0_i32_0 = arith.constant 0 : i32
    %c0_i32_1 = arith.constant 0 : i32
    return %c0_i32, %c0_i32_0 : i32, i32
  }
}

</mosaic_0001>

<bundles_post_ra>
// kernel: tpu_custom_call.1
= control target key start
LH: loop header
LB: loop body
LE: loop exit
PB: predicated region body
PF: predicated region fallthrough
CT: control target
= control target key end

     0   :  { %s6804_s0 = inlined_call_operand.hbm [shape: s32[8], index: 0, kind: input, shape index: {}]   ;;  %s6805_s1 = inlined_call_operand.hbm [shape: f32[20,1,256], index: 1, kind: input, shape index: {}]   ;;  %s6806_s2 = inlined_call_operand.hbm [shape: f32[256,768], index: 2, kind: input, shape index: {}]   ;;  %s6807_s3 = inlined_call_operand.hbm [shape: f32[256,512], index: 3, kind: input, shape index: {}]   ;;  %s6808_s4 = inlined_call_operand.hbm [shape: f32[256,256], index: 4, kind: input, shape index: {}]   ;;  %s6809_s5 = inlined_call_operand.vmem [shape: f32[1,768], index: 5, kind: input, shape index: {}]   ;;  %s6810_s6 = inlined_call_operand.vmem [shape: f32[1,512], index: 6, kind: input, shape index: {}]   ;;  %s6811_s7 = inlined_call_operand.vmem [shape: f32[1,256], index: 7, kind: input, shape index: {}]   ;;  %s6812_s8 = inlined_call_operand.vmem [shape: f32[1,256], index: 8, kind: input, shape index: {}]   ;;  %s6813_s9 = inlined_call_operand.hbm [shape: f32[8,256], index: 9, kind: output, shape index: {}]  }
   0x1   :  { %s5135_s11 = scalar_lea.hbm %s6804_s0, 16 }
   0x2   :  { %p5136_p0 = scmp.ne.s32.totalorder %s6804_s0, %s5135_s11  ;;  %p5139_p1 = scmp.lt.u32.totalorder %s5135_s11, %s6804_s0 }
   0x4   :  { %p5141_p2 = pnand %p5139_p1, %p5136_p0 }
   0x6   :  { %5144 = shalt.err (!%p5141_p2)  }
   0x7   :  { %s5265_s16 = smov [#allocation3]  }
   0x8   :  { %15 = dma.hbm_to_smem %s6804_s0, 16, %s5265_s16, [#allocation2] }
   0x9   :  { %5255 = dma.done.wait [#allocation2], 16 }
   0xa   :  { %5256 = vsyncadd [#allocation2], 4294967280 }
   0xb   :  { %17 = sfence }
   0xc   :  { %18 = vsyncpa [#allocation5], 0 }
   0xd   :  { %19 = vsyncpa [#allocation8], 0 }
   0xe   :  { %20 = vsyncpa [#allocation11], 0 }
   0xf   :  { %21 = vsyncpa [#allocation6], 0  ;;  %s5266_s19 = smov [#allocation7]   ;;  %s5145_s23 = scalar_lea.hbm %s6806_s2, 24576 }
  0x10   :  { %s39_s20 = sshll.u32 %s5266_s19, 4  ;;  %p5146_p3 = scmp.ne.s32.totalorder %s6806_s2, %s5145_s23  ;;  %s40_s20 = int_to_ptr.vmem [resolvable:$true] %s39_s20 }
  0x11   :  { %p5149_p4 = scmp.lt.u32.totalorder %s5145_s23, %s6806_s2 }
  0x13   :  { %p5151_p5 = pnand %p5149_p4, %p5146_p3 }
  0x15   :  { %5154 = shalt.err (!%p5151_p5)
}
  0x16   :  { %s5155_s27 = scalar_lea.vmem %s40_s20, 24576  ;;  %p5160_p7 = scmp.lt.s32.totalorder %s40_s20, %s40_s20 }
  0x17   :  { %p5156_p6 = scmp.ne.s32.totalorder %s40_s20, %s5155_s27  ;;  %p5161_p8 = scmp.lt.s32.totalorder %s5155_s27, %s5155_s27 }
  0x19   :  { %p5162_p9 = por %p5161_p8, %p5160_p7 }
  0x1b   :  { %p5163_p10 = pnand %p5162_p9, %p5156_p6 }
  0x1d   :  { %5166 = shalt.err (!%p5163_p10)
}
  0x1e   :  { %s5267_s28 = smov 768   ;;  %s5268_s29 = smov 48  }
  0x1f   :  { %45 = dma.hbm_to_vmem [thread:$0]  %s6806_s2, 24576, %s40_s20, [#allocation8], %s5267_s28, %s5267_s28, %s5268_s29  }
  0x20   :  { %s5269_s11 = smov [#allocation4]   ;;  %s5167_s15 = scalar_lea.hbm %s6805_s1, 640 }
  0x21   :  { %s27_s12 = sshll.u32 %s5269_s11, 4  ;;  %p5168_p11 = scmp.ne.s32.totalorder %s6805_s1, %s5167_s15  ;;  %s28_s12 = int_to_ptr.vmem [resolvable:$true] %s27_s12 }
  0x22   :  { %p5171_p12 = scmp.lt.u32.totalorder %s5167_s15, %s6805_s1 }
  0x24   :  { %p5173_p13 = pnand %p5171_p12, %p5168_p11 }
  0x26   :  { %5176 = shalt.err (!%p5173_p13)
}
  0x27   :  { %s5177_s21 = scalar_lea.vmem %s28_s12, 640  ;;  %p5182_p1 = scmp.lt.s32.totalorder %s28_s12, %s28_s12 }
  0x28   :  { %p5178_p0 = scmp.ne.s32.totalorder %s28_s12, %s5177_s21  ;;  %p5183_p2 = scmp.lt.s32.totalorder %s5177_s21, %s5177_s21 }
  0x2a   :  { %p5184_p3 = por %p5183_p2, %p5182_p1 }
  0x2c   :  { %p5185_p4 = pnand %p5184_p3, %p5178_p0 }
  0x2e   :  { %5188 = shalt.err (!%p5185_p4)
}
  0x2f   :  { %s5270_s2 = smov 32   ;;  %s5271_s20 = smov 2  }
  0x30   :  { %33 = dma.hbm_to_vmem [thread:$0]  %s6805_s1, 640, %s28_s12, [#allocation5], %s5270_s2, %s5270_s2, %s5271_s20  }
  0x31   :  { %s5272_s24 = smov [#allocation9]   ;;  %s5273_s26 = smov [#allocation10]  }
  0x32   :  { %s51_s25 = sshll.u32 %s5272_s24, 4  ;;  %s63_s0 = sshll.u32 %s5273_s26, 4  ;;  %s52_s25 = int_to_ptr.vmem [resolvable:$true] %s51_s25  ;;  %s64_s0 = int_to_ptr.vmem [resolvable:$true] %s63_s0 }
  0x33   :  { %s5189_s29 = scalar_lea.hbm %s6807_s3, 16384 }
  0x34   :  { %p5190_p5 = scmp.ne.s32.totalorder %s6807_s3, %s5189_s29  ;;  %p5193_p6 = scmp.lt.u32.totalorder %s5189_s29, %s6807_s3 }
  0x36   :  { %p5195_p7 = pnand %p5193_p6, %p5190_p5 }
  0x38   :  { %5198 = shalt.err (!%p5195_p7)
}
  0x39   :  { %s5199_s1 = scalar_lea.vmem %s52_s25, 16384  ;;  %p5204_p9 = scmp.lt.s32.totalorder %s52_s25, %s52_s25 }
  0x3a   :  { %p5200_p8 = scmp.ne.s32.totalorder %s52_s25, %s5199_s1  ;;  %p5205_p10 = scmp.lt.s32.totalorder %s5199_s1, %s5199_s1 }
  0x3c   :  { %p5206_p11 = por %p5205_p10, %p5204_p9 }
  0x3e   :  { %p5207_p12 = pnand %p5206_p11, %p5200_p8 }
  0x40   :  { %5210 = shalt.err (!%p5207_p12)
}
  0x41   :  { %s5274_s12 = smov 512   ;;  %s5211_s18 = scalar_lea.hbm %s6808_s4, 8192 }
  0x42   :  { %57 = dma.hbm_to_vmem [thread:$0]  %s6807_s3, 16384, %s52_s25, [#allocation8], %s5274_s12, %s5274_s12, %s5270_s2  }
  0x43   :  { %p5212_p13 = scmp.ne.s32.totalorder %s6808_s4, %s5211_s18  ;;  %p5215_p0 = scmp.lt.u32.totalorder %s5211_s18, %s6808_s4 }
  0x45   :  { %p5217_p1 = pnand %p5215_p0, %p5212_p13 }
  0x47   :  { %5220 = shalt.err (!%p5217_p1)
}
  0x48   :  { %s5221_s23 = scalar_lea.vmem %s64_s0, 8192  ;;  %p5226_p3 = scmp.lt.s32.totalorder %s64_s0, %s64_s0 }
  0x49   :  { %p5222_p2 = scmp.ne.s32.totalorder %s64_s0, %s5221_s23  ;;  %p5227_p4 = scmp.lt.s32.totalorder %s5221_s23, %s5221_s23 }
  0x4b   :  { %p5228_p5 = por %p5227_p4, %p5226_p3 }
  0x4d   :  { %p5229_p6 = pnand %p5228_p5, %p5222_p2 }
  0x4f   :  { %5232 = shalt.err (!%p5229_p6)
}
  0x50   :  { %s5275_s3 = smov 256   ;;  %s5276_s2 = smov 16  }
  0x51   :  { %69 = dma.hbm_to_vmem [thread:$0]  %s6808_s4, 8192, %s64_s0, [#allocation11], %s5275_s3, %s5275_s3, %s5276_s2  }
  0x52   :  { %5257 = dma.done.wait [#allocation5], 640  }
  0x53   :  { %5258 = vsyncadd [#allocation5], 4294966656 }
  0x54   :  { %5259 = dma.done.wait [#allocation8], 40960  }
  0x55   :  { %5260 = vsyncadd [#allocation8], 4294926336 }
  0x56   :  { %5261 = dma.done.wait [#allocation11], 8192  }
  0x57   :  { %5262 = vsyncadd [#allocation11], 4294959104  ;;  %v232_v0 = vld [vmem:[#allocation7 + $0x8] sm:$0xff]  ;;  %v238_v1 = vld [vmem:[#allocation7 + $0x38] sm:$0xff]  ;;  %s5388_s4 = sld [smem:[#allocation3]]  ;;  %s5390_s26 = sld [smem:[#allocation3 + $0x1]] }
  0x58   :  { %v234_v2 = vld [vmem:[#allocation7 + $0x18] sm:$0xff]  ;;  %v3234_v3 = vpack.c.bf16 %v238_v1, %v232_v0  ;;  %v240_v4 = vld [vmem:[#allocation7 + $0x48] sm:$0xff]  ;;  %v231_v5 = vld [vmem:[#allocation7] sm:$0xff]  ;;  %s5392_s0 = sld [smem:[#allocation3 + $0x2]]  ;;  %s5394_s27 = sld [smem:[#allocation3 + $0x3]]  ;;  %vm210_vm0 = vcmask 1040384  }
  0x59   :  { %v237_v6 = vld [vmem:[#allocation7 + $0x30] sm:$0xff]  ;;  %v3298_v7 = vpack.c.bf16 %v240_v4, %v234_v2  ;;  %v239_v10 = vld [vmem:[#allocation7 + $0x40] sm:$0xff]  ;;  %v244_v11 = vld [vmem:[#allocation7 + $0x68] sm:$0xff]  ;;  %s5396_s28 = sld [smem:[#allocation3 + $0x4]]  ;;  %s5398_s29 = sld [smem:[#allocation3 + $0x5]]  ;;  %vm213_vm1 = vcmask 1041408  }
  0x5a   :  { %v3236_v8 = vpack.c.bf16 %v237_v6, %v231_v5  ;;  %v233_v9 = vld [vmem:[#allocation7 + $0x10] sm:$0xff]  ;;  %3235 = vmatprep.subr.bf16.mxu0 %v3234_v3  ;;  %v250_v13 = vld [vmem:[#allocation7 + $0x98] sm:$0xff]  ;;  %v252_v15 = vld [vmem:[#allocation7 + $0xa8] sm:$0xff]  ;;  %s5400_s30 = sld [smem:[#allocation3 + $0x6]]  ;;  %s5402_s10 = sld [smem:[#allocation3 + $0x7]]  ;;  %vm216_vm2 = vcmask 1042432  }
  0x5b   :  { %v3300_v12 = vpack.c.bf16 %v239_v10, %v233_v9  ;;  %v246_v14 = vld [vmem:[#allocation7 + $0x78] sm:$0xff]  ;;  %3299 = vmatprep.subr.bf16.mxu1 %v3298_v7  ;;  %v3238_v16 = vpack.c.bf16 %v250_v13, %v244_v11  ;;  %v243_v18 = vld [vmem:[#allocation7 + $0x60] sm:$0xff]  ;;  %v249_v19 = vld [vmem:[#allocation7 + $0x90] sm:$0xff]  ;;  %vm219_vm3 = vcmask 1043456   ;;  %vm222_vm4 = vcmask 1044480  }
  0x5c   :  { %3237 = vmatpush1.bf16.msra.mxu0 %v3236_v8  ;;  %v3302_v17 = vpack.c.bf16 %v252_v15, %v246_v14  ;;  %v245_v20 = vld [vmem:[#allocation7 + $0x70] sm:$0xff]  ;;  %v3240_v21 = vpack.c.bf16 %v249_v19, %v243_v18  ;;  %v251_v22 = vld [vmem:[#allocation7 + $0xa0] sm:$0xff]  ;;  %v256_v23 = vld [vmem:[#allocation7 + $0xc8] sm:$0xff]  ;;  %vm225_vm5 = vcmask 1045504   ;;  %vm228_vm6 = vcmask 1046528  }
  0x5d   :  { %3301 = vmatpush1.bf16.msra.mxu1 %v3300_v12  ;;  %v262_v24 = vld [vmem:[#allocation7 + $0xf8] sm:$0xff]  ;;  %3239 = vmatprep.subr.bf16.mxu0 %v3238_v16  ;;  %v3304_v25 = vpack.c.bf16 %v251_v22, %v245_v20  ;;  %v264_v28 = vld [vmem:[#allocation7 + $0x108] sm:$0xff]  ;;  %v255_v29 = vld [vmem:[#allocation7 + $0xc0] sm:$0xff]  ;;  %s3187_s11 = sshll.u32 %s5388_s4, 1  ;;  %s3189_s13 = sshll.u32 %s5390_s26, 1 }
  0x5e   :  { %3303 = vmatprep.subr.bf16.mxu1 %v3302_v17  ;;  %v3242_v26 = vpack.c.bf16 %v262_v24, %v256_v23  ;;  %v258_v27 = vld [vmem:[#allocation7 + $0xd8] sm:$0xff]  ;;  %v261_v31 = vld [vmem:[#allocation7 + $0xf0] sm:$0xff]  ;;  %v263_v33 = vld [vmem:[#allocation7 + $0x100] sm:$0xff]  ;;  %s3191_s1 = sshll.u32 %s5392_s0, 1  ;;  %s3193_s12 = sshll.u32 %s5394_s27, 1 }
  0x5f   :  { %v3306_v30 = vpack.c.bf16 %v264_v28, %v258_v27  ;;  %v257_v32 = vld [vmem:[#allocation7 + $0xd0] sm:$0xff]  ;;  %v3244_v34 = vpack.c.bf16 %v261_v31, %v255_v29  ;;  %v268_v35 = vld [vmem:[#allocation7 + $0x128] sm:$0xff]  ;;  %v274_v36 = vld [vmem:[#allocation7 + $0x158] sm:$0xff]  ;;  %s3195_s14 = sshll.u32 %s5396_s28, 1  ;;  %s3197_s15 = sshll.u32 %s5398_s29, 1 }
  0x60   :  { %3241 = vmatpush1.bf16.msra.mxu0 %v3240_v21  ;;  %v270_v37 = vld [vmem:[#allocation7 + $0x138] sm:$0xff]  ;;  %v3308_v38 = vpack.c.bf16 %v263_v33, %v257_v32  ;;  %v3246_v39 = vpack.c.bf16 %v274_v36, %v268_v35  ;;  %v276_v40 = vld [vmem:[#allocation7 + $0x168] sm:$0xff]  ;;  %v267_v41 = vld [vmem:[#allocation7 + $0x120] sm:$0xff]  ;;  %s3199_s16 = sshll.u32 %s5400_s30, 1  ;;  %s3201_s17 = sshll.u32 %s5402_s10, 1 }
  0x61   :  { %3305 = vmatpush1.bf16.msra.mxu1 %v3304_v25  ;;  %3243 = vmatprep.subr.bf16.mxu0 %v3242_v26  ;;  %v273_v42 = vld [vmem:[#allocation7 + $0x150] sm:$0xff]  ;;  %v3310_v43 = vpack.c.bf16 %v276_v40, %v270_v37  ;;  %v275_v45 = vld [vmem:[#allocation7 + $0x160] sm:$0xff]  ;;  %v280_v46 = vld [vmem:[#allocation7 + $0x188] sm:$0xff]  ;;  %s92_s18 = scalar_lea.vmem [#allocation4], %s3187_s11  ;;  %s96_s19 = scalar_lea.vmem [#allocation4], %s3189_s13 }
  0x62   :  { %3307 = vmatprep.subr.bf16.mxu1 %v3306_v30  ;;  %v269_v44 = vld [vmem:[#allocation7 + $0x130] sm:$0xff]  ;;  %v286_v47 = vld [vmem:[#allocation7 + $0x1b8] sm:$0xff]  ;;  %v288_v49 = vld [vmem:[#allocation7 + $0x1c8] sm:$0xff]  ;;  %v3248_v50 = vpack.c.bf16 %v273_v42, %v267_v41  ;;  %s100_s21 = scalar_lea.vmem [#allocation4], %s3191_s1  ;;  %s104_s20 = scalar_lea.vmem [#allocation4], %s3193_s12 }
  0x63   :  { %v282_v48 = vld [vmem:[#allocation7 + $0x198] sm:$0xff]  ;;  %v3312_v51 = vpack.c.bf16 %v275_v45, %v269_v44  ;;  %v3250_v52 = vpack.c.bf16 %v286_v47, %v280_v46  ;;  %v279_v53 = vld [vmem:[#allocation7 + $0x180] sm:$0xff]  ;;  %v285_v54 = vld [vmem:[#allocation7 + $0x1b0] sm:$0xff]  ;;  %v123_v44 = vlaneseq  ;;  %s108_s22 = scalar_lea.vmem [#allocation4], %s3195_s14  ;;  %s112_s23 = scalar_lea.vmem [#allocation4], %s3197_s15 }
  0x64   :  { %3245 = vmatpush1.bf16.msra.mxu0 %v3244_v34  ;;  %v281_v55 = vld [vmem:[#allocation7 + $0x190] sm:$0xff]  ;;  %v3314_v56 = vpack.c.bf16 %v288_v49, %v282_v48  ;;  %v287_v57 = vld [vmem:[#allocation7 + $0x1c0] sm:$0xff]  ;;  %v292_v58 = vld [vmem:[#allocation7 + $0x1e8] sm:$0xff]  ;;  %v3252_v62 = vpack.c.bf16 %v285_v54, %v279_v53  ;;  %s116_s3 = scalar_lea.vmem [#allocation4], %s3199_s16  ;;  %s120_s2 = scalar_lea.vmem [#allocation4], %s3201_s17 }
  0x65   :  { %3309 = vmatpush1.bf16.msra.mxu1 %v3308_v38  ;;  %3247 = vmatprep.subr.bf16.mxu0 %v3246_v39  ;;  %v298_v59 = vld [vmem:[#allocation7 + $0x218] sm:$0xff]  ;;  %v300_v61 = vld [vmem:[#allocation7 + $0x228] sm:$0xff]  ;;  %v3316_v63 = vpack.c.bf16 %v287_v57, %v281_v55  ;;  %v291_v1 = vld [vmem:[#allocation7 + $0x1e0] sm:$0xff]  ;;  %v5406_v57 = vshrl.u32 %v123_v44, 7 }
  0x66   :  { %3311 = vmatprep.subr.bf16.mxu1 %v3310_v43  ;;  %v294_v60 = vld [vmem:[#allocation7 + $0x1f8] sm:$0xff]  ;;  %v3254_v0 = vpack.c.bf16 %v298_v59, %v292_v58  ;;  %v297_v2 = vld [vmem:[#allocation7 + $0x210] sm:$0xff]  ;;  %v299_v5 = vld [vmem:[#allocation7 + $0x220] sm:$0xff] }
  0x67   :  { %v293_v3 = vld [vmem:[#allocation7 + $0x1f0] sm:$0xff]  ;;  %v3318_v4 = vpack.c.bf16 %v300_v61, %v294_v60  ;;  %v304_v6 = vld [vmem:[#allocation7 + $0x248] sm:$0xff]  ;;  %v310_v7 = vld [vmem:[#allocation7 + $0x278] sm:$0xff]  ;;  %v3256_v10 = vpack.c.bf16 %v297_v2, %v291_v1  ;;  %7018 = vst [vmem:[#allocation18_spill] sm:$0xff] %v5406_v57 }
  0x68   :  { %3249 = vmatpush1.bf16.msra.mxu0 %v3248_v50  ;;  %v306_v8 = vld [vmem:[#allocation7 + $0x258] sm:$0xff]  ;;  %v312_v9 = vld [vmem:[#allocation7 + $0x288] sm:$0xff]  ;;  %v3320_v11 = vpack.c.bf16 %v299_v5, %v293_v3  ;;  %v3258_v12 = vpack.c.bf16 %v310_v7, %v304_v6  ;;  %v303_v13 = vld [vmem:[#allocation7 + $0x240] sm:$0xff]  ;;  %v5414_v7 = vsub.s32 1, %v5406_v57 }
  0x69   :  { %3313 = vmatpush1.bf16.msra.mxu1 %v3312_v51  ;;  %3251 = vmatprep.subr.bf16.mxu0 %v3250_v52  ;;  %v309_v14 = vld [vmem:[#allocation7 + $0x270] sm:$0xff]  ;;  %v3322_v16 = vpack.c.bf16 %v312_v9, %v306_v8  ;;  %v311_v17 = vld [vmem:[#allocation7 + $0x280] sm:$0xff]  ;;  %v316_v18 = vld [vmem:[#allocation7 + $0x2a8] sm:$0xff] }
  0x6a   :  { %3315 = vmatprep.subr.bf16.mxu1 %v3314_v56  ;;  %v305_v15 = vld [vmem:[#allocation7 + $0x250] sm:$0xff]  ;;  %v322_v19 = vld [vmem:[#allocation7 + $0x2d8] sm:$0xff]  ;;  %v324_v21 = vld [vmem:[#allocation7 + $0x2e8] sm:$0xff]  ;;  %v3260_v22 = vpack.c.bf16 %v309_v14, %v303_v13  ;;  %7019 = vst [vmem:[#allocation19_spill] sm:$0xff] %v5414_v7 }
  0x6b   :  { %v318_v20 = vld [vmem:[#allocation7 + $0x2b8] sm:$0xff]  ;;  %v3324_v23 = vpack.c.bf16 %v311_v17, %v305_v15  ;;  %v3262_v24 = vpack.c.bf16 %v322_v19, %v316_v18  ;;  %v315_v25 = vld [vmem:[#allocation7 + $0x2a0] sm:$0xff]  ;;  %v321_v26 = vld [vmem:[#allocation7 + $0x2d0] sm:$0xff] }
  0x6c   :  { %3253 = vmatpush1.bf16.msra.mxu0 %v3252_v62  ;;  %v317_v27 = vld [vmem:[#allocation7 + $0x2b0] sm:$0xff]  ;;  %v3326_v28 = vpack.c.bf16 %v324_v21, %v318_v20  ;;  %v323_v29 = vld [vmem:[#allocation7 + $0x2e0] sm:$0xff]  ;;  %v328_v30 = vld [vmem:[#allocation7 + $0x308] sm:$0xff]  ;;  %v3264_v34 = vpack.c.bf16 %v321_v26, %v315_v25 }
  0x6d   :  { %3317 = vmatpush1.bf16.msra.mxu1 %v3316_v63  ;;  %3255 = vmatprep.subr.bf16.mxu0 %v3254_v0  ;;  %v334_v31 = vld [vmem:[#allocation7 + $0x338] sm:$0xff]  ;;  %v336_v33 = vld [vmem:[#allocation7 + $0x348] sm:$0xff]  ;;  %v3328_v35 = vpack.c.bf16 %v323_v29, %v317_v27  ;;  %v327_v37 = vld [vmem:[#allocation7 + $0x300] sm:$0xff] }
  0x6e   :  { %3319 = vmatprep.subr.bf16.mxu1 %v3318_v4  ;;  %v330_v32 = vld [vmem:[#allocation7 + $0x318] sm:$0xff]  ;;  %v3266_v36 = vpack.c.bf16 %v334_v31, %v328_v30  ;;  %v333_v38 = vld [vmem:[#allocation7 + $0x330] sm:$0xff]  ;;  %v335_v41 = vld [vmem:[#allocation7 + $0x340] sm:$0xff] }
  0x6f   :  { %v329_v39 = vld [vmem:[#allocation7 + $0x310] sm:$0xff]  ;;  %v3330_v40 = vpack.c.bf16 %v336_v33, %v330_v32  ;;  %v340_v42 = vld [vmem:[#allocation7 + $0x368] sm:$0xff]  ;;  %v346_v43 = vld [vmem:[#allocation7 + $0x398] sm:$0xff]  ;;  %v3268_v47 = vpack.c.bf16 %v333_v38, %v327_v37 }
  0x70   :  { %3257 = vmatpush1.bf16.msra.mxu0 %v3256_v10  ;;  %v342_v45 = vld [vmem:[#allocation7 + $0x378] sm:$0xff]  ;;  %v348_v46 = vld [vmem:[#allocation7 + $0x3a8] sm:$0xff]  ;;  %v3332_v48 = vpack.c.bf16 %v335_v41, %v329_v39  ;;  %v3270_v49 = vpack.c.bf16 %v346_v43, %v340_v42  ;;  %v339_v50 = vld [vmem:[#allocation7 + $0x360] sm:$0xff] }
  0x71   :  { %3321 = vmatpush1.bf16.msra.mxu1 %v3320_v11  ;;  %3259 = vmatprep.subr.bf16.mxu0 %v3258_v12  ;;  %v345_v51 = vld [vmem:[#allocation7 + $0x390] sm:$0xff]  ;;  %v3334_v53 = vpack.c.bf16 %v348_v46, %v342_v45  ;;  %v347_v54 = vld [vmem:[#allocation7 + $0x3a0] sm:$0xff]  ;;  %v352_v55 = vld [vmem:[#allocation7 + $0x3c8] sm:$0xff]  ;;  %v5422_v11 = vsub.s32 0, %v5406_v57 }
  0x72   :  { %3323 = vmatprep.subr.bf16.mxu1 %v3322_v16  ;;  %v341_v52 = vld [vmem:[#allocation7 + $0x370] sm:$0xff]  ;;  %v358_v56 = vld [vmem:[#allocation7 + $0x3f8] sm:$0xff]  ;;  %v360_v59 = vld [vmem:[#allocation7 + $0x408] sm:$0xff]  ;;  %v3272_v60 = vpack.c.bf16 %v345_v51, %v339_v50 }
  0x73   :  { %v354_v58 = vld [vmem:[#allocation7 + $0x3d8] sm:$0xff]  ;;  %v351_v61 = vld [vmem:[#allocation7 + $0x3c0] sm:$0xff]  ;;  %v3336_v62 = vpack.c.bf16 %v347_v54, %v341_v52  ;;  %v3274_v63 = vpack.c.bf16 %v358_v56, %v352_v55  ;;  %v357_v0 = vld [vmem:[#allocation7 + $0x3f0] sm:$0xff]  ;;  %7020 = vst [vmem:[#allocation20_spill] sm:$0xff] %v5422_v11 }
  0x74   :  { %3261 = vmatpush1.bf16.msra.mxu0 %v3260_v22  ;;  %v353_v1 = vld [vmem:[#allocation7 + $0x3d0] sm:$0xff]  ;;  %v359_v2 = vld [vmem:[#allocation7 + $0x400] sm:$0xff]  ;;  %v3338_v3 = vpack.c.bf16 %v360_v59, %v354_v58  ;;  %v364_v4 = vld [vmem:[#allocation7 + $0x428] sm:$0xff]  ;;  %v3276_v12 = vpack.c.bf16 %v357_v0, %v351_v61 }
  0x75   :  { %3325 = vmatpush1.bf16.msra.mxu1 %v3324_v23  ;;  %3263 = vmatprep.subr.bf16.mxu0 %v3262_v24  ;;  %v370_v5 = vld [vmem:[#allocation7 + $0x458] sm:$0xff]  ;;  %v372_v8 = vld [vmem:[#allocation7 + $0x468] sm:$0xff]  ;;  %v5416_v9 = vld [vmem:[#allocation7 + $0x420] sm:$0xff]  ;;  %v3340_v16 = vpack.c.bf16 %v359_v2, %v353_v1 }
  0x76   :  { %3327 = vmatprep.subr.bf16.mxu1 %v3326_v28  ;;  %v366_v6 = vld [vmem:[#allocation7 + $0x438] sm:$0xff]  ;;  %v5418_v10 = vld [vmem:[#allocation7 + $0x450] sm:$0xff]  ;;  %v5426_v14 = vld [vmem:[#allocation7 + $0x460] sm:$0xff]  ;;  %v3278_v17 = vpack.c.bf16 %v370_v5, %v364_v4 }
  0x77   :  { %v5424_v13 = vld [vmem:[#allocation7 + $0x430] sm:$0xff]  ;;  %v5428_v15 = vld [vmem:[#allocation7 + $0x488] sm:$0xff]  ;;  %v382_v18 = vld [vmem:[#allocation7 + $0x4b8] sm:$0xff]  ;;  %v3342_v21 = vpack.c.bf16 %v372_v8, %v366_v6  ;;  %v3280_v27 = vpack.c.bf16 %v5418_v10, %v5416_v9 }
  0x78   :  { %3265 = vmatpush1.bf16.msra.mxu0 %v3264_v34  ;;  %v5430_v19 = vld [vmem:[#allocation7 + $0x498] sm:$0xff]  ;;  %v5432_v20 = vld [vmem:[#allocation7 + $0x4c8] sm:$0xff]  ;;  %v5434_v22 = vld [vmem:[#allocation7 + $0x480] sm:$0xff]  ;;  %v3282_v41 = vpack.c.bf16 %v382_v18, %v5428_v15 }
  0x79   :  { %3329 = vmatpush1.bf16.msra.mxu1 %v3328_v35  ;;  %3267 = vmatprep.subr.bf16.mxu0 %v3266_v36  ;;  %v5436_v23 = vld [vmem:[#allocation7 + $0x4b0] sm:$0xff]  ;;  %v5440_v25 = vld [vmem:[#allocation7 + $0x4c0] sm:$0xff]  ;;  %v93_v26 = vld [vmem:[%s92_s18] sm:$0x3]  ;;  %v3346_v44 = vpack.c.bf16 %v5432_v20, %v5430_v19 }
  0x7a   :  { %3331 = vmatprep.subr.bf16.mxu1 %v3330_v40  ;;  %v5438_v24 = vld [vmem:[#allocation7 + $0x490] sm:$0xff]  ;;  %v97_v28 = vld [vmem:[%s96_s19] sm:$0x3]  ;;  %v130_v31 = vrot.slane %v93_v26, %v5414_v7  ;;  %v126_v32 = vrot.slane %v93_v26, %v5422_v11  ;;  %v3344_v40 = vpack.c.bf16 %v5426_v14, %v5424_v13  ;;  %v388_v45 = vld [vmem:[#allocation7 + $0x4e8] sm:$0xff]  ;;  %v3284_v50 = vpack.c.bf16 %v5436_v23, %v5434_v22 }
  0x7b   :  { %v101_v29 = vld [vmem:[%s100_s21] sm:$0x3]  ;;  %v141_v36 = vrot.slane %v97_v28, %v5414_v7  ;;  %v137_v39 = vrot.slane %v97_v28, %v5422_v11  ;;  %v3348_v51 = vpack.c.bf16 %v5440_v25, %v5438_v24  ;;  %v389_v0 = vld [vmem:[#allocation7 + $0x4f0] sm:$0xff]  ;;  %v395_v4 = vld [vmem:[#allocation7 + $0x520] sm:$0xff] }
  0x7c   :  { %3269 = vmatpush1.bf16.msra.mxu0 %v3268_v47  ;;  %v5452_v30 = vld [vmem:[%s104_s20] sm:$0x3]  ;;  %v152_v37 = vrot.slane %v101_v29, %v5414_v7  ;;  %v400_v5 = vld [vmem:[#allocation7 + $0x548] sm:$0xff]  ;;  %v399_v19 = vld [vmem:[#allocation7 + $0x540] sm:$0xff] }
  0x7d   :  { %3333 = vmatpush1.bf16.msra.mxu1 %v3332_v48  ;;  %3271 = vmatprep.subr.bf16.mxu0 %v3270_v49  ;;  %v5458_v33 = vld [vmem:[%s108_s22] sm:$0x3]  ;;  %v163_v38 = vrot.slane %v5452_v30, %v5414_v7  ;;  %v212_v48 = vsel %vm210_vm0, %v130_v31, %v141_v36  ;;  %v148_v49 = vrot.slane %v101_v29, %v5422_v11  ;;  %v408_v10 = vld [vmem:[#allocation7 + $0x588] sm:$0xff]  ;;  %v405_v20 = vld [vmem:[#allocation7 + $0x570] sm:$0xff] }
  0x7e   :  { %3335 = vmatprep.subr.bf16.mxu1 %v3334_v53  ;;  %v5462_v34 = vld [vmem:[%s112_s23] sm:$0x3]  ;;  %v174_v43 = vrot.slane %v5458_v33, %v5414_v7  ;;  %v396_v53 = vld [vmem:[#allocation7 + $0x528] sm:$0xff]  ;;  %v215_v55 = vsel %vm213_vm1, %v212_v48, %v152_v37  ;;  %v159_v59 = vrot.slane %v5452_v30, %v5422_v11  ;;  %v170_v13 = vrot.slane %v5458_v33, %v5422_v11  ;;  %v407_v23 = vld [vmem:[#allocation7 + $0x580] sm:$0xff] }
  0x7f   :  { %v5466_v35 = vld [vmem:[%s116_s3] sm:$0x3]  ;;  %v185_v47 = vrot.slane %v5462_v34, %v5414_v7  ;;  %v218_v58 = vsel %vm216_vm2, %v215_v55, %v163_v38  ;;  %v412_v24 = vld [vmem:[#allocation7 + $0x5a8] sm:$0xff]  ;;  %v181_v26 = vrot.slane %v5462_v34, %v5422_v11  ;;  %v3292_v30 = vpack.c.bf16 %v405_v20, %v399_v19  ;;  %v411_v33 = vld [vmem:[#allocation7 + $0x5a0] sm:$0xff] }
  0x80   :  { %3273 = vmatpush1.bf16.msra.mxu0 %v3272_v60  ;;  %v5478_v42 = vld [vmem:[%s120_s2] sm:$0x3]  ;;  %v196_v54 = vrot.slane %v5466_v35, %v5414_v7  ;;  %v211_v60 = vsel %vm210_vm0, %v126_v32, %v137_v39  ;;  %v221_v1 = vsel %vm219_vm3, %v218_v58, %v174_v43  ;;  %v420_v28 = vld [vmem:[#allocation7 + $0x5e8] sm:$0xff]  ;;  %v417_v36 = vld [vmem:[#allocation7 + $0x5d0] sm:$0xff]  ;;  %v192_v38 = vrot.slane %v5466_v35, %v5422_v11 }
  0x81   :  { %3337 = vmatpush1.bf16.msra.mxu1 %v3336_v62  ;;  %3275 = vmatprep.subr.bf16.mxu0 %v3274_v63  ;;  %v394_v46 = vld [vmem:[#allocation7 + $0x518] sm:$0xff]  ;;  %v207_v56 = vrot.slane %v5478_v42, %v5414_v7  ;;  %v387_v62 = vld [vmem:[#allocation7 + $0x4e0] sm:$0xff]  ;;  %v393_v63 = vld [vmem:[#allocation7 + $0x510] sm:$0xff]  ;;  %v214_v2 = vsel %vm213_vm1, %v211_v60, %v148_v49  ;;  %v224_v8 = vsel %vm222_vm4, %v221_v1, %v185_v47 }
  0x82   :  { %3339 = vmatprep.subr.bf16.mxu1 %v3338_v3  ;;  %v390_v52 = vld [vmem:[#allocation7 + $0x4f8] sm:$0xff]  ;;  %v3286_v61 = vpack.c.bf16 %v394_v46, %v388_v45  ;;  %v3288_v14 = vpack.c.bf16 %v393_v63, %v387_v62  ;;  %v413_v37 = vld [vmem:[#allocation7 + $0x5b0] sm:$0xff]  ;;  %v419_v39 = vld [vmem:[#allocation7 + $0x5e0] sm:$0xff]  ;;  %v3296_v46 = vpack.c.bf16 %v417_v36, %v411_v33  ;;  %v203_v47 = vrot.slane %v5478_v42, %v5422_v11 }
  0x83   :  { %v3350_v3 = vpack.c.bf16 %v396_v53, %v390_v52  ;;  %v406_v6 = vld [vmem:[#allocation7 + $0x578] sm:$0xff]  ;;  %v673_v45 = vld [vmem:[#allocation9 + $0x28] sm:$0xff]  ;;  %v3360_v48 = vpack.c.bf16 %v419_v39, %v413_v37  ;;  %v668_v52 = vld [vmem:[#allocation9] sm:$0xff] }
  0x84   :  { %3277 = vmatpush1.bf16.msra.mxu0 %v3276_v12  ;;  %v402_v9 = vld [vmem:[#allocation7 + $0x558] sm:$0xff]  ;;  %v227_v12 = vsel %vm225_vm5, %v224_v8, %v196_v54  ;;  %v3290_v18 = vpack.c.bf16 %v406_v6, %v400_v5  ;;  %v672_v54 = vld [vmem:[#allocation9 + $0x20] sm:$0xff]  ;;  %v248_v55 = vld [vmem:[#allocation7 + $0x88] sm:$0xff] }
  0x85   :  { %3341 = vmatpush1.bf16.msra.mxu1 %v3340_v16  ;;  %3279 = vmatprep.subr.bf16.mxu0 %v3278_v17  ;;  %v5508_v15 = vsel %vm228_vm6, %v227_v12, %v207_v56  ;;  %v217_v16 = vsel %vm216_vm2, %v214_v2, %v159_v59  ;;  %v3352_v17 = vpack.c.bf16 %v395_v4, %v389_v0  ;;  %v418_v25 = vld [vmem:[#allocation7 + $0x5d8] sm:$0xff]  ;;  %v677_v58 = vld [vmem:[#allocation9 + $0x48] sm:$0xff]  ;;  %v247_v63 = vld [vmem:[#allocation7 + $0x80] sm:$0xff] }
  0x86   :  { %3343 = vmatprep.subr.bf16.mxu1 %v3342_v21  ;;  %v401_v21 = vld [vmem:[#allocation7 + $0x550] sm:$0xff]  ;;  %v3354_v22 = vpack.c.bf16 %v408_v10, %v402_v9  ;;  %519 = vmatprep.mubr.f32.mxu0 %v5508_v15  ;;  %v220_v29 = vsel %vm219_vm3, %v217_v16, %v170_v13  ;;  %v3294_v32 = vpack.c.bf16 %v418_v25, %v412_v24  ;;  %v242_v43 = vld [vmem:[#allocation7 + $0x58] sm:$0xff]  ;;  %v681_v59 = vld [vmem:[#allocation9 + $0x68] sm:$0xff] }
  0x87   :  { %590 = vmatprep.mubr.f32.mxu1 %v5508_v15  ;;  %v3356_v31 = vpack.c.bf16 %v407_v23, %v401_v21  ;;  %v254_v56 = vld [vmem:[#allocation7 + $0xb8] sm:$0xff]  ;;  %v253_v0 = vld [vmem:[#allocation7 + $0xb0] sm:$0xff]  ;;  %v676_v1 = vld [vmem:[#allocation9 + $0x40] sm:$0xff]  ;;  %v5530_v2 = vpack.c.bf16 %v681_v59, %v677_v58 }
  0x88   :  { %3281 = vmatpush1.bf16.msra.mxu0 %v3280_v27  ;;  %v414_v27 = vld [vmem:[#allocation7 + $0x5b8] sm:$0xff]  ;;  %v3366_v62 = vpack.c.bf16 %v254_v56, %v248_v55  ;;  %v260_v4 = vld [vmem:[#allocation7 + $0xe8] sm:$0xff]  ;;  %v3368_v9 = vpack.c.bf16 %v253_v0, %v247_v63  ;;  %v259_v13 = vld [vmem:[#allocation7 + $0xe0] sm:$0xff] }
  0x89   :  { %3345 = vmatpush1.bf16.msra.mxu1 %v3344_v40  ;;  %3283 = vmatprep.subr.bf16.mxu0 %v3282_v41  ;;  %v3358_v34 = vpack.c.bf16 %v420_v28, %v414_v27  ;;  %v223_v40 = vsel %vm222_vm4, %v220_v29, %v181_v26  ;;  %v236_v41 = vld [vmem:[#allocation7 + $0x28] sm:$0xff]  ;;  %v266_v5 = vld [vmem:[#allocation7 + $0x118] sm:$0xff]  ;;  %v684_v16 = vld [vmem:[#allocation9 + $0x80] sm:$0xff] }
  0x8a   :  { %3347 = vmatprep.subr.bf16.mxu1 %v3346_v44  ;;  %v669_v44 = vld [vmem:[#allocation9 + $0x8] sm:$0xff]  ;;  %v226_v49 = vsel %vm225_vm5, %v223_v40, %v192_v38  ;;  %v3362_v35 = vpack.c.bf16 %v242_v43, %v236_v41  ;;  %v3370_v12 = vpack.c.bf16 %v266_v5, %v260_v4  ;;  %v278_v20 = vld [vmem:[#allocation7 + $0x178] sm:$0xff]  ;;  %v271_v26 = vld [vmem:[#allocation7 + $0x140] sm:$0xff] }
  0x8b   :  { %v5522_v53 = vpack.c.bf16 %v673_v45, %v669_v44  ;;  %v5525_v42 = vsel %vm228_vm6, %v226_v49, %v203_v47  ;;  %v685_v6 = vld [vmem:[#allocation9 + $0x88] sm:$0xff]  ;;  %v277_v27 = vld [vmem:[#allocation7 + $0x170] sm:$0xff]  ;;  %v692_v28 = vld [vmem:[#allocation9 + $0xc0] sm:$0xff] }
  0x8c   :  { %3285 = vmatpush1.bf16.msra.mxu0 %v3284_v50  ;;  %v235_v50 = vld [vmem:[#allocation7 + $0x20] sm:$0xff]  ;;  %v689_v8 = vld [vmem:[#allocation9 + $0xa8] sm:$0xff]  ;;  %v3376_v36 = vpack.c.bf16 %v277_v27, %v271_v26  ;;  %v289_v39 = vld [vmem:[#allocation7 + $0x1d0] sm:$0xff] }
  0x8d   :  { %3349 = vmatpush1.bf16.msra.mxu1 %v3348_v51  ;;  %3287 = vmatprep.subr.bf16.mxu0 %v3286_v61  ;;  %v241_v51 = vld [vmem:[#allocation7 + $0x50] sm:$0xff]  ;;  %7021 = vst [vmem:[#allocation21_spill] sm:$0xff] %v5522_v53  ;;  %v5527_v61 = vpack.c.bf16 %v672_v54, %v668_v52  ;;  %v272_v19 = vld [vmem:[#allocation7 + $0x148] sm:$0xff]  ;;  %v700_v40 = vld [vmem:[#allocation9 + $0x100] sm:$0xff] }
  0x8e   :  { %3351 = vmatprep.subr.bf16.mxu1 %v3350_v3  ;;  %v3364_v60 = vpack.c.bf16 %v241_v51, %v235_v50  ;;  %v680_v3 = vld [vmem:[#allocation9 + $0x60] sm:$0xff]  ;;  %v693_v21 = vld [vmem:[#allocation9 + $0xc8] sm:$0xff]  ;;  %v3374_v25 = vpack.c.bf16 %v278_v20, %v272_v19  ;;  %v302_v45 = vld [vmem:[#allocation7 + $0x238] sm:$0xff] }
  0x8f   :  { %v5535_v10 = vpack.c.bf16 %v680_v3, %v676_v1  ;;  %v705_v33 = vld [vmem:[#allocation9 + $0x128] sm:$0xff]  ;;  %v704_v43 = vld [vmem:[#allocation9 + $0x120] sm:$0xff]  ;;  %v301_v51 = vld [vmem:[#allocation7 + $0x230] sm:$0xff] }
  0x90   :  { %3289 = vmatpush1.bf16.msra.mxu0 %v3288_v14  ;;  %v265_v14 = vld [vmem:[#allocation7 + $0x110] sm:$0xff]  ;;  %v296_v44 = vld [vmem:[#allocation7 + $0x208] sm:$0xff]  ;;  %v5554_v49 = vpack.c.bf16 %v704_v43, %v700_v40  ;;  %v295_v50 = vld [vmem:[#allocation7 + $0x200] sm:$0xff] }
  0x91   :  { %3353 = vmatpush1.bf16.msra.mxu1 %v3352_v17  ;;  %3291 = vmatprep.subr.bf16.mxu0 %v3290_v18  ;;  %v5538_v17 = vpack.c.bf16 %v689_v8, %v685_v6  ;;  %v688_v18 = vld [vmem:[#allocation9 + $0xa0] sm:$0xff]  ;;  %v3372_v23 = vpack.c.bf16 %v265_v14, %v259_v13  ;;  %v713_v47 = vld [vmem:[#allocation9 + $0x168] sm:$0xff]  ;;  %v314_v58 = vld [vmem:[#allocation7 + $0x298] sm:$0xff] }
  0x92   :  { %3355 = vmatprep.subr.bf16.mxu1 %v3354_v22  ;;  %v697_v22 = vld [vmem:[#allocation9 + $0xe8] sm:$0xff]  ;;  %v5542_v24 = vpack.c.bf16 %v688_v18, %v684_v16  ;;  %v708_v52 = vld [vmem:[#allocation9 + $0x140] sm:$0xff]  ;;  %v313_v3 = vld [vmem:[#allocation7 + $0x290] sm:$0xff] }
  0x93   :  { %v5545_v29 = vpack.c.bf16 %v697_v22, %v693_v21  ;;  %v712_v55 = vld [vmem:[#allocation9 + $0x160] sm:$0xff]  ;;  %v308_v56 = vld [vmem:[#allocation7 + $0x268] sm:$0xff]  ;;  %v5568_v16 = vld [vmem:[%s6812_s8] sm:$0x3] }
  0x94   :  { %3293 = vmatpush1.bf16.msra.mxu0 %v3292_v30  ;;  %v696_v30 = vld [vmem:[#allocation9 + $0xe0] sm:$0xff]  ;;  %v717_v59 = vld [vmem:[#allocation9 + $0x188] sm:$0xff]  ;;  %v5560_v63 = vpack.c.bf16 %v712_v55, %v708_v52  ;;  %v3386_v0 = vpack.c.bf16 %v314_v58, %v308_v56  ;;  %v325_v21 = vld [vmem:[#allocation7 + $0x2f0] sm:$0xff] }
  0x95   :  { %3357 = vmatpush1.bf16.msra.mxu1 %v3356_v31  ;;  %3295 = vmatprep.subr.bf16.mxu0 %v3294_v32  ;;  %v284_v31 = vld [vmem:[#allocation7 + $0x1a8] sm:$0xff]  ;;  %v5548_v37 = vpack.c.bf16 %v696_v30, %v692_v28  ;;  %v307_v1 = vld [vmem:[#allocation7 + $0x260] sm:$0xff]  ;;  %v338_v28 = vld [vmem:[#allocation7 + $0x358] sm:$0xff] }
  0x96   :  { %3359 = vmatprep.subr.bf16.mxu1 %v3358_v34  ;;  %v701_v32 = vld [vmem:[#allocation9 + $0x108] sm:$0xff]  ;;  %v283_v34 = vld [vmem:[#allocation7 + $0x1a0] sm:$0xff]  ;;  %v3388_v14 = vpack.c.bf16 %v313_v3, %v307_v1  ;;  %v719_v57 = vld [vmem:[#allocation9 + $0x198] sm:$0xff] }
  0x97   :  { %v5551_v41 = vpack.c.bf16 %v705_v33, %v701_v32  ;;  %v716_v4 = vld [vmem:[#allocation9 + $0x180] sm:$0xff]  ;;  %v320_v8 = vld [vmem:[#allocation7 + $0x2c8] sm:$0xff] }
  0x98   :  { %3297 = vmatpush1.bf16.msra.mxu0 %v3296_v46  ;;  %v709_v46 = vld [vmem:[#allocation9 + $0x148] sm:$0xff]  ;;  %v720_v6 = vld [vmem:[#allocation9 + $0x1a0] sm:$0xff] }
  0x99   :  { %3361 = vmatpush1.bf16.msra.mxu1 %v3360_v48  ;;  %3363 = vmatprep.subr.bf16.mxu0 %v3362_v35  ;;  %v3380_v48 = vpack.c.bf16 %v289_v39, %v283_v34  ;;  %v3382_v35 = vpack.c.bf16 %v302_v45, %v296_v44  ;;  %v5557_v54 = vpack.c.bf16 %v713_v47, %v709_v46  ;;  %v729_v13 = vld [vmem:[#allocation9 + $0x1e8] sm:$0xff]  ;;  %v319_v20 = vld [vmem:[#allocation7 + $0x2c0] sm:$0xff]  ;;  %v350_v44 = vld [vmem:[#allocation7 + $0x3b8] sm:$0xff] }
  0x9a   :  { %3427 = vmatprep.subr.bf16.mxu1 %v5522_v53  ;;  %v5571_v18 = vpack.c.bf16 %v720_v6, %v716_v4  ;;  %v724_v22 = vld [vmem:[#allocation9 + $0x1c0] sm:$0xff]  ;;  %v332_v27 = vld [vmem:[#allocation7 + $0x328] sm:$0xff]  ;;  %v361_v6 = vld [vmem:[#allocation7 + $0x410] sm:$0xff] }
  0x9b   :  { %520 = vmatmul.mubr.f32.vlgmr.msra.gmra.mrb[0].mxu0 %v5525_v42  ;;  %v728_v26 = vld [vmem:[#allocation9 + $0x1e0] sm:$0xff]  ;;  %v733_v30 = vld [vmem:[#allocation9 + $0x208] sm:$0xff]  ;;  %v3394_v33 = vpack.c.bf16 %v338_v28, %v332_v27  ;;  %v373_v28 = vld [vmem:[#allocation7 + $0x470] sm:$0xff] }
  0x9c   :  { %591 = vmatmul.mubr.f32.vlgmr.msra.gmra.mrb[0].mxu1 %v5525_v42  ;;  %3365 = vmatpush1.bf16.msra.mxu0 %v3364_v60  ;;  %v721_v60 = vld [vmem:[#allocation9 + $0x1a8] sm:$0xff]  ;;  %v5582_v32 = vpack.c.bf16 %v728_v26, %v724_v22  ;;  %v732_v34 = vld [vmem:[#allocation9 + $0x200] sm:$0xff] }
  0x9d   :  { %3429 = vmatpush1.bf16.msra.mxu1 %v5527_v61  ;;  %3367 = vmatprep.subr.bf16.mxu0 %v3366_v62  ;;  %v3384_v62 = vpack.c.bf16 %v301_v51, %v295_v50  ;;  %v5563_v5 = vpack.c.bf16 %v721_v60, %v717_v59  ;;  %v736_v40 = vld [vmem:[#allocation9 + $0x220] sm:$0xff]  ;;  %v344_v43 = vld [vmem:[#allocation7 + $0x388] sm:$0xff]  ;;  %v349_v51 = vld [vmem:[#allocation7 + $0x3b0] sm:$0xff] }
  0x9e   :  { %3431 = vmatprep.subr.bf16.mxu1 %v5530_v2  ;;  %661 = vmatprep.mubr.f32.mxu0 %v5508_v15  ;;  %v290_v15 = vld [vmem:[#allocation7 + $0x1d8] sm:$0xff]  ;;  %7023 = vst [vmem:[#allocation23_spill] sm:$0xff] %v5582_v32  ;;  %v741_v45 = vld [vmem:[#allocation9 + $0x248] sm:$0xff]  ;;  %v343_v50 = vld [vmem:[#allocation7 + $0x380] sm:$0xff] }
  0x9f   :  { %v3378_v38 = vpack.c.bf16 %v290_v15, %v284_v31  ;;  %v737_v31 = vld [vmem:[#allocation9 + $0x228] sm:$0xff]  ;;  %v3392_v15 = vpack.c.bf16 %v325_v21, %v319_v20  ;;  %v740_v52 = vld [vmem:[#allocation9 + $0x240] sm:$0xff]  ;;  %v362_v59 = vld [vmem:[#allocation7 + $0x418] sm:$0xff] }
  0xa0   :  { %3369 = vmatpush1.bf16.msra.mxu0 %v3368_v9  ;;  %v326_v9 = vld [vmem:[#allocation7 + $0x2f8] sm:$0xff]  ;;  %v5585_v39 = vpack.c.bf16 %v737_v31, %v733_v30  ;;  %v745_v46 = vld [vmem:[#allocation9 + $0x268] sm:$0xff]  ;;  %v744_v56 = vld [vmem:[#allocation9 + $0x260] sm:$0xff] }
  0xa1   :  { %3433 = vmatpush1.bf16.msra.mxu1 %v5535_v10  ;;  %3371 = vmatprep.subr.bf16.mxu0 %v3370_v12  ;;  %v725_v12 = vld [vmem:[#allocation9 + $0x1c8] sm:$0xff]  ;;  %v3390_v19 = vpack.c.bf16 %v326_v9, %v320_v8  ;;  %v5591_v55 = vpack.c.bf16 %v745_v46, %v741_v45  ;;  %v5594_v1 = vpack.c.bf16 %v744_v56, %v740_v52  ;;  %v355_v4 = vld [vmem:[#allocation7 + $0x3e0] sm:$0xff]  ;;  %v385_v46 = vld [vmem:[#allocation7 + $0x4d0] sm:$0xff] }
  0xa2   :  { %3435 = vmatprep.subr.bf16.mxu1 %v5538_v17  ;;  %v356_v58 = vld [vmem:[#allocation7 + $0x3e8] sm:$0xff]  ;;  %v748_v8 = vld [vmem:[#allocation9 + $0x280] sm:$0xff]  ;;  %v3404_v21 = vpack.c.bf16 %v361_v6, %v355_v4  ;;  %v398_v52 = vld [vmem:[#allocation7 + $0x538] sm:$0xff] }
  0xa3   :  { %7025 = vst [vmem:[#allocation25_spill] sm:$0xff] %v5591_v55  ;;  %v749_v60 = vld [vmem:[#allocation9 + $0x288] sm:$0xff]  ;;  %7026 = vst [vmem:[#allocation26_spill] sm:$0xff] %v5594_v1  ;;  %v3402_v3 = vpack.c.bf16 %v362_v59, %v356_v58  ;;  %v367_v27 = vld [vmem:[#allocation7 + $0x440] sm:$0xff] }
  0xa4   :  { %3373 = vmatpush1.bf16.msra.mxu0 %v3372_v23  ;;  %v5575_v23 = vrot.slane %v5568_v16, %v5414_v7  ;;  %v761_v20 = vld [vmem:[#allocation9 + $0x2e8] sm:$0xff]  ;;  %v756_v30 = vld [vmem:[#allocation9 + $0x2c0] sm:$0xff]  ;;  %v723_v7 = vld [vmem:[#allocation9 + $0x1b8] sm:$0xff] }
  0xa5   :  { %3437 = vmatpush1.bf16.msra.mxu1 %v5542_v24  ;;  %3375 = vmatprep.subr.bf16.mxu0 %v3374_v25  ;;  %v5578_v25 = vpack.c.bf16 %v729_v13, %v725_v12  ;;  %v752_v12 = vld [vmem:[#allocation9 + $0x2a0] sm:$0xff]  ;;  %v368_v13 = vld [vmem:[#allocation7 + $0x448] sm:$0xff] }
  0xa6   :  { %3439 = vmatprep.subr.bf16.mxu1 %v5545_v29  ;;  %7022 = vst [vmem:[#allocation22_spill] sm:$0xff] %v5575_v23  ;;  %959 = vmatprep.mubr.f32.mxu1 %v5575_v23  ;;  %v5600_v22 = vpack.c.bf16 %v752_v12, %v748_v8  ;;  %v379_v45 = vld [vmem:[#allocation7 + $0x4a0] sm:$0xff]  ;;  %v773_v56 = vld [vmem:[#allocation9 + $0x348] sm:$0xff] }
  0xa7   :  { %v777_v58 = vld [vmem:[#allocation9 + $0x368] sm:$0xff]  ;;  %v3412_v59 = vpack.c.bf16 %v385_v46, %v379_v45  ;;  %v772_v4 = vld [vmem:[#allocation9 + $0x340] sm:$0xff] }
  0xa8   :  { %3377 = vmatpush1.bf16.msra.mxu0 %v3376_v36  ;;  %v331_v36 = vld [vmem:[#allocation7 + $0x320] sm:$0xff]  ;;  %7028 = vst [vmem:[#allocation28_spill] sm:$0xff] %v5600_v22  ;;  %v5615_v6 = vpack.c.bf16 %v777_v58, %v773_v56  ;;  %v404_v12 = vld [vmem:[#allocation7 + $0x568] sm:$0xff]  ;;  %v671_v58 = vld [vmem:[#allocation9 + $0x18] sm:$0xff] }
  0xa9   :  { %3441 = vmatpush1.bf16.msra.mxu1 %v5548_v37  ;;  %3379 = vmatprep.subr.bf16.mxu0 %v3378_v38  ;;  %v337_v38 = vld [vmem:[#allocation7 + $0x350] sm:$0xff]  ;;  %v776_v8 = vld [vmem:[#allocation9 + $0x360] sm:$0xff] }
  0xaa   :  { %3443 = vmatprep.subr.bf16.mxu1 %v5551_v41  ;;  %v3396_v47 = vpack.c.bf16 %v337_v38, %v331_v36  ;;  %v386_v36 = vld [vmem:[#allocation7 + $0x4d8] sm:$0xff]  ;;  %v765_v38 = vld [vmem:[#allocation9 + $0x308] sm:$0xff]  ;;  %7033 = vst [vmem:[#allocation33_spill] sm:$0xff] %v5615_v6  ;;  %v792_v56 = vld [vmem:[#allocation9 + $0x3e0] sm:$0xff] }
  0xac   :  { %3381 = vmatpush1.bf16.msra.mxu0 %v3380_v48  ;;  %v5588_v48 = vpack.c.bf16 %v736_v40, %v732_v34  ;;  %v769_v34 = vld [vmem:[#allocation9 + $0x328] sm:$0xff]  ;;  %v3408_v40 = vpack.c.bf16 %v373_v28, %v367_v27  ;;  %v403_v27 = vld [vmem:[#allocation7 + $0x560] sm:$0xff]  ;;  %v409_v28 = vld [vmem:[#allocation7 + $0x590] sm:$0xff] }
  0xad   :  { %3445 = vmatpush1.bf16.msra.mxu1 %v5554_v49  ;;  %3383 = vmatprep.subr.bf16.mxu0 %v3382_v35  ;;  %v3398_v35 = vpack.c.bf16 %v350_v44, %v344_v43 }
  0xae   :  { %3447 = vmatprep.subr.bf16.mxu1 %v5557_v54  ;;  %7024 = vst [vmem:[#allocation24_spill] sm:$0xff] %v5588_v48 }
  0xb0   :  { %3385 = vmatpush1.bf16.msra.mxu0 %v3384_v62  ;;  %v753_v62 = vld [vmem:[#allocation9 + $0x2a8] sm:$0xff] }
  0xb1   :  { %3449 = vmatpush1.bf16.msra.mxu1 %v5560_v63  ;;  %3387 = vmatprep.subr.bf16.mxu0 %v3386_v0  ;;  %v3400_v0 = vpack.c.bf16 %v349_v51, %v343_v50  ;;  %v5597_v9 = vpack.c.bf16 %v753_v62, %v749_v60  ;;  %v768_v50 = vld [vmem:[#allocation9 + $0x320] sm:$0xff]  ;;  %v392_v51 = vld [vmem:[#allocation7 + $0x508] sm:$0xff] }
  0xb2   :  { %3451 = vmatprep.subr.bf16.mxu1 %v5563_v5  ;;  %v3414_v62 = vpack.c.bf16 %v398_v52, %v392_v51  ;;  %v788_v51 = vld [vmem:[#allocation9 + $0x3c0] sm:$0xff] }
  0xb3   :  { %7027 = vst [vmem:[#allocation27_spill] sm:$0xff] %v5597_v9 }
  0xb4   :  { %3389 = vmatpush1.bf16.msra.mxu0 %v3388_v14  ;;  %v374_v14 = vld [vmem:[#allocation7 + $0x478] sm:$0xff] }
  0xb5   :  { %3453 = vmatpush1.bf16.msra.mxu1 %v5571_v18  ;;  %3391 = vmatprep.subr.bf16.mxu0 %v3390_v19  ;;  %v757_v19 = vld [vmem:[#allocation9 + $0x2c8] sm:$0xff]  ;;  %v3406_v26 = vpack.c.bf16 %v374_v14, %v368_v13  ;;  %v410_v13 = vld [vmem:[#allocation7 + $0x598] sm:$0xff] }
  0xb6   :  { %3455 = vmatprep.subr.bf16.mxu1 %v5578_v25  ;;  %v5603_v31 = vpack.c.bf16 %v761_v20, %v757_v19  ;;  %v781_v14 = vld [vmem:[#allocation9 + $0x388] sm:$0xff] }
  0xb7   :  { %v785_v19 = vld [vmem:[#allocation9 + $0x3a8] sm:$0xff] }
  0xb8   :  { %3393 = vmatpush1.bf16.msra.mxu0 %v3392_v15  ;;  %7029 = vst [vmem:[#allocation29_spill] sm:$0xff] %v5603_v31  ;;  %v760_v15 = vld [vmem:[#allocation9 + $0x2e0] sm:$0xff] }
  0xb9   :  { %3457 = vmatpush1.bf16.msra.mxu1 %v5582_v32  ;;  %3395 = vmatprep.subr.bf16.mxu0 %v3394_v33  ;;  %v380_v33 = vld [vmem:[#allocation7 + $0x4a8] sm:$0xff]  ;;  %v5606_v43 = vpack.c.bf16 %v760_v15, %v756_v30  ;;  %v780_v30 = vld [vmem:[#allocation9 + $0x380] sm:$0xff]  ;;  %v5621_v15 = vpack.c.bf16 %v785_v19, %v781_v14 }
  0xba   :  { %3459 = vmatprep.subr.bf16.mxu1 %v5585_v39  ;;  %v3410_v44 = vpack.c.bf16 %v386_v36, %v380_v33  ;;  %v784_v33 = vld [vmem:[#allocation9 + $0x3a0] sm:$0xff]  ;;  %v416_v36 = vld [vmem:[#allocation7 + $0x5c8] sm:$0xff] }
  0xbb   :  { %7030 = vst [vmem:[#allocation30_spill] sm:$0xff] %v5606_v43  ;;  %7035 = vst [vmem:[#allocation35_spill] sm:$0xff] %v5621_v15  ;;  %v5624_v45 = vpack.c.bf16 %v784_v33, %v780_v30  ;;  %v796_v14 = vld [vmem:[#allocation10] sm:$0xff]  ;;  %v803_v30 = vld [vmem:[#allocation10 + $0x38] sm:$0xff]  ;;  %v5639_v33 = vrot.slane %v5568_v16, %v5422_v11 }
  0xbc   :  { %3397 = vmatpush1.bf16.msra.mxu0 %v3396_v47  ;;  %v764_v47 = vld [vmem:[#allocation9 + $0x300] sm:$0xff]  ;;  %v687_v16 = vld [vmem:[#allocation9 + $0x98] sm:$0xff] }
  0xbd   :  { %3461 = vmatpush1.bf16.msra.mxu1 %v5588_v48  ;;  %3399 = vmatprep.subr.bf16.mxu0 %v3398_v35  ;;  %v5609_v35 = vpack.c.bf16 %v769_v34, %v765_v38  ;;  %v5612_v60 = vpack.c.bf16 %v768_v50, %v764_v47  ;;  %v422_v38 = vld [vmem:[#allocation7 + $0x5f8] sm:$0xff]  ;;  %v789_v34 = vld [vmem:[#allocation9 + $0x3c8] sm:$0xff]  ;;  %7036 = vst [vmem:[#allocation36_spill] sm:$0xff] %v5624_v45  ;;  %v415_v47 = vld [vmem:[#allocation7 + $0x5c0] sm:$0xff] }
  0xbe   :  { %3463 = vmatprep.subr.bf16.mxu1 %v5591_v55  ;;  %v3422_v46 = vpack.c.bf16 %v422_v38, %v416_v36  ;;  %v421_v50 = vld [vmem:[#allocation7 + $0x5f0] sm:$0xff]  ;;  %v727_v11 = vld [vmem:[#allocation9 + $0x1d8] sm:$0xff] }
  0xbf   :  { %7031 = vst [vmem:[#allocation31_spill] sm:$0xff] %v5609_v35  ;;  %7032 = vst [vmem:[#allocation32_spill] sm:$0xff] %v5612_v60 }
  0xc0   :  { %3401 = vmatpush1.bf16.msra.mxu0 %v3400_v0  ;;  %v391_v0 = vld [vmem:[#allocation7 + $0x500] sm:$0xff] }
  0xc1   :  { %3465 = vmatpush1.bf16.msra.mxu1 %v5594_v1  ;;  %3403 = vmatprep.subr.bf16.mxu0 %v3402_v3  ;;  %v397_v3 = vld [vmem:[#allocation7 + $0x530] sm:$0xff] }
  0xc2   :  { %3467 = vmatprep.subr.bf16.mxu1 %v5597_v9  ;;  %v3416_v20 = vpack.c.bf16 %v397_v3, %v391_v0  ;;  %v799_v0 = vld [vmem:[#allocation10 + $0x18] sm:$0xff]  ;;  %v3424_v3 = vpack.c.bf16 %v421_v50, %v415_v47  ;;  %v802_v50 = vld [vmem:[#allocation10 + $0x30] sm:$0xff] }
  0xc4   :  { %3405 = vmatpush1.bf16.msra.mxu0 %v3404_v21  ;;  %v5618_v21 = vpack.c.bf16 %v776_v8, %v772_v4  ;;  %v5630_v4 = vpack.c.bf16 %v792_v56, %v788_v51  ;;  %v691_v51 = vld [vmem:[#allocation9 + $0xb8] sm:$0xff]  ;;  %v805_v56 = vld [vmem:[#allocation10 + $0x48] sm:$0xff] }
  0xc5   :  { %3469 = vmatpush1.bf16.msra.mxu1 %v5600_v22  ;;  %3407 = vmatprep.subr.bf16.mxu0 %v3406_v26  ;;  %v3418_v26 = vpack.c.bf16 %v410_v13, %v404_v12  ;;  %v670_v12 = vld [vmem:[#allocation9 + $0x10] sm:$0xff]  ;;  %v775_v22 = vld [vmem:[#allocation9 + $0x358] sm:$0xff] }
  0xc6   :  { %3471 = vmatprep.subr.bf16.mxu1 %v5603_v31  ;;  %7034 = vst [vmem:[#allocation34_spill] sm:$0xff] %v5618_v21  ;;  %7038 = vst [vmem:[#allocation38_spill] sm:$0xff] %v5630_v4  ;;  %v674_v13 = vld [vmem:[#allocation9 + $0x30] sm:$0xff]  ;;  %v771_v31 = vld [vmem:[#allocation9 + $0x338] sm:$0xff] }
  0xc7   :  { %v5641_v36 = vpack.c.bf16 %v674_v13, %v670_v12  ;;  %v690_v12 = vld [vmem:[#allocation9 + $0xb0] sm:$0xff]  ;;  %v804_v13 = vld [vmem:[#allocation10 + $0x40] sm:$0xff] }
  0xc8   :  { %3409 = vmatpush1.bf16.msra.mxu0 %v3408_v40  ;;  %v793_v40 = vld [vmem:[#allocation9 + $0x3e8] sm:$0xff] }
  0xc9   :  { %3473 = vmatpush1.bf16.msra.mxu1 %v5606_v43  ;;  %3411 = vmatprep.subr.bf16.mxu0 %v3410_v44  ;;  %v3420_v44 = vpack.c.bf16 %v409_v28, %v403_v27  ;;  %v5627_v52 = vpack.c.bf16 %v793_v40, %v789_v34  ;;  %v683_v27 = vld [vmem:[#allocation9 + $0x78] sm:$0xff]  ;;  %v801_v28 = vld [vmem:[#allocation10 + $0x28] sm:$0xff]  ;;  %7041 = vst [vmem:[#allocation41_spill] sm:$0xff] %v5641_v36  ;;  %v678_v40 = vld [vmem:[#allocation9 + $0x50] sm:$0xff] }
  0xca   :  { %3475 = vmatprep.subr.bf16.mxu1 %v5609_v35  ;;  %v5650_v47 = vpack.c.bf16 %v803_v30, %v801_v28  ;;  %v811_v28 = vld [vmem:[#allocation10 + $0x78] sm:$0xff] }
  0xcb   :  { %7037 = vst [vmem:[#allocation37_spill] sm:$0xff] %v5627_v52  ;;  %v763_v35 = vld [vmem:[#allocation9 + $0x2f8] sm:$0xff] }
  0xcc   :  { %3413 = vmatpush1.bf16.msra.mxu0 %v3412_v59  ;;  %v675_v59 = vld [vmem:[#allocation9 + $0x38] sm:$0xff]  ;;  %7044 = vst [vmem:[#allocation44_spill] sm:$0xff] %v5650_v47 }
  0xcd   :  { %3477 = vmatpush1.bf16.msra.mxu1 %v5612_v60  ;;  %3415 = vmatprep.subr.bf16.mxu0 %v3414_v62  ;;  %v797_v62 = vld [vmem:[#allocation10 + $0x8] sm:$0xff]  ;;  %v5632_v8 = vpack.c.bf16 %v675_v59, %v671_v58  ;;  %v807_v58 = vld [vmem:[#allocation10 + $0x58] sm:$0xff] }
  0xce   :  { %3479 = vmatprep.subr.bf16.mxu1 %v5615_v6  ;;  %v5635_v19 = vpack.c.bf16 %v799_v0, %v797_v62  ;;  %v5661_v0 = vpack.c.bf16 %v691_v51, %v687_v16  ;;  %v808_v16 = vld [vmem:[#allocation10 + $0x60] sm:$0xff]  ;;  %v755_v6 = vld [vmem:[#allocation9 + $0x2b8] sm:$0xff] }
  0xcf   :  { %7039 = vst [vmem:[#allocation39_spill] sm:$0xff] %v5632_v8  ;;  %v759_v60 = vld [vmem:[#allocation9 + $0x2d8] sm:$0xff] }
  0xd0   :  { %3417 = vmatpush1.bf16.msra.mxu0 %v3416_v20  ;;  %7040 = vst [vmem:[#allocation40_spill] sm:$0xff] %v5635_v19  ;;  %v798_v20 = vld [vmem:[#allocation10 + $0x10] sm:$0xff]  ;;  %7047 = vst [vmem:[#allocation47_spill] sm:$0xff] %v5661_v0  ;;  %v767_v43 = vld [vmem:[#allocation9 + $0x318] sm:$0xff] }
  0xd1   :  { %3481 = vmatpush1.bf16.msra.mxu1 %v5618_v21  ;;  %3419 = vmatprep.subr.bf16.mxu0 %v3418_v26  ;;  %v679_v26 = vld [vmem:[#allocation9 + $0x58] sm:$0xff]  ;;  %v5645_v38 = vpack.c.bf16 %v798_v20, %v796_v14  ;;  %v806_v14 = vld [vmem:[#allocation10 + $0x50] sm:$0xff] }
  0xd2   :  { %3483 = vmatprep.subr.bf16.mxu1 %v5621_v15  ;;  %v5647_v34 = vpack.c.bf16 %v683_v27, %v679_v26  ;;  %v695_v20 = vld [vmem:[#allocation9 + $0xd8] sm:$0xff]  ;;  %v809_v27 = vld [vmem:[#allocation10 + $0x68] sm:$0xff] }
  0xd3   :  { %7042 = vst [vmem:[#allocation42_spill] sm:$0xff] %v5645_v38  ;;  %v699_v26 = vld [vmem:[#allocation9 + $0xf8] sm:$0xff]  ;;  %v5678_v51 = vpack.c.bf16 %v811_v28, %v809_v27  ;;  %v812_v27 = vld [vmem:[#allocation10 + $0x80] sm:$0xff] }
  0xd4   :  { %3421 = vmatpush1.bf16.msra.mxu0 %v3420_v44  ;;  %7043 = vst [vmem:[#allocation43_spill] sm:$0xff] %v5647_v34  ;;  %v682_v44 = vld [vmem:[#allocation9 + $0x70] sm:$0xff]  ;;  %v747_v15 = vld [vmem:[#allocation9 + $0x278] sm:$0xff] }
  0xd5   :  { %3485 = vmatpush1.bf16.msra.mxu1 %v5624_v45  ;;  %3423 = vmatprep.subr.bf16.mxu0 %v3422_v46  ;;  %v800_v46 = vld [vmem:[#allocation10 + $0x20] sm:$0xff]  ;;  %v5655_v59 = vpack.c.bf16 %v682_v44, %v678_v40  ;;  %v5673_v40 = vpack.c.bf16 %v806_v14, %v804_v13  ;;  %v5675_v44 = vpack.c.bf16 %v699_v26, %v695_v20  ;;  %v702_v20 = vld [vmem:[#allocation9 + $0x110] sm:$0xff]  ;;  %v743_v45 = vld [vmem:[#allocation9 + $0x258] sm:$0xff] }
  0xd6   :  { %3487 = vmatprep.subr.bf16.mxu1 %v5627_v52  ;;  %v5659_v62 = vpack.c.bf16 %v802_v50, %v800_v46  ;;  %v694_v46 = vld [vmem:[#allocation9 + $0xd0] sm:$0xff]  ;;  %7052 = vst [vmem:[#allocation52_spill] sm:$0xff] %v5678_v51  ;;  %v739_v52 = vld [vmem:[#allocation9 + $0x238] sm:$0xff] }
  0xd7   :  { %7045 = vst [vmem:[#allocation45_spill] sm:$0xff] %v5655_v59  ;;  %7050 = vst [vmem:[#allocation50_spill] sm:$0xff] %v5673_v40  ;;  %v698_v50 = vld [vmem:[#allocation9 + $0xf0] sm:$0xff]  ;;  %v751_v21 = vld [vmem:[#allocation9 + $0x298] sm:$0xff] }
  0xd8   :  { %3425 = vmatpush1.bf16.msra.mxu0 %v3424_v3  ;;  %7046 = vst [vmem:[#allocation46_spill] sm:$0xff] %v5659_v62  ;;  %v686_v3 = vld [vmem:[#allocation9 + $0x90] sm:$0xff]  ;;  %7051 = vst [vmem:[#allocation51_spill] sm:$0xff] %v5675_v44 }
  0xd9   :  { %3489 = vmatpush1.bf16.msra.mxu1 %v5630_v4  ;;  %3491 = vmatprep.subr.bf16.mxu0 %v5632_v8  ;;  %v5669_v30 = vpack.c.bf16 %v690_v12, %v686_v3  ;;  %v813_v3 = vld [vmem:[#allocation10 + $0x88] sm:$0xff]  ;;  %v815_v12 = vld [vmem:[#allocation10 + $0x98] sm:$0xff]  ;;  %v706_v26 = vld [vmem:[#allocation9 + $0x130] sm:$0xff] }
  0xda   :  { %3555 = vmatprep.subr.bf16.mxu1 %v5635_v19  ;;  %v5690_v28 = vpack.c.bf16 %v815_v12, %v813_v3  ;;  %v816_v3 = vld [vmem:[#allocation10 + $0xa0] sm:$0xff]  ;;  %v731_v19 = vld [vmem:[#allocation9 + $0x1f8] sm:$0xff] }
  0xdb   :  { %662 = vmatmul.mubr.f32.vlgmr.msra.gmra.mrb[2].mxu0 %v5525_v42  ;;  %v5664_v42 = vpack.c.bf16 %v807_v58, %v805_v56  ;;  %7049 = vst [vmem:[#allocation49_spill] sm:$0xff] %v5669_v30  ;;  %v810_v56 = vld [vmem:[#allocation10 + $0x70] sm:$0xff]  ;;  %v703_v58 = vld [vmem:[#allocation9 + $0x118] sm:$0xff] }
  0xdc   :  { %960 = vmatmul.mubr.f32.vlgmr.msra.gmra.mrb[2].mxu1 %v5639_v33  ;;  %3493 = vmatpush1.bf16.msra.mxu0 %v5641_v36  ;;  %v5685_v13 = vpack.c.bf16 %v810_v56, %v808_v16  ;;  %7056 = vst [vmem:[#allocation56_spill] sm:$0xff] %v5690_v28  ;;  %v710_v56 = vld [vmem:[#allocation9 + $0x150] sm:$0xff]  ;;  %v735_v4 = vld [vmem:[#allocation9 + $0x218] sm:$0xff] }
  0xdd   :  { %3557 = vmatpush1.bf16.msra.mxu1 %v5645_v38  ;;  %3495 = vmatprep.subr.bf16.mxu0 %v5647_v34  ;;  %7048 = vst [vmem:[#allocation48_spill] sm:$0xff] %v5664_v42  ;;  %v711_v38 = vld [vmem:[#allocation9 + $0x158] sm:$0xff] }
  0xde   :  { %3559 = vmatprep.subr.bf16.mxu1 %v5650_v47  ;;  %1030 = vmatprep.mubr.f32.mxu0 %v5575_v23  ;;  %v707_v47 = vld [vmem:[#allocation9 + $0x138] sm:$0xff]  ;;  %7054 = vst [vmem:[#allocation54_spill] sm:$0xff] %v5685_v13 }
  0xdf   :  { %1140 = vmatprep.mubr.f32.mxu1 %v5575_v23  ;;  %v5687_v14 = vpack.c.bf16 %v707_v47, %v703_v58  ;;  %v715_v23 = vld [vmem:[#allocation9 + $0x178] sm:$0xff]  ;;  %v714_v58 = vld [vmem:[#allocation9 + $0x170] sm:$0xff] }
  0xe0   :  { %3497 = vmatpush1.bf16.msra.mxu0 %v5655_v59  ;;  %v5699_v16 = vpack.c.bf16 %v715_v23, %v711_v38  ;;  %v5711_v38 = vpack.c.bf16 %v723_v7, %v719_v57  ;;  %v5723_v7 = vpack.c.bf16 %v731_v19, %v727_v11  ;;  %v5735_v19 = vpack.c.bf16 %v739_v52, %v735_v4 }
  0xe1   :  { %3561 = vmatpush1.bf16.msra.mxu1 %v5659_v62  ;;  %3499 = vmatprep.subr.bf16.mxu0 %v5661_v0  ;;  %v5681_v62 = vpack.c.bf16 %v698_v50, %v694_v46  ;;  %7055 = vst [vmem:[#allocation55_spill] sm:$0xff] %v5687_v14  ;;  %v817_v46 = vld [vmem:[#allocation10 + $0xa8] sm:$0xff]  ;;  %v819_v50 = vld [vmem:[#allocation10 + $0xb8] sm:$0xff]  ;;  %v5747_v4 = vpack.c.bf16 %v747_v15, %v743_v45 }
  0xe2   :  { %3563 = vmatprep.subr.bf16.mxu1 %v5664_v42  ;;  %v814_v42 = vld [vmem:[#allocation10 + $0x90] sm:$0xff]  ;;  %7059 = vst [vmem:[#allocation59_spill] sm:$0xff] %v5699_v16  ;;  %v5702_v12 = vpack.c.bf16 %v819_v50, %v817_v46  ;;  %7063 = vst [vmem:[#allocation63_spill] sm:$0xff] %v5711_v38  ;;  %v820_v46 = vld [vmem:[#allocation10 + $0xc0] sm:$0xff]  ;;  %v5759_v45 = vpack.c.bf16 %v755_v6, %v751_v21  ;;  %v5771_v21 = vpack.c.bf16 %v763_v35, %v759_v60 }
  0xe3   :  { %7053 = vst [vmem:[#allocation53_spill] sm:$0xff] %v5681_v62  ;;  %v5697_v47 = vpack.c.bf16 %v814_v42, %v812_v27  ;;  %v718_v42 = vld [vmem:[#allocation9 + $0x190] sm:$0xff]  ;;  %7067 = vst [vmem:[#allocation67_spill] sm:$0xff] %v5723_v7  ;;  %v5783_v60 = vpack.c.bf16 %v771_v31, %v767_v43 }
  0xe4   :  { %3501 = vmatpush1.bf16.msra.mxu0 %v5669_v30  ;;  %7060 = vst [vmem:[#allocation60_spill] sm:$0xff] %v5702_v12  ;;  %v722_v27 = vld [vmem:[#allocation9 + $0x1b0] sm:$0xff]  ;;  %7071 = vst [vmem:[#allocation71_spill] sm:$0xff] %v5735_v19 }
  0xe5   :  { %3565 = vmatpush1.bf16.msra.mxu1 %v5673_v40  ;;  %3503 = vmatprep.subr.bf16.mxu0 %v5675_v44  ;;  %v5693_v40 = vpack.c.bf16 %v706_v26, %v702_v20  ;;  %7058 = vst [vmem:[#allocation58_spill] sm:$0xff] %v5697_v47  ;;  %v821_v20 = vld [vmem:[#allocation10 + $0xc8] sm:$0xff]  ;;  %v823_v26 = vld [vmem:[#allocation10 + $0xd8] sm:$0xff]  ;;  %7075 = vst [vmem:[#allocation75_spill] sm:$0xff] %v5747_v4 }
  0xe6   :  { %3567 = vmatprep.subr.bf16.mxu1 %v5678_v51  ;;  %v818_v51 = vld [vmem:[#allocation10 + $0xb0] sm:$0xff]  ;;  %v5714_v50 = vpack.c.bf16 %v823_v26, %v821_v20  ;;  %v824_v20 = vld [vmem:[#allocation10 + $0xe0] sm:$0xff]  ;;  %7079 = vst [vmem:[#allocation79_spill] sm:$0xff] %v5759_v45  ;;  %7083 = vst [vmem:[#allocation83_spill] sm:$0xff] %v5771_v21 }
  0xe7   :  { %7057 = vst [vmem:[#allocation57_spill] sm:$0xff] %v5693_v40  ;;  %v5709_v23 = vpack.c.bf16 %v818_v51, %v816_v3  ;;  %v726_v51 = vld [vmem:[#allocation9 + $0x1d0] sm:$0xff]  ;;  %7087 = vst [vmem:[#allocation87_spill] sm:$0xff] %v5783_v60 }
  0xe8   :  { %3505 = vmatpush1.bf16.msra.mxu0 %v5681_v62  ;;  %7064 = vst [vmem:[#allocation64_spill] sm:$0xff] %v5714_v50  ;;  %v730_v3 = vld [vmem:[#allocation9 + $0x1f0] sm:$0xff] }
  0xe9   :  { %3569 = vmatpush1.bf16.msra.mxu1 %v5685_v13  ;;  %3507 = vmatprep.subr.bf16.mxu0 %v5687_v14  ;;  %v5705_v13 = vpack.c.bf16 %v714_v58, %v710_v56  ;;  %7062 = vst [vmem:[#allocation62_spill] sm:$0xff] %v5709_v23  ;;  %v825_v56 = vld [vmem:[#allocation10 + $0xe8] sm:$0xff]  ;;  %v827_v58 = vld [vmem:[#allocation10 + $0xf8] sm:$0xff] }
  0xea   :  { %3571 = vmatprep.subr.bf16.mxu1 %v5690_v28  ;;  %v822_v28 = vld [vmem:[#allocation10 + $0xd0] sm:$0xff]  ;;  %v5726_v26 = vpack.c.bf16 %v827_v58, %v825_v56  ;;  %v828_v56 = vld [vmem:[#allocation10 + $0x100] sm:$0xff] }
  0xeb   :  { %7061 = vst [vmem:[#allocation61_spill] sm:$0xff] %v5705_v13  ;;  %v5721_v57 = vpack.c.bf16 %v822_v28, %v820_v46  ;;  %v734_v28 = vld [vmem:[#allocation9 + $0x210] sm:$0xff] }
  0xec   :  { %3509 = vmatpush1.bf16.msra.mxu0 %v5693_v40  ;;  %7068 = vst [vmem:[#allocation68_spill] sm:$0xff] %v5726_v26  ;;  %v738_v46 = vld [vmem:[#allocation9 + $0x230] sm:$0xff] }
  0xed   :  { %3573 = vmatpush1.bf16.msra.mxu1 %v5697_v47  ;;  %3511 = vmatprep.subr.bf16.mxu0 %v5699_v16  ;;  %v5717_v47 = vpack.c.bf16 %v722_v27, %v718_v42  ;;  %7066 = vst [vmem:[#allocation66_spill] sm:$0xff] %v5721_v57  ;;  %v829_v42 = vld [vmem:[#allocation10 + $0x108] sm:$0xff]  ;;  %v831_v27 = vld [vmem:[#allocation10 + $0x118] sm:$0xff] }
  0xee   :  { %3575 = vmatprep.subr.bf16.mxu1 %v5702_v12  ;;  %v826_v12 = vld [vmem:[#allocation10 + $0xf0] sm:$0xff]  ;;  %v5738_v58 = vpack.c.bf16 %v831_v27, %v829_v42  ;;  %v832_v42 = vld [vmem:[#allocation10 + $0x120] sm:$0xff] }
  0xef   :  { %7065 = vst [vmem:[#allocation65_spill] sm:$0xff] %v5717_v47  ;;  %v5733_v11 = vpack.c.bf16 %v826_v12, %v824_v20  ;;  %v742_v12 = vld [vmem:[#allocation9 + $0x250] sm:$0xff] }
  0xf0   :  { %3513 = vmatpush1.bf16.msra.mxu0 %v5705_v13  ;;  %7072 = vst [vmem:[#allocation72_spill] sm:$0xff] %v5738_v58  ;;  %v746_v20 = vld [vmem:[#allocation9 + $0x270] sm:$0xff] }
  0xf1   :  { %3577 = vmatpush1.bf16.msra.mxu1 %v5709_v23  ;;  %3515 = vmatprep.subr.bf16.mxu0 %v5711_v38  ;;  %v5729_v23 = vpack.c.bf16 %v730_v3, %v726_v51  ;;  %7070 = vst [vmem:[#allocation70_spill] sm:$0xff] %v5733_v11  ;;  %v833_v51 = vld [vmem:[#allocation10 + $0x128] sm:$0xff]  ;;  %v835_v3 = vld [vmem:[#allocation10 + $0x138] sm:$0xff] }
  0xf2   :  { %3579 = vmatprep.subr.bf16.mxu1 %v5714_v50  ;;  %v830_v50 = vld [vmem:[#allocation10 + $0x110] sm:$0xff]  ;;  %v5750_v27 = vpack.c.bf16 %v835_v3, %v833_v51  ;;  %v836_v51 = vld [vmem:[#allocation10 + $0x140] sm:$0xff] }
  0xf3   :  { %7069 = vst [vmem:[#allocation69_spill] sm:$0xff] %v5729_v23  ;;  %v5745_v52 = vpack.c.bf16 %v830_v50, %v828_v56  ;;  %v750_v50 = vld [vmem:[#allocation9 + $0x290] sm:$0xff] }
  0xf4   :  { %3517 = vmatpush1.bf16.msra.mxu0 %v5717_v47  ;;  %7076 = vst [vmem:[#allocation76_spill] sm:$0xff] %v5750_v27  ;;  %v754_v56 = vld [vmem:[#allocation9 + $0x2b0] sm:$0xff] }
  0xf5   :  { %3581 = vmatpush1.bf16.msra.mxu1 %v5721_v57  ;;  %3519 = vmatprep.subr.bf16.mxu0 %v5723_v7  ;;  %v5741_v57 = vpack.c.bf16 %v738_v46, %v734_v28  ;;  %7074 = vst [vmem:[#allocation74_spill] sm:$0xff] %v5745_v52  ;;  %v837_v28 = vld [vmem:[#allocation10 + $0x148] sm:$0xff]  ;;  %v839_v46 = vld [vmem:[#allocation10 + $0x158] sm:$0xff] }
  0xf6   :  { %3583 = vmatprep.subr.bf16.mxu1 %v5726_v26  ;;  %v834_v26 = vld [vmem:[#allocation10 + $0x130] sm:$0xff]  ;;  %v5762_v3 = vpack.c.bf16 %v839_v46, %v837_v28  ;;  %v840_v28 = vld [vmem:[#allocation10 + $0x160] sm:$0xff] }
  0xf7   :  { %7073 = vst [vmem:[#allocation73_spill] sm:$0xff] %v5741_v57  ;;  %v5757_v15 = vpack.c.bf16 %v834_v26, %v832_v42  ;;  %v758_v26 = vld [vmem:[#allocation9 + $0x2d0] sm:$0xff] }
  0xf8   :  { %3521 = vmatpush1.bf16.msra.mxu0 %v5729_v23  ;;  %7080 = vst [vmem:[#allocation80_spill] sm:$0xff] %v5762_v3  ;;  %v762_v42 = vld [vmem:[#allocation9 + $0x2f0] sm:$0xff] }
  0xf9   :  { %3585 = vmatpush1.bf16.msra.mxu1 %v5733_v11  ;;  %3523 = vmatprep.subr.bf16.mxu0 %v5735_v19  ;;  %v5753_v11 = vpack.c.bf16 %v746_v20, %v742_v12  ;;  %7078 = vst [vmem:[#allocation78_spill] sm:$0xff] %v5757_v15  ;;  %v841_v12 = vld [vmem:[#allocation10 + $0x168] sm:$0xff]  ;;  %v843_v20 = vld [vmem:[#allocation10 + $0x178] sm:$0xff] }
  0xfa   :  { %3587 = vmatprep.subr.bf16.mxu1 %v5738_v58  ;;  %v838_v58 = vld [vmem:[#allocation10 + $0x150] sm:$0xff]  ;;  %v5774_v46 = vpack.c.bf16 %v843_v20, %v841_v12  ;;  %v844_v12 = vld [vmem:[#allocation10 + $0x180] sm:$0xff] }
  0xfb   :  { %7077 = vst [vmem:[#allocation77_spill] sm:$0xff] %v5753_v11  ;;  %v5769_v6 = vpack.c.bf16 %v838_v58, %v836_v51  ;;  %v766_v58 = vld [vmem:[#allocation9 + $0x310] sm:$0xff] }
  0xfc   :  { %3525 = vmatpush1.bf16.msra.mxu0 %v5741_v57  ;;  %7084 = vst [vmem:[#allocation84_spill] sm:$0xff] %v5774_v46  ;;  %v770_v51 = vld [vmem:[#allocation9 + $0x330] sm:$0xff] }
  0xfd   :  { %3589 = vmatpush1.bf16.msra.mxu1 %v5745_v52  ;;  %3527 = vmatprep.subr.bf16.mxu0 %v5747_v4  ;;  %v5765_v52 = vpack.c.bf16 %v754_v56, %v750_v50  ;;  %7082 = vst [vmem:[#allocation82_spill] sm:$0xff] %v5769_v6  ;;  %v845_v50 = vld [vmem:[#allocation10 + $0x188] sm:$0xff]  ;;  %v847_v56 = vld [vmem:[#allocation10 + $0x198] sm:$0xff] }
  0xfe   :  { %3591 = vmatprep.subr.bf16.mxu1 %v5750_v27  ;;  %v842_v27 = vld [vmem:[#allocation10 + $0x170] sm:$0xff]  ;;  %v5786_v20 = vpack.c.bf16 %v847_v56, %v845_v50  ;;  %v848_v50 = vld [vmem:[#allocation10 + $0x1a0] sm:$0xff] }
  0xff   :  { %7081 = vst [vmem:[#allocation81_spill] sm:$0xff] %v5765_v52  ;;  %v5781_v35 = vpack.c.bf16 %v842_v27, %v840_v28  ;;  %v774_v27 = vld [vmem:[#allocation9 + $0x350] sm:$0xff] }
 0x100   :  { %3529 = vmatpush1.bf16.msra.mxu0 %v5753_v11  ;;  %7088 = vst [vmem:[#allocation88_spill] sm:$0xff] %v5786_v20  ;;  %v778_v28 = vld [vmem:[#allocation9 + $0x370] sm:$0xff] }
 0x101   :  { %3593 = vmatpush1.bf16.msra.mxu1 %v5757_v15  ;;  %3531 = vmatprep.subr.bf16.mxu0 %v5759_v45  ;;  %v5777_v15 = vpack.c.bf16 %v762_v42, %v758_v26  ;;  %7086 = vst [vmem:[#allocation86_spill] sm:$0xff] %v5781_v35  ;;  %v849_v26 = vld [vmem:[#allocation10 + $0x1a8] sm:$0xff]  ;;  %v851_v42 = vld [vmem:[#allocation10 + $0x1b8] sm:$0xff] }
 0x102   :  { %3595 = vmatprep.subr.bf16.mxu1 %v5762_v3  ;;  %v846_v3 = vld [vmem:[#allocation10 + $0x190] sm:$0xff]  ;;  %v5798_v56 = vpack.c.bf16 %v851_v42, %v849_v26  ;;  %v852_v26 = vld [vmem:[#allocation10 + $0x1c0] sm:$0xff] }
 0x103   :  { %7085 = vst [vmem:[#allocation85_spill] sm:$0xff] %v5777_v15  ;;  %v5793_v31 = vpack.c.bf16 %v846_v3, %v844_v12  ;;  %v782_v3 = vld [vmem:[#allocation9 + $0x390] sm:$0xff] }
 0x104   :  { %3533 = vmatpush1.bf16.msra.mxu0 %v5765_v52  ;;  %v779_v52 = vld [vmem:[#allocation9 + $0x378] sm:$0xff]  ;;  %7092 = vst [vmem:[#allocation92_spill] sm:$0xff] %v5798_v56  ;;  %v786_v12 = vld [vmem:[#allocation9 + $0x3b0] sm:$0xff] }
 0x105   :  { %3597 = vmatpush1.bf16.msra.mxu1 %v5769_v6  ;;  %3535 = vmatprep.subr.bf16.mxu0 %v5771_v21  ;;  %v5789_v6 = vpack.c.bf16 %v770_v51, %v766_v58  ;;  %7090 = vst [vmem:[#allocation90_spill] sm:$0xff] %v5793_v31  ;;  %v5795_v43 = vpack.c.bf16 %v779_v52, %v775_v22  ;;  %v783_v21 = vld [vmem:[#allocation9 + $0x398] sm:$0xff]  ;;  %v853_v58 = vld [vmem:[#allocation10 + $0x1c8] sm:$0xff] }
 0x106   :  { %3599 = vmatprep.subr.bf16.mxu1 %v5774_v46  ;;  %v850_v46 = vld [vmem:[#allocation10 + $0x1b0] sm:$0xff]  ;;  %v855_v51 = vld [vmem:[#allocation10 + $0x1d8] sm:$0xff] }
 0x107   :  { %7089 = vst [vmem:[#allocation89_spill] sm:$0xff] %v5789_v6  ;;  %7091 = vst [vmem:[#allocation91_spill] sm:$0xff] %v5795_v43  ;;  %v5805_v22 = vpack.c.bf16 %v850_v46, %v848_v50  ;;  %v5810_v42 = vpack.c.bf16 %v855_v51, %v853_v58  ;;  %v790_v46 = vld [vmem:[#allocation9 + $0x3d0] sm:$0xff]  ;;  %v856_v51 = vld [vmem:[#allocation10 + $0x1e0] sm:$0xff] }
 0x108   :  { %3537 = vmatpush1.bf16.msra.mxu0 %v5777_v15  ;;  %v787_v15 = vld [vmem:[#allocation9 + $0x3b8] sm:$0xff]  ;;  %v794_v50 = vld [vmem:[#allocation9 + $0x3f0] sm:$0xff] }
 0x109   :  { %3601 = vmatpush1.bf16.msra.mxu1 %v5781_v35  ;;  %3539 = vmatprep.subr.bf16.mxu0 %v5783_v60  ;;  %v5801_v35 = vpack.c.bf16 %v778_v28, %v774_v27  ;;  %7094 = vst [vmem:[#allocation94_spill] sm:$0xff] %v5805_v22  ;;  %v5807_v52 = vpack.c.bf16 %v787_v15, %v783_v21  ;;  %7096 = vst [vmem:[#allocation96_spill] sm:$0xff] %v5810_v42  ;;  %v791_v60 = vld [vmem:[#allocation9 + $0x3d8] sm:$0xff]  ;;  %v857_v27 = vld [vmem:[#allocation10 + $0x1e8] sm:$0xff] }
 0x10a   :  { %3603 = vmatprep.subr.bf16.mxu1 %v5786_v20  ;;  %v854_v20 = vld [vmem:[#allocation10 + $0x1d0] sm:$0xff]  ;;  %v859_v28 = vld [vmem:[#allocation10 + $0x1f8] sm:$0xff] }
 0x10b   :  { %7093 = vst [vmem:[#allocation93_spill] sm:$0xff] %v5801_v35  ;;  %7095 = vst [vmem:[#allocation95_spill] sm:$0xff] %v5807_v52  ;;  %v5817_v15 = vpack.c.bf16 %v854_v20, %v852_v26  ;;  %v5822_v58 = vpack.c.bf16 %v859_v28, %v857_v27  ;;  %v7107_v26 = vld [vmem:[#allocation30_spill] sm:$0xff]  ;;  %v7108_v27 = vld [vmem:[#allocation85_spill] sm:$0xff] }
 0x10c   :  { %3541 = vmatpush1.bf16.msra.mxu0 %v5789_v6  ;;  %v795_v6 = vld [vmem:[#allocation9 + $0x3f8] sm:$0xff] }
 0x10d   :  { %3605 = vmatpush1.bf16.msra.mxu1 %v5793_v31  ;;  %3543 = vmatprep.subr.bf16.mxu0 %v5795_v43  ;;  %v5813_v31 = vpack.c.bf16 %v786_v12, %v782_v3  ;;  %7098 = vst [vmem:[#allocation98_spill] sm:$0xff] %v5817_v15  ;;  %v5819_v21 = vpack.c.bf16 %v795_v6, %v791_v60  ;;  %7100 = vst [vmem:[#allocation100_spill] sm:$0xff] %v5822_v58  ;;  %v7103_v6 = vld [vmem:[#allocation28_spill] sm:$0xff]  ;;  %v7104_v60 = vld [vmem:[#allocation81_spill] sm:$0xff] }
 0x10e   :  { %3607 = vmatprep.subr.bf16.mxu1 %v5798_v56  ;;  %v858_v56 = vld [vmem:[#allocation10 + $0x1f0] sm:$0xff]  ;;  %v5825_v3 = vpack.c.bf16 %v794_v50, %v790_v46  ;;  %v7106_v12 = vld [vmem:[#allocation83_spill] sm:$0xff]  ;;  %v7111_v50 = vld [vmem:[#allocation32_spill] sm:$0xff] }
 0x10f   :  { %7097 = vst [vmem:[#allocation97_spill] sm:$0xff] %v5813_v31  ;;  %7099 = vst [vmem:[#allocation99_spill] sm:$0xff] %v5819_v21  ;;  %v5829_v20 = vpack.c.bf16 %v858_v56, %v856_v51  ;;  %v7105_v56 = vld [vmem:[#allocation29_spill] sm:$0xff]  ;;  %v7109_v28 = vld [vmem:[#allocation31_spill] sm:$0xff] }
 0x110   :  { %3545 = vmatpush1.bf16.msra.mxu0 %v5801_v35  ;;  %7101 = vst [vmem:[#allocation101_spill] sm:$0xff] %v5825_v3  ;;  %v7110_v46 = vld [vmem:[#allocation87_spill] sm:$0xff]  ;;  %v7112_v51 = vld [vmem:[#allocation89_spill] sm:$0xff] }
 0x111   :  { %3609 = vmatpush1.bf16.msra.mxu1 %v5805_v22  ;;  %3547 = vmatprep.subr.bf16.mxu0 %v5807_v52  ;;  %7102 = vst [vmem:[#allocation102_spill] sm:$0xff] %v5829_v20 }
 0x112   :  { %3611 = vmatprep.subr.bf16.mxu1 %v5810_v42 }
 0x114   :  { %3549 = vmatpush1.bf16.msra.mxu0 %v5813_v31 }
 0x115   :  { %3613 = vmatpush1.bf16.msra.mxu1 %v5817_v15  ;;  %3551 = vmatprep.subr.bf16.mxu0 %v5819_v21 }
 0x116   :  { %3615 = vmatprep.subr.bf16.mxu1 %v5822_v58 }
 0x118   :  { %3553 = vmatpush1.bf16.msra.mxu0 %v5825_v3 }
 0x119   :  { %3617 = vmatpush1.bf16.msra.mxu1 %v5829_v20  ;;  %3619 = vmatprep.subr.bf16.mxu0 %v5522_v53  ;;  %v7126_v20 = vld [vmem:[#allocation18_spill] sm:$0xff] }
 0x11a   :  { %3683 = vmatprep.subr.bf16.mxu1 %v5632_v8 }
 0x11b   :  { %1031 = vmatmul.mubr.f32.vlgmr.msra.gmra.mrb[4].mxu0 %v5639_v33 }
 0x11c   :  { %1141 = vmatmul.mubr.f32.vlgmr.msra.gmra.mrb[4].mxu1 %v5639_v33  ;;  %3621 = vmatpush1.bf16.msra.mxu0 %v5527_v61 }
 0x11d   :  { %3685 = vmatpush1.bf16.msra.mxu1 %v5641_v36  ;;  %3623 = vmatprep.subr.bf16.mxu0 %v5530_v2 }
 0x11e   :  { %3687 = vmatprep.subr.bf16.mxu1 %v5647_v34 }
 0x120   :  { %3625 = vmatpush1.bf16.msra.mxu0 %v5535_v10 }
 0x121   :  { %3689 = vmatpush1.bf16.msra.mxu1 %v5655_v59  ;;  %3627 = vmatprep.subr.bf16.mxu0 %v5538_v17 }
 0x122   :  { %3691 = vmatprep.subr.bf16.mxu1 %v5661_v0 }
 0x124   :  { %3629 = vmatpush1.bf16.msra.mxu0 %v5542_v24 }
 0x125   :  { %3693 = vmatpush1.bf16.msra.mxu1 %v5669_v30  ;;  %3631 = vmatprep.subr.bf16.mxu0 %v5545_v29 }
 0x126   :  { %3695 = vmatprep.subr.bf16.mxu1 %v5675_v44 }
 0x128   :  { %3633 = vmatpush1.bf16.msra.mxu0 %v5548_v37 }
 0x129   :  { %3697 = vmatpush1.bf16.msra.mxu1 %v5681_v62  ;;  %3635 = vmatprep.subr.bf16.mxu0 %v5551_v41 }
 0x12a   :  { %3699 = vmatprep.subr.bf16.mxu1 %v5687_v14 }
 0x12c   :  { %3637 = vmatpush1.bf16.msra.mxu0 %v5554_v49 }
 0x12d   :  { %3701 = vmatpush1.bf16.msra.mxu1 %v5693_v40  ;;  %3639 = vmatprep.subr.bf16.mxu0 %v5557_v54 }
 0x12e   :  { %3703 = vmatprep.subr.bf16.mxu1 %v5699_v16 }
 0x130   :  { %3641 = vmatpush1.bf16.msra.mxu0 %v5560_v63 }
 0x131   :  { %3705 = vmatpush1.bf16.msra.mxu1 %v5705_v13  ;;  %3643 = vmatprep.subr.bf16.mxu0 %v5563_v5 }
 0x132   :  { %3707 = vmatprep.subr.bf16.mxu1 %v5711_v38 }
 0x134   :  { %3645 = vmatpush1.bf16.msra.mxu0 %v5571_v18 }
 0x135   :  { %3709 = vmatpush1.bf16.msra.mxu1 %v5717_v47  ;;  %3647 = vmatprep.subr.bf16.mxu0 %v5578_v25 }
 0x136   :  { %3711 = vmatprep.subr.bf16.mxu1 %v5723_v7  ;;  %v7120_v7 = vld [vmem:[#allocation20_spill] sm:$0xff] }
 0x138   :  { %3649 = vmatpush1.bf16.msra.mxu0 %v5582_v32 }
 0x139   :  { %3713 = vmatpush1.bf16.msra.mxu1 %v5729_v23  ;;  %3651 = vmatprep.subr.bf16.mxu0 %v5585_v39 }
 0x13a   :  { %3715 = vmatprep.subr.bf16.mxu1 %v5735_v19 }
 0x13c   :  { %3653 = vmatpush1.bf16.msra.mxu0 %v5588_v48 }
 0x13d   :  { %3717 = vmatpush1.bf16.msra.mxu1 %v5741_v57  ;;  %3655 = vmatprep.subr.bf16.mxu0 %v5591_v55 }
 0x13e   :  { %3719 = vmatprep.subr.bf16.mxu1 %v5747_v4 }
 0x140   :  { %3657 = vmatpush1.bf16.msra.mxu0 %v5594_v1 }
 0x141   :  { %3721 = vmatpush1.bf16.msra.mxu1 %v5753_v11  ;;  %3659 = vmatprep.subr.bf16.mxu0 %v5597_v9 }
 0x142   :  { %3723 = vmatprep.subr.bf16.mxu1 %v5759_v45  ;;  %v7113_v45 = vld [vmem:[#allocation33_spill] sm:$0xff] }
 0x144   :  { %3661 = vmatpush1.bf16.msra.mxu0 %v7103_v6 }
 0x145   :  { %3725 = vmatpush1.bf16.msra.mxu1 %v7104_v60  ;;  %3663 = vmatprep.subr.bf16.mxu0 %v7105_v56  ;;  %v7114_v60 = vld [vmem:[#allocation34_spill] sm:$0xff] }
 0x146   :  { %3727 = vmatprep.subr.bf16.mxu1 %v7106_v12  ;;  %v7115_v12 = vld [vmem:[#allocation35_spill] sm:$0xff] }
 0x148   :  { %3665 = vmatpush1.bf16.msra.mxu0 %v7107_v26 }
 0x149   :  { %3729 = vmatpush1.bf16.msra.mxu1 %v7108_v27  ;;  %3667 = vmatprep.subr.bf16.mxu0 %v7109_v28  ;;  %v7116_v27 = vld [vmem:[#allocation36_spill] sm:$0xff] }
 0x14a   :  { %3731 = vmatprep.subr.bf16.mxu1 %v7110_v46  ;;  %v7117_v46 = vld [vmem:[#allocation37_spill] sm:$0xff] }
 0x14c   :  { %3669 = vmatpush1.bf16.msra.mxu0 %v7111_v50 }
 0x14d   :  { %3733 = vmatpush1.bf16.msra.mxu1 %v7112_v51  ;;  %3671 = vmatprep.subr.bf16.mxu0 %v7113_v45  ;;  %v7118_v51 = vld [vmem:[#allocation38_spill] sm:$0xff] }
 0x14e   :  { %3735 = vmatprep.subr.bf16.mxu1 %v5795_v43  ;;  %v7119_v43 = vld [vmem:[#allocation40_spill] sm:$0xff] }
 0x150   :  { %3673 = vmatpush1.bf16.msra.mxu0 %v7114_v60 }
 0x151   :  { %3737 = vmatpush1.bf16.msra.mxu1 %v5801_v35  ;;  %3675 = vmatprep.subr.bf16.mxu0 %v7115_v12 }
 0x152   :  { %3739 = vmatprep.subr.bf16.mxu1 %v5807_v52 }
 0x154   :  { %3677 = vmatpush1.bf16.msra.mxu0 %v7116_v27 }
 0x155   :  { %3741 = vmatpush1.bf16.msra.mxu1 %v5813_v31  ;;  %3679 = vmatprep.subr.bf16.mxu0 %v7117_v46 }
 0x156   :  { %3743 = vmatprep.subr.bf16.mxu1 %v5819_v21  ;;  %v860_v21 = vld [vmem:[%s6810_s6] sm:$0xf] }
 0x157   :  { %v5909_v47 = vrot.slane %v860_v21, %v7120_v7 }
 0x158   :  { %3681 = vmatpush1.bf16.msra.mxu0 %v7118_v51 }
 0x159   :  { %3745 = vmatpush1.bf16.msra.mxu1 %v5825_v3  ;;  %3747 = vmatprep.subr.bf16.mxu0 %v7119_v43  ;;  %v423_v3 = vld [vmem:[%s6809_s5] sm:$0x3f]  ;;  %7121 = vst [vmem:[#allocation20_spill] sm:$0xff] %v5909_v47 }
 0x15a   :  { %3811 = vmatprep.subr.bf16.mxu1 %v5522_v53  ;;  %v7122_v53 = vld [vmem:[#allocation19_spill] sm:$0xff]  ;;  %v428_v13 = vrot.slane %v423_v3, %v7120_v7 }
 0x15b   :  { %v5912_v38 = vrot.slane %v860_v21, %v7122_v53  ;;  %v432_v16 = vrot.slane %v423_v3, %v7122_v53 }
 0x15d   :  { %7123 = vst [vmem:[#allocation19_spill] sm:$0xff] %v5912_v38 }
 0x16e   :  { %v521_v35 = vpop.f32.mrb[0].mxu0 }
 0x16f   :  { %v523_v11 = vpop.f32.mrb[1].mxu0  ;;  %v592_v4 = vpop.f32.mrb[0].mxu1  ;;  %v5918_v62 = vadd.f32 %v521_v35, %v428_v13  ;;  %v439_v13 = vsub.s32 3, %v7126_v20 }
 0x170   :  { %v594_v52 = vpop.f32.mrb[1].mxu1  ;;  %v5920_v44 = vadd.f32 %v523_v11, %v432_v16 }
 0x171   :  { %7124 = vst [vmem:[#allocation103_spill] sm:$0xff] %v5918_v62 }
 0x172   :  { %7125 = vst [vmem:[#allocation104_spill] sm:$0xff] %v5920_v44 }
 0x1ae   :  { %v663_v57 = vpop.f32.mrb[2].mxu0 }
 0x1af   :  { %v961_v19 = vpop.f32.mrb[2].mxu1  ;;  %v665_v23 = vpop.f32.mrb[3].mxu0 }
 0x1b0   :  { %v963_v31 = vpop.f32.mrb[3].mxu1  ;;  %v962_v40 = vadd.f32 %v961_v19, %v5909_v47  ;;  %v435_v19 = vsub.s32 2, %v7126_v20 }
 0x1b1   :  { %v964_v14 = vadd.f32 %v963_v31, %v5912_v38 }
 0x1b2   :  { %v1037_v30 = vadd.f32 %v962_v40, %v5918_v62  ;;  %v861_v40 = vld [vmem:[%s6811_s7] sm:$0x3]  ;;  %v436_v16 = vrot.slane %v423_v3, %v435_v19  ;;  %s5277_s7 = smov [#allocation12]  }
 0x1b3   :  { %v1038_v0 = vadd.f32 %v964_v14, %v5920_v44  ;;  %v5929_v14 = vrot.slane %v860_v21, %v435_v19  ;;  %s3160_s27 = sshll.u32 %s5277_s7, 4  ;;  %s3161_s27 = int_to_ptr.vmem [resolvable:$true] %s3160_s27 }
 0x1b4   :  { %v3202_v59 = vmul.f32 -1.442695, %v1037_v30  ;;  %v5939_v11 = vadd.f32 %v592_v4, %v436_v16  ;;  %s5233_s28 = scalar_lea.vmem %s3161_s27, 256  ;;  %p5238_p8 = scmp.lt.s32.totalorder %s3161_s27, %s3161_s27 }
 0x1b5   :  { %v3203_v34 = vmul.f32 -1.442695, %v1038_v0  ;;  %7127 = vst [vmem:[#allocation18_spill] sm:$0xff] %v5929_v14  ;;  %v440_v0 = vrot.slane %v423_v3, %v439_v13  ;;  %p5234_p7 = scmp.ne.s32.totalorder %s3161_s27, %s5233_s28  ;;  %p5239_p9 = scmp.lt.s32.totalorder %s5233_s28, %s5233_s28 }
 0x1b6   :  { %4975 = vpow2.f32 %v3202_v59  ;;  %v5931_v59 = vrot.slane %v860_v21, %v439_v13  ;;  %7131 = vst [vmem:[#allocation108_spill] sm:$0xff] %v5939_v11 }
 0x1b7   :  { %4977 = vpow2.f32 %v3203_v34  ;;  %v5934_v34 = vrot.slane %v861_v40, %v7120_v7  ;;  %p5240_p10 = por %p5239_p9, %p5238_p8 }
 0x1b8   :  { %7128 = vst [vmem:[#allocation105_spill] sm:$0xff] %v5931_v59 }
 0x1b9   :  { %7129 = vst [vmem:[#allocation106_spill] sm:$0xff] %v5934_v34  ;;  %p5241_p11 = pnand %p5240_p10, %p5234_p7 }
 0x1c0   :  { %v4976_v36 = vpop.eup %4975 }
 0x1c1   :  { %v4978_v43 = vpop.eup %4977  ;;  %v1045_v51 = vadd.f32 1.0, %v4976_v36  ;;  %v5937_v36 = vrot.slane %v861_v40, %v7122_v53 }
 0x1c2   :  { %v1046_v8 = vadd.f32 1.0, %v4978_v43  ;;  %v5942_v43 = vadd.f32 %v594_v52, %v440_v0  ;;  %v443_v52 = vsub.s32 4, %v7126_v20  ;;  %v447_v0 = vsub.s32 5, %v7126_v20 }
 0x1c3   :  { %4979 = vrcp.f32 %v1045_v51  ;;  %7130 = vst [vmem:[#allocation107_spill] sm:$0xff] %v5937_v36 }
 0x1c4   :  { %4981 = vrcp.f32 %v1046_v8  ;;  %7132 = vst [vmem:[#allocation109_spill] sm:$0xff] %v5942_v43 }
 0x1cd   :  { %v4980_v13 = vpop.eup %4979 }
 0x1ce   :  { %v4982_v40 = vpop.eup %4981 }
 0x1ee   :  { %v1032_v30 = vpop.f32.mrb[4].mxu0 }
 0x1ef   :  { %v1033_v8 = vadd.f32 %v1032_v30, %v5929_v14  ;;  %v1142_v35 = vpop.f32.mrb[4].mxu1  ;;  %v1034_v31 = vpop.f32.mrb[5].mxu0 }
 0x1f0   :  { %v1143_v51 = vadd.f32 %v1142_v35, %v5934_v34  ;;  %v1035_v21 = vadd.f32 %v1034_v31, %v5931_v59  ;;  %v1144_v19 = vpop.f32.mrb[5].mxu1  ;;  %v444_v35 = vrot.slane %v423_v3, %v443_v52  ;;  %v448_v31 = vrot.slane %v423_v3, %v447_v0 }
 0x1f1   :  { %v1051_v7 = vadd.f32 %v1033_v8, %v5939_v11  ;;  %v1145_v53 = vadd.f32 %v1144_v19, %v5937_v36 }
 0x1f2   :  { %v1147_v44 = vmul.f32 %v4980_v13, %v1143_v51  ;;  %v1052_v4 = vadd.f32 %v1035_v21, %v5942_v43  ;;  %v5951_v34 = vadd.f32 %v663_v57, %v444_v35  ;;  %v5954_v36 = vadd.f32 %v665_v23, %v448_v31  ;;  %v7136_v31 = vld [vmem:[#allocation46_spill] sm:$0xff] }
 0x1f3   :  { %v3204_v16 = vmul.f32 -1.442695, %v1051_v7  ;;  %v1148_v30 = vmul.f32 %v4982_v40, %v1145_v53 }
 0x1f4   :  { %v3205_v14 = vmul.f32 -1.442695, %v1052_v4  ;;  %v1149_v19 = vadd.f32 %v1147_v44, %v5951_v34 }
 0x1f5   :  { %4983 = vpow2.f32 %v3204_v16  ;;  %v1150_v7 = vadd.f32 %v1148_v30, %v5954_v36  ;;  %v7133_v16 = vld [vmem:[#allocation22_spill] sm:$0xff] }
 0x1f6   :  { %4985 = vpow2.f32 %v3205_v14  ;;  %v7134_v30 = vld [vmem:[#allocation42_spill] sm:$0xff] }
 0x1ff   :  { %v4984_v8 = vpop.eup %4983 }
 0x200   :  { %v1059_v51 = vadd.f32 1.0, %v4984_v8  ;;  %v4986_v21 = vpop.eup %4985  ;;  %v7137_v8 = vld [vmem:[#allocation48_spill] sm:$0xff] }
 0x201   :  { %v1060_v13 = vadd.f32 1.0, %v4986_v21  ;;  %v7140_v21 = vld [vmem:[#allocation54_spill] sm:$0xff] }
 0x202   :  { %4987 = vrcp.f32 %v1059_v51  ;;  %v7139_v51 = vld [vmem:[#allocation52_spill] sm:$0xff] }
 0x203   :  { %4989 = vtanh.f32 %v1149_v19  ;;  %v7138_v19 = vld [vmem:[#allocation50_spill] sm:$0xff] }
 0x204   :  { %4991 = vrcp.f32 %v1060_v13  ;;  %v7141_v13 = vld [vmem:[#allocation56_spill] sm:$0xff] }
 0x205   :  { %4993 = vtanh.f32 %v1150_v7  ;;  %v7142_v7 = vld [vmem:[#allocation58_spill] sm:$0xff] }
 0x20c   :  { %v4988_v14 = vpop.eup %4987 }
 0x20d   :  { %v4990_v20 = vpop.eup %4989  ;;  %v1153_v53 = vsub.f32 1.0, %v4988_v14  ;;  %v1157_v4 = vmul.f32 %v4988_v14, %v5639_v33  ;;  %v7135_v33 = vld [vmem:[#allocation44_spill] sm:$0xff] }
 0x20e   :  { %v4992_v3 = vpop.eup %4991  ;;  %v7143_v14 = vld [vmem:[#allocation60_spill] sm:$0xff] }
 0x20f   :  { %v1154_v57 = vsub.f32 1.0, %v4992_v3  ;;  %v1155_v40 = vmul.f32 %v4990_v20, %v1153_v53  ;;  %v4994_v44 = vpop.eup %4993  ;;  %v1158_v52 = vmul.f32 %v4992_v3, %v7133_v16  ;;  %v7144_v20 = vld [vmem:[#allocation62_spill] sm:$0xff]  ;;  %v7145_v53 = vld [vmem:[#allocation64_spill] sm:$0xff] }
 0x210   :  { %v7146_v3 = vld [vmem:[#allocation66_spill] sm:$0xff] }
 0x211   :  { %v1156_v23 = vmul.f32 %v4994_v44, %v1154_v57  ;;  %v5959_v0 = vadd.f32 %v1157_v4, %v1155_v40  ;;  %v7147_v57 = vld [vmem:[#allocation68_spill] sm:$0xff]  ;;  %v7148_v40 = vld [vmem:[#allocation70_spill] sm:$0xff] }
 0x212   :  { %v7149_v4 = vld [vmem:[#allocation72_spill] sm:$0xff]  ;;  %v7150_v44 = vld [vmem:[#allocation74_spill] sm:$0xff] }
 0x213   :  { %v5961_v35 = vadd.f32 %v1158_v52, %v1156_v23  ;;  %v7151_v23 = vld [vmem:[#allocation76_spill] sm:$0xff]  ;;  %v7152_v16 = vld [vmem:[#allocation78_spill] sm:$0xff] }
 0x214   :  { %v7153_v52 = vld [vmem:[#allocation80_spill] sm:$0xff] }
 0x215   :  { %1225 = vmatprep.mubr.f32.mxu0 %v5961_v35  ;;  %1296 = vmatprep.mubr.f32.mxu1 %v5961_v35 }
 0x216   :  { %1226 = vmatmul.mubr.f32.vlgmr.msra.gmra.mrb[6].mxu0 %v5959_v0  ;;  %1297 = vmatmul.mubr.f32.vlgmr.msra.gmra.mrb[6].mxu1 %v5959_v0 }
 0x217   :  { %3749 = vmatpush1.bf16.msra.mxu0 %v7134_v30  ;;  %1407 = vmatprep.mubr.f32.mxu0 %v5961_v35 }
 0x218   :  { %3751 = vmatprep.subr.bf16.mxu0 %v7135_v33  ;;  %3813 = vmatpush1.bf16.msra.mxu1 %v5527_v61 }
 0x219   :  { %3815 = vmatprep.subr.bf16.mxu1 %v5530_v2 }
 0x21b   :  { %3753 = vmatpush1.bf16.msra.mxu0 %v7136_v31 }
 0x21c   :  { %3755 = vmatprep.subr.bf16.mxu0 %v7137_v8  ;;  %3817 = vmatpush1.bf16.msra.mxu1 %v5535_v10 }
 0x21d   :  { %3819 = vmatprep.subr.bf16.mxu1 %v5538_v17 }
 0x21f   :  { %3757 = vmatpush1.bf16.msra.mxu0 %v7138_v19 }
 0x220   :  { %3759 = vmatprep.subr.bf16.mxu0 %v7139_v51  ;;  %3821 = vmatpush1.bf16.msra.mxu1 %v5542_v24 }
 0x221   :  { %3823 = vmatprep.subr.bf16.mxu1 %v5545_v29 }
 0x223   :  { %3761 = vmatpush1.bf16.msra.mxu0 %v7140_v21 }
 0x224   :  { %3763 = vmatprep.subr.bf16.mxu0 %v7141_v13  ;;  %3825 = vmatpush1.bf16.msra.mxu1 %v5548_v37 }
 0x225   :  { %3827 = vmatprep.subr.bf16.mxu1 %v5551_v41 }
 0x227   :  { %3765 = vmatpush1.bf16.msra.mxu0 %v7142_v7 }
 0x228   :  { %3767 = vmatprep.subr.bf16.mxu0 %v7143_v14  ;;  %3829 = vmatpush1.bf16.msra.mxu1 %v5554_v49 }
 0x229   :  { %3831 = vmatprep.subr.bf16.mxu1 %v5557_v54 }
 0x22b   :  { %3769 = vmatpush1.bf16.msra.mxu0 %v7144_v20 }
 0x22c   :  { %3771 = vmatprep.subr.bf16.mxu0 %v7145_v53  ;;  %3833 = vmatpush1.bf16.msra.mxu1 %v5560_v63 }
 0x22d   :  { %3835 = vmatprep.subr.bf16.mxu1 %v5563_v5 }
 0x22f   :  { %3773 = vmatpush1.bf16.msra.mxu0 %v7146_v3 }
 0x230   :  { %3775 = vmatprep.subr.bf16.mxu0 %v7147_v57  ;;  %3837 = vmatpush1.bf16.msra.mxu1 %v5571_v18 }
 0x231   :  { %3839 = vmatprep.subr.bf16.mxu1 %v5578_v25 }
 0x233   :  { %3777 = vmatpush1.bf16.msra.mxu0 %v7148_v40 }
 0x234   :  { %3779 = vmatprep.subr.bf16.mxu0 %v7149_v4  ;;  %3841 = vmatpush1.bf16.msra.mxu1 %v5582_v32  ;;  %v7154_v4 = vld [vmem:[#allocation82_spill] sm:$0xff]  ;;  %v7155_v32 = vld [vmem:[#allocation84_spill] sm:$0xff] }
 0x235   :  { %3843 = vmatprep.subr.bf16.mxu1 %v5585_v39 }
 0x237   :  { %3781 = vmatpush1.bf16.msra.mxu0 %v7150_v44 }
 0x238   :  { %3783 = vmatprep.subr.bf16.mxu0 %v7151_v23  ;;  %3845 = vmatpush1.bf16.msra.mxu1 %v5588_v48  ;;  %v7156_v23 = vld [vmem:[#allocation86_spill] sm:$0xff]  ;;  %v7157_v48 = vld [vmem:[#allocation88_spill] sm:$0xff] }
 0x239   :  { %3847 = vmatprep.subr.bf16.mxu1 %v5591_v55 }
 0x23b   :  { %3785 = vmatpush1.bf16.msra.mxu0 %v7152_v16 }
 0x23c   :  { %3787 = vmatprep.subr.bf16.mxu0 %v7153_v52  ;;  %3849 = vmatpush1.bf16.msra.mxu1 %v5594_v1  ;;  %v7158_v52 = vld [vmem:[#allocation90_spill] sm:$0xff]  ;;  %v7159_v1 = vld [vmem:[#allocation92_spill] sm:$0xff] }
 0x23d   :  { %3851 = vmatprep.subr.bf16.mxu1 %v5597_v9 }
 0x23f   :  { %3789 = vmatpush1.bf16.msra.mxu0 %v7154_v4 }
 0x240   :  { %3791 = vmatprep.subr.bf16.mxu0 %v7155_v32  ;;  %3853 = vmatpush1.bf16.msra.mxu1 %v7103_v6 }
 0x241   :  { %3855 = vmatprep.subr.bf16.mxu1 %v7105_v56 }
 0x243   :  { %3793 = vmatpush1.bf16.msra.mxu0 %v7156_v23 }
 0x244   :  { %3795 = vmatprep.subr.bf16.mxu0 %v7157_v48  ;;  %3857 = vmatpush1.bf16.msra.mxu1 %v7107_v26  ;;  %v7196_v26 = vld [vmem:[#allocation104_spill] sm:$0xff]  ;;  %v7197_v48 = vld [vmem:[#allocation18_spill] sm:$0xff] }
 0x245   :  { %3859 = vmatprep.subr.bf16.mxu1 %v7109_v28 }
 0x247   :  { %3797 = vmatpush1.bf16.msra.mxu0 %v7158_v52 }
 0x248   :  { %3799 = vmatprep.subr.bf16.mxu0 %v7159_v1  ;;  %3861 = vmatpush1.bf16.msra.mxu1 %v7111_v50  ;;  %v7160_v1 = vld [vmem:[#allocation102_spill] sm:$0xff]  ;;  %v7161_v50 = vld [vmem:[#allocation39_spill] sm:$0xff] }
 0x249   :  { %3863 = vmatprep.subr.bf16.mxu1 %v7113_v45  ;;  %v7162_v45 = vld [vmem:[#allocation38_spill] sm:$0xff] }
 0x24b   :  { %3801 = vmatpush1.bf16.msra.mxu0 %v5805_v22  ;;  %v7163_v22 = vld [vmem:[#allocation40_spill] sm:$0xff] }
 0x24c   :  { %3803 = vmatprep.subr.bf16.mxu0 %v5810_v42  ;;  %3865 = vmatpush1.bf16.msra.mxu1 %v7114_v60  ;;  %v7164_v60 = vld [vmem:[#allocation41_spill] sm:$0xff] }
 0x24d   :  { %3867 = vmatprep.subr.bf16.mxu1 %v7115_v12  ;;  %v7165_v12 = vld [vmem:[#allocation43_spill] sm:$0xff]  ;;  %v7174_v42 = vld [vmem:[#allocation61_spill] sm:$0xff] }
 0x24f   :  { %3805 = vmatpush1.bf16.msra.mxu0 %v5817_v15  ;;  %v7166_v15 = vld [vmem:[#allocation45_spill] sm:$0xff] }
 0x250   :  { %3807 = vmatprep.subr.bf16.mxu0 %v5822_v58  ;;  %3869 = vmatpush1.bf16.msra.mxu1 %v7116_v27  ;;  %v7167_v58 = vld [vmem:[#allocation47_spill] sm:$0xff]  ;;  %v7168_v27 = vld [vmem:[#allocation49_spill] sm:$0xff] }
 0x251   :  { %3871 = vmatprep.subr.bf16.mxu1 %v7117_v46  ;;  %v7169_v46 = vld [vmem:[#allocation51_spill] sm:$0xff] }
 0x253   :  { %3809 = vmatpush1.bf16.msra.mxu0 %v7160_v1  ;;  %v7170_v1 = vld [vmem:[#allocation53_spill] sm:$0xff] }
 0x254   :  { %3875 = vmatprep.subr.bf16.mxu0 %v7161_v50  ;;  %3873 = vmatpush1.bf16.msra.mxu1 %v7162_v45  ;;  %v7171_v50 = vld [vmem:[#allocation55_spill] sm:$0xff]  ;;  %v7172_v45 = vld [vmem:[#allocation57_spill] sm:$0xff] }
 0x255   :  { %3939 = vmatprep.subr.bf16.mxu1 %v7163_v22  ;;  %v7173_v22 = vld [vmem:[#allocation59_spill] sm:$0xff] }
 0x256   :  { %1408 = vmatmul.mubr.f32.vlgmr.msra.gmra.mrb[8].mxu0 %v5959_v0 }
 0x257   :  { %3877 = vmatpush1.bf16.msra.mxu0 %v7164_v60  ;;  %v7175_v60 = vld [vmem:[#allocation63_spill] sm:$0xff] }
 0x258   :  { %3879 = vmatprep.subr.bf16.mxu0 %v7165_v12  ;;  %v7176_v12 = vld [vmem:[#allocation65_spill] sm:$0xff] }
 0x25b   :  { %3881 = vmatpush1.bf16.msra.mxu0 %v7166_v15  ;;  %v7177_v15 = vld [vmem:[#allocation67_spill] sm:$0xff] }
 0x25c   :  { %3883 = vmatprep.subr.bf16.mxu0 %v7167_v58  ;;  %v7178_v58 = vld [vmem:[#allocation69_spill] sm:$0xff] }
 0x25f   :  { %3885 = vmatpush1.bf16.msra.mxu0 %v7168_v27  ;;  %v7179_v27 = vld [vmem:[#allocation71_spill] sm:$0xff] }
 0x260   :  { %3887 = vmatprep.subr.bf16.mxu0 %v7169_v46  ;;  %v7180_v46 = vld [vmem:[#allocation73_spill] sm:$0xff] }
 0x263   :  { %3889 = vmatpush1.bf16.msra.mxu0 %v7170_v1  ;;  %v7181_v1 = vld [vmem:[#allocation75_spill] sm:$0xff] }
 0x264   :  { %3891 = vmatprep.subr.bf16.mxu0 %v7171_v50  ;;  %v7182_v50 = vld [vmem:[#allocation77_spill] sm:$0xff] }
 0x267   :  { %3893 = vmatpush1.bf16.msra.mxu0 %v7172_v45  ;;  %v7183_v45 = vld [vmem:[#allocation79_spill] sm:$0xff] }
 0x268   :  { %3895 = vmatprep.subr.bf16.mxu0 %v7173_v22  ;;  %v7184_v22 = vld [vmem:[#allocation81_spill] sm:$0xff] }
 0x26b   :  { %3897 = vmatpush1.bf16.msra.mxu0 %v7174_v42  ;;  %v7185_v42 = vld [vmem:[#allocation83_spill] sm:$0xff] }
 0x26c   :  { %3899 = vmatprep.subr.bf16.mxu0 %v7175_v60  ;;  %v7186_v60 = vld [vmem:[#allocation85_spill] sm:$0xff] }
 0x26f   :  { %3901 = vmatpush1.bf16.msra.mxu0 %v7176_v12  ;;  %v7187_v12 = vld [vmem:[#allocation87_spill] sm:$0xff] }
 0x270   :  { %3903 = vmatprep.subr.bf16.mxu0 %v7177_v15  ;;  %v7188_v15 = vld [vmem:[#allocation89_spill] sm:$0xff] }
 0x273   :  { %3905 = vmatpush1.bf16.msra.mxu0 %v7178_v58  ;;  %v7189_v58 = vld [vmem:[#allocation91_spill] sm:$0xff] }
 0x274   :  { %3907 = vmatprep.subr.bf16.mxu0 %v7179_v27  ;;  %v7190_v27 = vld [vmem:[#allocation93_spill] sm:$0xff] }
 0x277   :  { %3909 = vmatpush1.bf16.msra.mxu0 %v7180_v46  ;;  %v7191_v46 = vld [vmem:[#allocation95_spill] sm:$0xff] }
 0x278   :  { %3911 = vmatprep.subr.bf16.mxu0 %v7181_v1  ;;  %v7192_v1 = vld [vmem:[#allocation97_spill] sm:$0xff] }
 0x27b   :  { %3913 = vmatpush1.bf16.msra.mxu0 %v7182_v50  ;;  %v7193_v50 = vld [vmem:[#allocation99_spill] sm:$0xff] }
 0x27c   :  { %3915 = vmatprep.subr.bf16.mxu0 %v7183_v45  ;;  %v7194_v45 = vld [vmem:[#allocation101_spill] sm:$0xff] }
 0x27f   :  { %3917 = vmatpush1.bf16.msra.mxu0 %v7184_v22  ;;  %v7195_v22 = vld [vmem:[#allocation21_spill] sm:$0xff] }
 0x280   :  { %3919 = vmatprep.subr.bf16.mxu0 %v7185_v42 }
 0x283   :  { %3921 = vmatpush1.bf16.msra.mxu0 %v7186_v60 }
 0x284   :  { %3923 = vmatprep.subr.bf16.mxu0 %v7187_v12 }
 0x287   :  { %3925 = vmatpush1.bf16.msra.mxu0 %v7188_v15 }
 0x288   :  { %3927 = vmatprep.subr.bf16.mxu0 %v7189_v58 }
 0x28b   :  { %3929 = vmatpush1.bf16.msra.mxu0 %v7190_v27 }
 0x28c   :  { %3931 = vmatprep.subr.bf16.mxu0 %v7191_v46 }
 0x28f   :  { %3933 = vmatpush1.bf16.msra.mxu0 %v7192_v1 }
 0x290   :  { %3935 = vmatprep.subr.bf16.mxu0 %v7193_v50 }
 0x293   :  { %3937 = vmatpush1.bf16.msra.mxu0 %v7194_v45 }
 0x294   :  { %4003 = vmatprep.subr.bf16.mxu0 %v7195_v22 }
 0x2e9   :  { %v1227_v42 = vpop.f32.mrb[6].mxu0  ;;  %v1298_v60 = vpop.f32.mrb[6].mxu1 }
 0x2ea   :  { %v1229_v52 = vpop.f32.mrb[7].mxu0  ;;  %v1300_v12 = vpop.f32.mrb[7].mxu1  ;;  %v1228_v15 = vadd.f32 %v1227_v42, %v5909_v47  ;;  %v1299_v50 = vadd.f32 %v1298_v60, %v7197_v48 }
 0x2eb   :  { %v1230_v58 = vadd.f32 %v1229_v52, %v5912_v38  ;;  %v1301_v45 = vadd.f32 %v1300_v12, %v5931_v59 }
 0x2ec   :  { %v1305_v28 = vrot.slane %v1228_v15, 7  ;;  %v1325_v56 = vrot.slane %v1299_v50, 7 }
 0x2ed   :  { %v1306_v27 = vrot.slane %v1230_v58, 7  ;;  %v1326_v6 = vrot.slane %v1301_v45, 7  ;;  %v7198_v45 = vld [vmem:[#allocation106_spill] sm:$0xff] }
 0x2ee   :  { %v1309_v46 = vadd.f32 %v1305_v28, %v5918_v62  ;;  %v1329_v42 = vadd.f32 %v1325_v56, %v5939_v11 }
 0x2ef   :  { %v1310_v1 = vadd.f32 %v1306_v27, %v7196_v26  ;;  %v1330_v52 = vadd.f32 %v1326_v6, %v5942_v43  ;;  %v7199_v26 = vld [vmem:[#allocation107_spill] sm:$0xff] }
 0x2f0   :  { %v3206_v23 = vmul.f32 -1.442695, %v1309_v46  ;;  %v3208_v15 = vmul.f32 -1.442695, %v1329_v42 }
 0x2f1   :  { %v3207_v22 = vmul.f32 -1.442695, %v1310_v1  ;;  %v3209_v58 = vmul.f32 -1.442695, %v1330_v52 }
 0x2f2   :  { %4995 = vpow2.f32 %v3206_v23 }
 0x2f3   :  { %4997 = vpow2.f32 %v3207_v22 }
 0x2f4   :  { %4999 = vpow2.f32 %v3208_v15 }
 0x2f5   :  { %5001 = vpow2.f32 %v3209_v58 }
 0x2fc   :  { %v4996_v38 = vpop.eup %4995 }
 0x2fd   :  { %v4998_v28 = vpop.eup %4997  ;;  %v1317_v27 = vadd.f32 1.0, %v4996_v38 }
 0x2fe   :  { %v1318_v60 = vadd.f32 1.0, %v4998_v28  ;;  %v5000_v12 = vpop.eup %4999 }
 0x2ff   :  { %5003 = vrcp.f32 %v1317_v27  ;;  %v5002_v1 = vpop.eup %5001  ;;  %v1337_v50 = vadd.f32 1.0, %v5000_v12 }
 0x300   :  { %5005 = vrcp.f32 %v1318_v60  ;;  %v1338_v56 = vadd.f32 1.0, %v5002_v1  ;;  %v1432_v1 = vrot.slane %v5959_v0, 7 }
 0x301   :  { %5007 = vrcp.f32 %v1337_v50 }
 0x302   :  { %5009 = vrcp.f32 %v1338_v56 }
 0x309   :  { %v5004_v52 = vpop.eup %5003 }
 0x30a   :  { %v5006_v47 = vpop.eup %5005 }
 0x30b   :  { %v5008_v27 = vpop.eup %5007 }
 0x30c   :  { %v5010_v60 = vpop.eup %5009  ;;  %v1426_v12 = vsub.f32 1.0, %v5008_v27 }
 0x329   :  { %v1409_v46 = vpop.f32.mrb[8].mxu0 }
 0x32a   :  { %v1410_v22 = vadd.f32 %v1409_v46, %v7198_v45  ;;  %v1411_v23 = vpop.f32.mrb[9].mxu0 }
 0x32b   :  { %v1412_v6 = vadd.f32 %v1411_v23, %v7199_v26  ;;  %v1433_v23 = vrot.slane %v5961_v35, 7 }
 0x32c   :  { %v1416_v42 = vrot.slane %v1410_v22, 7  ;;  %v1427_v22 = vsub.f32 1.0, %v5010_v60 }
 0x32d   :  { %v1417_v62 = vrot.slane %v1412_v6, 7 }
 0x32e   :  { %v1420_v15 = vmul.f32 %v5004_v52, %v1416_v42  ;;  %v1436_v42 = vmul.f32 %v5008_v27, %v1432_v1  ;;  %v7202_v27 = vld [vmem:[#allocation76_spill] sm:$0xff]  ;;  %v7205_v1 = vld [vmem:[#allocation26_spill] sm:$0xff] }
 0x32f   :  { %v1421_v38 = vmul.f32 %v5006_v47, %v1417_v62  ;;  %v1437_v62 = vmul.f32 %v5010_v60, %v1433_v23  ;;  %v7203_v60 = vld [vmem:[#allocation24_spill] sm:$0xff]  ;;  %v7208_v23 = vld [vmem:[#allocation86_spill] sm:$0xff] }
 0x330   :  { %v1422_v58 = vadd.f32 %v1420_v15, %v5951_v34 }
 0x331   :  { %v1423_v28 = vadd.f32 %v1421_v38, %v5954_v36 }
 0x332   :  { %5011 = vtanh.f32 %v1422_v58  ;;  %v7200_v58 = vld [vmem:[#allocation72_spill] sm:$0xff] }
 0x333   :  { %5013 = vtanh.f32 %v1423_v28  ;;  %v7201_v28 = vld [vmem:[#allocation23_spill] sm:$0xff] }
 0x33c   :  { %v5012_v46 = vpop.eup %5011 }
 0x33d   :  { %v5014_v6 = vpop.eup %5013  ;;  %v1428_v50 = vmul.f32 %v5012_v46, %v1426_v12  ;;  %v7204_v12 = vld [vmem:[#allocation80_spill] sm:$0xff] }
 0x33e   :  { %v1429_v56 = vmul.f32 %v5014_v6, %v1427_v22  ;;  %v7206_v46 = vld [vmem:[#allocation28_spill] sm:$0xff]  ;;  %v7207_v22 = vld [vmem:[#allocation29_spill] sm:$0xff] }
 0x33f   :  { %v6079_v47 = vadd.f32 %v1436_v42, %v1428_v50  ;;  %v7209_v6 = vld [vmem:[#allocation88_spill] sm:$0xff]  ;;  %v7210_v50 = vld [vmem:[#allocation30_spill] sm:$0xff]  ;;  %v7211_v42 = vld [vmem:[#allocation31_spill] sm:$0xff] }
 0x340   :  { %v6081_v52 = vadd.f32 %v1437_v62, %v1429_v56  ;;  %v7212_v56 = vld [vmem:[#allocation90_spill] sm:$0xff]  ;;  %v7213_v62 = vld [vmem:[#allocation92_spill] sm:$0xff] }
 0x341   :  { %v6085_v38 = vrot.slane %v6079_v47, 1 }
 0x342   :  { %v1443_v15 = vrot.slane %v6081_v52, 1 }
 0x344   :  { %1510 = vmatprep.mubr.f32.mxu1 %v1443_v15  ;;  %1581 = vmatprep.mubr.f32.mxu0 %v1443_v15 }
 0x345   :  { %1511 = vmatmul.mubr.f32.vlgmr.msra.gmra.mrb[8].mxu1 %v6085_v38  ;;  %1582 = vmatmul.mubr.f32.vlgmr.msra.gmra.mrb[10].mxu0 %v6085_v38 }
 0x346   :  { %3941 = vmatpush1.bf16.msra.mxu1 %v7134_v30  ;;  %1692 = vmatprep.mubr.f32.mxu1 %v1443_v15  ;;  %v7214_v15 = vld [vmem:[#allocation32_spill] sm:$0xff] }
 0x347   :  { %3943 = vmatprep.subr.bf16.mxu1 %v7135_v33  ;;  %4005 = vmatpush1.bf16.msra.mxu0 %v5527_v61 }
 0x348   :  { %4007 = vmatprep.subr.bf16.mxu0 %v5530_v2 }
 0x34a   :  { %3945 = vmatpush1.bf16.msra.mxu1 %v7136_v31 }
 0x34b   :  { %3947 = vmatprep.subr.bf16.mxu1 %v7137_v8  ;;  %4009 = vmatpush1.bf16.msra.mxu0 %v5535_v10 }
 0x34c   :  { %4011 = vmatprep.subr.bf16.mxu0 %v5538_v17 }
 0x34e   :  { %3949 = vmatpush1.bf16.msra.mxu1 %v7138_v19 }
 0x34f   :  { %3951 = vmatprep.subr.bf16.mxu1 %v7139_v51  ;;  %4013 = vmatpush1.bf16.msra.mxu0 %v5542_v24 }
 0x350   :  { %4015 = vmatprep.subr.bf16.mxu0 %v5545_v29 }
 0x352   :  { %3953 = vmatpush1.bf16.msra.mxu1 %v7140_v21 }
 0x353   :  { %3955 = vmatprep.subr.bf16.mxu1 %v7141_v13  ;;  %4017 = vmatpush1.bf16.msra.mxu0 %v5548_v37 }
 0x354   :  { %4019 = vmatprep.subr.bf16.mxu0 %v5551_v41 }
 0x356   :  { %3957 = vmatpush1.bf16.msra.mxu1 %v7142_v7 }
 0x357   :  { %3959 = vmatprep.subr.bf16.mxu1 %v7143_v14  ;;  %4021 = vmatpush1.bf16.msra.mxu0 %v5554_v49 }
 0x358   :  { %4023 = vmatprep.subr.bf16.mxu0 %v5557_v54 }
 0x35a   :  { %3961 = vmatpush1.bf16.msra.mxu1 %v7144_v20 }
 0x35b   :  { %3963 = vmatprep.subr.bf16.mxu1 %v7145_v53  ;;  %4025 = vmatpush1.bf16.msra.mxu0 %v5560_v63 }
 0x35c   :  { %4027 = vmatprep.subr.bf16.mxu0 %v5563_v5 }
 0x35e   :  { %3965 = vmatpush1.bf16.msra.mxu1 %v7146_v3 }
 0x35f   :  { %3967 = vmatprep.subr.bf16.mxu1 %v7147_v57  ;;  %4029 = vmatpush1.bf16.msra.mxu0 %v5571_v18 }
 0x360   :  { %4031 = vmatprep.subr.bf16.mxu0 %v5578_v25 }
 0x362   :  { %3969 = vmatpush1.bf16.msra.mxu1 %v7148_v40 }
 0x363   :  { %3971 = vmatprep.subr.bf16.mxu1 %v7200_v58  ;;  %4033 = vmatpush1.bf16.msra.mxu0 %v7201_v28 }
 0x364   :  { %4035 = vmatprep.subr.bf16.mxu0 %v5585_v39 }
 0x366   :  { %3973 = vmatpush1.bf16.msra.mxu1 %v7150_v44 }
 0x367   :  { %3975 = vmatprep.subr.bf16.mxu1 %v7202_v27  ;;  %4037 = vmatpush1.bf16.msra.mxu0 %v7203_v60 }
 0x368   :  { %4039 = vmatprep.subr.bf16.mxu0 %v5591_v55  ;;  %v7261_v55 = vld [vmem:[#allocation19_spill] sm:$0xff] }
 0x36a   :  { %3977 = vmatpush1.bf16.msra.mxu1 %v7152_v16 }
 0x36b   :  { %3979 = vmatprep.subr.bf16.mxu1 %v7204_v12  ;;  %4041 = vmatpush1.bf16.msra.mxu0 %v7205_v1 }
 0x36c   :  { %4043 = vmatprep.subr.bf16.mxu0 %v5597_v9 }
 0x36e   :  { %3981 = vmatpush1.bf16.msra.mxu1 %v7154_v4  ;;  %v7215_v4 = vld [vmem:[#allocation33_spill] sm:$0xff] }
 0x36f   :  { %3983 = vmatprep.subr.bf16.mxu1 %v7155_v32  ;;  %4045 = vmatpush1.bf16.msra.mxu0 %v7206_v46  ;;  %v7216_v32 = vld [vmem:[#allocation94_spill] sm:$0xff]  ;;  %v7217_v46 = vld [vmem:[#allocation96_spill] sm:$0xff] }
 0x370   :  { %4047 = vmatprep.subr.bf16.mxu0 %v7207_v22  ;;  %v7218_v22 = vld [vmem:[#allocation34_spill] sm:$0xff] }
 0x372   :  { %3985 = vmatpush1.bf16.msra.mxu1 %v7208_v23  ;;  %v7219_v23 = vld [vmem:[#allocation35_spill] sm:$0xff] }
 0x373   :  { %3987 = vmatprep.subr.bf16.mxu1 %v7209_v6  ;;  %4049 = vmatpush1.bf16.msra.mxu0 %v7210_v50  ;;  %v7220_v6 = vld [vmem:[#allocation98_spill] sm:$0xff]  ;;  %v7221_v50 = vld [vmem:[#allocation100_spill] sm:$0xff] }
 0x374   :  { %4051 = vmatprep.subr.bf16.mxu0 %v7211_v42  ;;  %v7222_v42 = vld [vmem:[#allocation36_spill] sm:$0xff] }
 0x376   :  { %3989 = vmatpush1.bf16.msra.mxu1 %v7212_v56  ;;  %v7223_v56 = vld [vmem:[#allocation37_spill] sm:$0xff] }
 0x377   :  { %3991 = vmatprep.subr.bf16.mxu1 %v7213_v62  ;;  %4053 = vmatpush1.bf16.msra.mxu0 %v7214_v15  ;;  %v7224_v62 = vld [vmem:[#allocation102_spill] sm:$0xff]  ;;  %v7225_v15 = vld [vmem:[#allocation39_spill] sm:$0xff] }
 0x378   :  { %4055 = vmatprep.subr.bf16.mxu0 %v7215_v4  ;;  %v7226_v4 = vld [vmem:[#allocation38_spill] sm:$0xff] }
 0x37a   :  { %3993 = vmatpush1.bf16.msra.mxu1 %v7216_v32  ;;  %v7227_v32 = vld [vmem:[#allocation40_spill] sm:$0xff] }
 0x37b   :  { %3995 = vmatprep.subr.bf16.mxu1 %v7217_v46  ;;  %4057 = vmatpush1.bf16.msra.mxu0 %v7218_v22  ;;  %v7228_v22 = vld [vmem:[#allocation41_spill] sm:$0xff] }
 0x37c   :  { %4059 = vmatprep.subr.bf16.mxu0 %v7219_v23  ;;  %v7229_v23 = vld [vmem:[#allocation43_spill] sm:$0xff] }
 0x37e   :  { %3997 = vmatpush1.bf16.msra.mxu1 %v7220_v6  ;;  %v7230_v6 = vld [vmem:[#allocation45_spill] sm:$0xff] }
 0x37f   :  { %3999 = vmatprep.subr.bf16.mxu1 %v7221_v50  ;;  %4061 = vmatpush1.bf16.msra.mxu0 %v7222_v42  ;;  %v7231_v50 = vld [vmem:[#allocation47_spill] sm:$0xff]  ;;  %v7232_v42 = vld [vmem:[#allocation49_spill] sm:$0xff] }
 0x380   :  { %4063 = vmatprep.subr.bf16.mxu0 %v7223_v56  ;;  %v7233_v56 = vld [vmem:[#allocation51_spill] sm:$0xff] }
 0x382   :  { %4001 = vmatpush1.bf16.msra.mxu1 %v7224_v62  ;;  %v7234_v62 = vld [vmem:[#allocation53_spill] sm:$0xff] }
 0x383   :  { %4067 = vmatprep.subr.bf16.mxu1 %v7225_v15  ;;  %4065 = vmatpush1.bf16.msra.mxu0 %v7226_v4  ;;  %v7235_v15 = vld [vmem:[#allocation55_spill] sm:$0xff]  ;;  %v7236_v4 = vld [vmem:[#allocation57_spill] sm:$0xff] }
 0x384   :  { %4131 = vmatprep.subr.bf16.mxu0 %v7227_v32  ;;  %v7237_v32 = vld [vmem:[#allocation59_spill] sm:$0xff] }
 0x385   :  { %1693 = vmatmul.mubr.f32.vlgmr.msra.gmra.mrb[10].mxu1 %v6085_v38  ;;  %v7238_v38 = vld [vmem:[#allocation61_spill] sm:$0xff] }
 0x386   :  { %4069 = vmatpush1.bf16.msra.mxu1 %v7228_v22  ;;  %v7239_v22 = vld [vmem:[#allocation63_spill] sm:$0xff] }
 0x387   :  { %4071 = vmatprep.subr.bf16.mxu1 %v7229_v23  ;;  %v7240_v23 = vld [vmem:[#allocation65_spill] sm:$0xff] }
 0x38a   :  { %4073 = vmatpush1.bf16.msra.mxu1 %v7230_v6  ;;  %v7241_v6 = vld [vmem:[#allocation67_spill] sm:$0xff] }
 0x38b   :  { %4075 = vmatprep.subr.bf16.mxu1 %v7231_v50  ;;  %v7242_v50 = vld [vmem:[#allocation69_spill] sm:$0xff] }
 0x38e   :  { %4077 = vmatpush1.bf16.msra.mxu1 %v7232_v42  ;;  %v7243_v42 = vld [vmem:[#allocation71_spill] sm:$0xff] }
 0x38f   :  { %4079 = vmatprep.subr.bf16.mxu1 %v7233_v56  ;;  %v7244_v56 = vld [vmem:[#allocation73_spill] sm:$0xff] }
 0x392   :  { %4081 = vmatpush1.bf16.msra.mxu1 %v7234_v62  ;;  %v7245_v62 = vld [vmem:[#allocation75_spill] sm:$0xff] }
 0x393   :  { %4083 = vmatprep.subr.bf16.mxu1 %v7235_v15  ;;  %v7246_v15 = vld [vmem:[#allocation77_spill] sm:$0xff] }
 0x396   :  { %4085 = vmatpush1.bf16.msra.mxu1 %v7236_v4  ;;  %v7247_v4 = vld [vmem:[#allocation79_spill] sm:$0xff] }
 0x397   :  { %4087 = vmatprep.subr.bf16.mxu1 %v7237_v32  ;;  %v7248_v32 = vld [vmem:[#allocation81_spill] sm:$0xff] }
 0x39a   :  { %4089 = vmatpush1.bf16.msra.mxu1 %v7238_v38  ;;  %v7249_v38 = vld [vmem:[#allocation83_spill] sm:$0xff] }
 0x39b   :  { %4091 = vmatprep.subr.bf16.mxu1 %v7239_v22  ;;  %v7250_v22 = vld [vmem:[#allocation85_spill] sm:$0xff] }
 0x39e   :  { %4093 = vmatpush1.bf16.msra.mxu1 %v7240_v23  ;;  %v7251_v23 = vld [vmem:[#allocation87_spill] sm:$0xff] }
 0x39f   :  { %4095 = vmatprep.subr.bf16.mxu1 %v7241_v6  ;;  %v7252_v6 = vld [vmem:[#allocation89_spill] sm:$0xff] }
 0x3a2   :  { %4097 = vmatpush1.bf16.msra.mxu1 %v7242_v50  ;;  %v7253_v50 = vld [vmem:[#allocation91_spill] sm:$0xff] }
 0x3a3   :  { %4099 = vmatprep.subr.bf16.mxu1 %v7243_v42  ;;  %v7254_v42 = vld [vmem:[#allocation93_spill] sm:$0xff] }
 0x3a6   :  { %4101 = vmatpush1.bf16.msra.mxu1 %v7244_v56  ;;  %v7255_v56 = vld [vmem:[#allocation95_spill] sm:$0xff] }
 0x3a7   :  { %4103 = vmatprep.subr.bf16.mxu1 %v7245_v62  ;;  %v7256_v62 = vld [vmem:[#allocation97_spill] sm:$0xff] }
 0x3aa   :  { %4105 = vmatpush1.bf16.msra.mxu1 %v7246_v15  ;;  %v7257_v15 = vld [vmem:[#allocation99_spill] sm:$0xff] }
 0x3ab   :  { %4107 = vmatprep.subr.bf16.mxu1 %v7247_v4  ;;  %v7258_v4 = vld [vmem:[#allocation101_spill] sm:$0xff] }
 0x3ae   :  { %4109 = vmatpush1.bf16.msra.mxu1 %v7248_v32  ;;  %v7259_v32 = vld [vmem:[#allocation21_spill] sm:$0xff] }
 0x3af   :  { %4111 = vmatprep.subr.bf16.mxu1 %v7249_v38 }
 0x3b2   :  { %4113 = vmatpush1.bf16.msra.mxu1 %v7250_v22 }
 0x3b3   :  { %4115 = vmatprep.subr.bf16.mxu1 %v7251_v23 }
 0x3b6   :  { %4117 = vmatpush1.bf16.msra.mxu1 %v7252_v6 }
 0x3b7   :  { %4119 = vmatprep.subr.bf16.mxu1 %v7253_v50 }
 0x3ba   :  { %4121 = vmatpush1.bf16.msra.mxu1 %v7254_v42 }
 0x3bb   :  { %4123 = vmatprep.subr.bf16.mxu1 %v7255_v56 }
 0x3be   :  { %4125 = vmatpush1.bf16.msra.mxu1 %v7256_v62 }
 0x3bf   :  { %4127 = vmatprep.subr.bf16.mxu1 %v7257_v15 }
 0x3c2   :  { %4129 = vmatpush1.bf16.msra.mxu1 %v7258_v4 }
 0x3c3   :  { %4195 = vmatprep.subr.bf16.mxu1 %v7259_v32 }
 0x418   :  { %v1512_v38 = vpop.f32.mrb[8].mxu1  ;;  %v1583_v22 = vpop.f32.mrb[10].mxu0 }
 0x419   :  { %v1584_v23 = vadd.f32 %v1583_v22, %v7197_v48  ;;  %v1514_v46 = vpop.f32.mrb[9].mxu1  ;;  %v1585_v6 = vpop.f32.mrb[11].mxu0  ;;  %v7260_v22 = vld [vmem:[#allocation20_spill] sm:$0xff] }
 0x41a   :  { %v1586_v50 = vadd.f32 %v1585_v6, %v5931_v59  ;;  %v1513_v48 = vadd.f32 %v1512_v38, %v7260_v22  ;;  %v1515_v6 = vadd.f32 %v1514_v46, %v7261_v55 }
 0x41b   :  { %v1610_v9 = vrot.slane %v1584_v23, 6 }
 0x41c   :  { %v1611_v42 = vrot.slane %v1586_v50, 6  ;;  %v1590_v23 = vrot.slane %v1513_v48, 6  ;;  %v1591_v50 = vrot.slane %v1515_v6, 6 }
 0x41d   :  { %v1614_v56 = vadd.f32 %v1610_v9, %v5939_v11  ;;  %v1715_v9 = vrot.slane %v6079_v47, 7 }
 0x41e   :  { %v1615_v62 = vadd.f32 %v1611_v42, %v5942_v43  ;;  %v7262_v42 = vld [vmem:[#allocation103_spill] sm:$0xff] }
 0x41f   :  { %v3212_v1 = vmul.f32 -1.442695, %v1614_v56  ;;  %v1594_v56 = vadd.f32 %v1590_v23, %v7262_v42 }
 0x420   :  { %v3213_v15 = vmul.f32 -1.442695, %v1615_v62  ;;  %v7263_v62 = vld [vmem:[#allocation104_spill] sm:$0xff] }
 0x421   :  { %5015 = vpow2.f32 %v3212_v1  ;;  %v1595_v1 = vadd.f32 %v1591_v50, %v7263_v62 }
 0x422   :  { %5017 = vpow2.f32 %v3213_v15  ;;  %v1716_v15 = vrot.slane %v6081_v52, 7 }
 0x423   :  { %v3211_v59 = vmul.f32 -1.442695, %v1595_v1 }
 0x42b   :  { %v5016_v4 = vpop.eup %5015 }
 0x42c   :  { %v1622_v32 = vadd.f32 1.0, %v5016_v4  ;;  %v5018_v12 = vpop.eup %5017 }
 0x42d   :  { %v1623_v16 = vadd.f32 1.0, %v5018_v12  ;;  %v3210_v12 = vmul.f32 -1.442695, %v1594_v56 }
 0x42e   :  { %5019 = vrcp.f32 %v1622_v32 }
 0x42f   :  { %5021 = vrcp.f32 %v1623_v16 }
 0x430   :  { %5023 = vpow2.f32 %v3210_v12 }
 0x431   :  { %5025 = vpow2.f32 %v3211_v59 }
 0x438   :  { %v5020_v11 = vpop.eup %5019 }
 0x439   :  { %v1719_v4 = vmul.f32 %v5020_v11, %v1715_v9  ;;  %v5022_v43 = vpop.eup %5021 }
 0x43a   :  { %v1720_v32 = vmul.f32 %v5022_v43, %v1716_v15  ;;  %v5024_v16 = vpop.eup %5023 }
 0x43b   :  { %v5026_v46 = vpop.eup %5025  ;;  %v1602_v48 = vadd.f32 1.0, %v5024_v16  ;;  %v1711_v16 = vsub.f32 1.0, %v5020_v11 }
 0x43c   :  { %v1603_v38 = vadd.f32 1.0, %v5026_v46 }
 0x43d   :  { %5027 = vrcp.f32 %v1602_v48  ;;  %v1712_v48 = vsub.f32 1.0, %v5022_v43 }
 0x43e   :  { %5029 = vrcp.f32 %v1603_v38 }
 0x447   :  { %v5028_v9 = vpop.eup %5027 }
 0x448   :  { %v5030_v15 = vpop.eup %5029 }
 0x458   :  { %v1694_v6 = vpop.f32.mrb[10].mxu1 }
 0x459   :  { %v1695_v23 = vadd.f32 %v1694_v6, %v7198_v45  ;;  %v1696_v42 = vpop.f32.mrb[11].mxu1 }
 0x45a   :  { %v1697_v50 = vadd.f32 %v1696_v42, %v7199_v26  ;;  %v3138_v42 = vsel %vm210_vm0, %v5959_v0, %v6079_v47  ;;  %v7264_v0 = vld [vmem:[#allocation25_spill] sm:$0xff]  ;;  %v7267_v47 = vld [vmem:[#allocation26_spill] sm:$0xff] }
 0x45b   :  { %v1701_v62 = vrot.slane %v1695_v23, 6 }
 0x45c   :  { %v1702_v55 = vrot.slane %v1697_v50, 6  ;;  %v7270_v50 = vld [vmem:[#allocation84_spill] sm:$0xff] }
 0x45d   :  { %v1705_v56 = vmul.f32 %v5028_v9, %v1701_v62  ;;  %v7271_v9 = vld [vmem:[#allocation28_spill] sm:$0xff] }
 0x45e   :  { %v1706_v1 = vmul.f32 %v5030_v15, %v1702_v55  ;;  %v3139_v55 = vsel %vm210_vm0, %v5961_v35, %v6081_v52  ;;  %v7265_v35 = vld [vmem:[#allocation78_spill] sm:$0xff]  ;;  %v7268_v52 = vld [vmem:[#allocation27_spill] sm:$0xff]  ;;  %v7272_v15 = vld [vmem:[#allocation29_spill] sm:$0xff] }
 0x45f   :  { %v1707_v59 = vadd.f32 %v1705_v56, %v5951_v34  ;;  %v7273_v56 = vld [vmem:[#allocation86_spill] sm:$0xff] }
 0x460   :  { %v1708_v12 = vadd.f32 %v1706_v1, %v5954_v36  ;;  %v7274_v1 = vld [vmem:[#allocation88_spill] sm:$0xff] }
 0x461   :  { %5031 = vtanh.f32 %v1707_v59  ;;  %v7275_v59 = vld [vmem:[#allocation30_spill] sm:$0xff] }
 0x462   :  { %5033 = vtanh.f32 %v1708_v12  ;;  %v7276_v12 = vld [vmem:[#allocation31_spill] sm:$0xff] }
 0x46b   :  { %v5032_v46 = vpop.eup %5031 }
 0x46c   :  { %v5034_v38 = vpop.eup %5033  ;;  %v1713_v6 = vmul.f32 %v5032_v46, %v1711_v16  ;;  %v7277_v16 = vld [vmem:[#allocation90_spill] sm:$0xff]  ;;  %v7278_v46 = vld [vmem:[#allocation92_spill] sm:$0xff] }
 0x46d   :  { %v1714_v45 = vmul.f32 %v5034_v38, %v1712_v48  ;;  %v7279_v48 = vld [vmem:[#allocation32_spill] sm:$0xff]  ;;  %v7280_v38 = vld [vmem:[#allocation33_spill] sm:$0xff] }
 0x46e   :  { %v6200_v22 = vadd.f32 %v1719_v4, %v1713_v6  ;;  %v7281_v6 = vld [vmem:[#allocation94_spill] sm:$0xff] }
 0x46f   :  { %v6205_v62 = vadd.f32 %v1720_v32, %v1714_v45  ;;  %v7266_v45 = vld [vmem:[#allocation80_spill] sm:$0xff]  ;;  %v7269_v32 = vld [vmem:[#allocation82_spill] sm:$0xff] }
 0x470   :  { %v6212_v11 = vsel %vm213_vm1, %v3138_v42, %v6200_v22  ;;  %v6220_v23 = vrot.slane %v6200_v22, 2  ;;  %v7282_v42 = vld [vmem:[#allocation96_spill] sm:$0xff] }
 0x471   :  { %v1726_v43 = vrot.slane %v6205_v62, 2  ;;  %v6217_v4 = vsel %vm213_vm1, %v3139_v55, %v6205_v62  ;;  %v7283_v55 = vld [vmem:[#allocation34_spill] sm:$0xff] }
 0x473   :  { %1793 = vmatprep.mubr.f32.mxu0 %v1726_v43  ;;  %1864 = vmatprep.mubr.f32.mxu1 %v1726_v43 }
 0x474   :  { %1794 = vmatmul.mubr.f32.vlgmr.msra.gmra.mrb[12].mxu0 %v6220_v23  ;;  %1865 = vmatmul.mubr.f32.vlgmr.msra.gmra.mrb[12].mxu1 %v6220_v23 }
 0x475   :  { %4133 = vmatpush1.bf16.msra.mxu0 %v7134_v30  ;;  %1975 = vmatprep.mubr.f32.mxu0 %v1726_v43  ;;  %v7284_v43 = vld [vmem:[#allocation35_spill] sm:$0xff] }
 0x476   :  { %4135 = vmatprep.subr.bf16.mxu0 %v7135_v33  ;;  %4197 = vmatpush1.bf16.msra.mxu1 %v5527_v61 }
 0x477   :  { %4199 = vmatprep.subr.bf16.mxu1 %v5530_v2 }
 0x479   :  { %4137 = vmatpush1.bf16.msra.mxu0 %v7136_v31 }
 0x47a   :  { %4139 = vmatprep.subr.bf16.mxu0 %v7137_v8  ;;  %4201 = vmatpush1.bf16.msra.mxu1 %v5535_v10 }
 0x47b   :  { %4203 = vmatprep.subr.bf16.mxu1 %v5538_v17 }
 0x47d   :  { %4141 = vmatpush1.bf16.msra.mxu0 %v7138_v19 }
 0x47e   :  { %4143 = vmatprep.subr.bf16.mxu0 %v7139_v51  ;;  %4205 = vmatpush1.bf16.msra.mxu1 %v5542_v24 }
 0x47f   :  { %4207 = vmatprep.subr.bf16.mxu1 %v5545_v29 }
 0x481   :  { %4145 = vmatpush1.bf16.msra.mxu0 %v7140_v21 }
 0x482   :  { %4147 = vmatprep.subr.bf16.mxu0 %v7141_v13  ;;  %4209 = vmatpush1.bf16.msra.mxu1 %v5548_v37 }
 0x483   :  { %4211 = vmatprep.subr.bf16.mxu1 %v5551_v41 }
 0x485   :  { %4149 = vmatpush1.bf16.msra.mxu0 %v7142_v7 }
 0x486   :  { %4151 = vmatprep.subr.bf16.mxu0 %v7143_v14  ;;  %4213 = vmatpush1.bf16.msra.mxu1 %v5554_v49 }
 0x487   :  { %4215 = vmatprep.subr.bf16.mxu1 %v5557_v54 }
 0x489   :  { %4153 = vmatpush1.bf16.msra.mxu0 %v7144_v20 }
 0x48a   :  { %4155 = vmatprep.subr.bf16.mxu0 %v7145_v53  ;;  %4217 = vmatpush1.bf16.msra.mxu1 %v5560_v63 }
 0x48b   :  { %4219 = vmatprep.subr.bf16.mxu1 %v5563_v5 }
 0x48d   :  { %4157 = vmatpush1.bf16.msra.mxu0 %v7146_v3 }
 0x48e   :  { %4159 = vmatprep.subr.bf16.mxu0 %v7147_v57  ;;  %4221 = vmatpush1.bf16.msra.mxu1 %v5571_v18 }
 0x48f   :  { %4223 = vmatprep.subr.bf16.mxu1 %v5578_v25 }
 0x491   :  { %4161 = vmatpush1.bf16.msra.mxu0 %v7148_v40 }
 0x492   :  { %4163 = vmatprep.subr.bf16.mxu0 %v7200_v58  ;;  %4225 = vmatpush1.bf16.msra.mxu1 %v7201_v28 }
 0x493   :  { %4227 = vmatprep.subr.bf16.mxu1 %v5585_v39 }
 0x495   :  { %4165 = vmatpush1.bf16.msra.mxu0 %v7150_v44 }
 0x496   :  { %4167 = vmatprep.subr.bf16.mxu0 %v7202_v27  ;;  %4229 = vmatpush1.bf16.msra.mxu1 %v7203_v60 }
 0x497   :  { %4231 = vmatprep.subr.bf16.mxu1 %v7264_v0 }
 0x499   :  { %4169 = vmatpush1.bf16.msra.mxu0 %v7265_v35  ;;  %v7330_v35 = vld [vmem:[#allocation19_spill] sm:$0xff] }
 0x49a   :  { %4171 = vmatprep.subr.bf16.mxu0 %v7266_v45  ;;  %4233 = vmatpush1.bf16.msra.mxu1 %v7267_v47 }
 0x49b   :  { %4235 = vmatprep.subr.bf16.mxu1 %v7268_v52 }
 0x49d   :  { %4173 = vmatpush1.bf16.msra.mxu0 %v7269_v32  ;;  %v7328_v32 = vld [vmem:[#allocation109_spill] sm:$0xff] }
 0x49e   :  { %4175 = vmatprep.subr.bf16.mxu0 %v7270_v50  ;;  %4237 = vmatpush1.bf16.msra.mxu1 %v7271_v9  ;;  %v7327_v50 = vld [vmem:[#allocation108_spill] sm:$0xff] }
 0x49f   :  { %4239 = vmatprep.subr.bf16.mxu1 %v7272_v15  ;;  %v7326_v15 = vld [vmem:[#allocation105_spill] sm:$0xff] }
 0x4a1   :  { %4177 = vmatpush1.bf16.msra.mxu0 %v7273_v56 }
 0x4a2   :  { %4179 = vmatprep.subr.bf16.mxu0 %v7274_v1  ;;  %4241 = vmatpush1.bf16.msra.mxu1 %v7275_v59  ;;  %v7285_v1 = vld [vmem:[#allocation98_spill] sm:$0xff]  ;;  %v7286_v59 = vld [vmem:[#allocation100_spill] sm:$0xff] }
 0x4a3   :  { %4243 = vmatprep.subr.bf16.mxu1 %v7276_v12  ;;  %v7287_v12 = vld [vmem:[#allocation36_spill] sm:$0xff] }
 0x4a5   :  { %4181 = vmatpush1.bf16.msra.mxu0 %v7277_v16  ;;  %v7288_v16 = vld [vmem:[#allocation37_spill] sm:$0xff] }
 0x4a6   :  { %4183 = vmatprep.subr.bf16.mxu0 %v7278_v46  ;;  %4245 = vmatpush1.bf16.msra.mxu1 %v7279_v48  ;;  %v7289_v46 = vld [vmem:[#allocation102_spill] sm:$0xff]  ;;  %v7290_v48 = vld [vmem:[#allocation39_spill] sm:$0xff] }
 0x4a7   :  { %4247 = vmatprep.subr.bf16.mxu1 %v7280_v38  ;;  %v7291_v38 = vld [vmem:[#allocation38_spill] sm:$0xff] }
 0x4a9   :  { %4185 = vmatpush1.bf16.msra.mxu0 %v7281_v6  ;;  %v7292_v6 = vld [vmem:[#allocation40_spill] sm:$0xff] }
 0x4aa   :  { %4187 = vmatprep.subr.bf16.mxu0 %v7282_v42  ;;  %4249 = vmatpush1.bf16.msra.mxu1 %v7283_v55  ;;  %v7293_v55 = vld [vmem:[#allocation41_spill] sm:$0xff]  ;;  %v7325_v42 = vld [vmem:[#allocation18_spill] sm:$0xff] }
 0x4ab   :  { %4251 = vmatprep.subr.bf16.mxu1 %v7284_v43  ;;  %v7294_v43 = vld [vmem:[#allocation43_spill] sm:$0xff] }
 0x4ad   :  { %4189 = vmatpush1.bf16.msra.mxu0 %v7285_v1  ;;  %v7295_v1 = vld [vmem:[#allocation45_spill] sm:$0xff] }
 0x4ae   :  { %4191 = vmatprep.subr.bf16.mxu0 %v7286_v59  ;;  %4253 = vmatpush1.bf16.msra.mxu1 %v7287_v12  ;;  %v7296_v59 = vld [vmem:[#allocation47_spill] sm:$0xff]  ;;  %v7297_v12 = vld [vmem:[#allocation49_spill] sm:$0xff] }
 0x4af   :  { %4255 = vmatprep.subr.bf16.mxu1 %v7288_v16  ;;  %v7298_v16 = vld [vmem:[#allocation51_spill] sm:$0xff] }
 0x4b1   :  { %4193 = vmatpush1.bf16.msra.mxu0 %v7289_v46  ;;  %v7299_v46 = vld [vmem:[#allocation53_spill] sm:$0xff] }
 0x4b2   :  { %4259 = vmatprep.subr.bf16.mxu0 %v7290_v48  ;;  %4257 = vmatpush1.bf16.msra.mxu1 %v7291_v38  ;;  %v7300_v48 = vld [vmem:[#allocation55_spill] sm:$0xff]  ;;  %v7301_v38 = vld [vmem:[#allocation57_spill] sm:$0xff] }
 0x4b3   :  { %4323 = vmatprep.subr.bf16.mxu1 %v7292_v6  ;;  %v7302_v6 = vld [vmem:[#allocation59_spill] sm:$0xff] }
 0x4b4   :  { %1976 = vmatmul.mubr.f32.vlgmr.msra.gmra.mrb[14].mxu0 %v6220_v23  ;;  %v7303_v23 = vld [vmem:[#allocation61_spill] sm:$0xff] }
 0x4b5   :  { %4261 = vmatpush1.bf16.msra.mxu0 %v7293_v55  ;;  %v7304_v55 = vld [vmem:[#allocation63_spill] sm:$0xff] }
 0x4b6   :  { %4263 = vmatprep.subr.bf16.mxu0 %v7294_v43  ;;  %v7305_v43 = vld [vmem:[#allocation65_spill] sm:$0xff] }
 0x4b9   :  { %4265 = vmatpush1.bf16.msra.mxu0 %v7295_v1  ;;  %v7306_v1 = vld [vmem:[#allocation67_spill] sm:$0xff] }
 0x4ba   :  { %4267 = vmatprep.subr.bf16.mxu0 %v7296_v59  ;;  %v7307_v59 = vld [vmem:[#allocation69_spill] sm:$0xff] }
 0x4bd   :  { %4269 = vmatpush1.bf16.msra.mxu0 %v7297_v12  ;;  %v7308_v12 = vld [vmem:[#allocation71_spill] sm:$0xff] }
 0x4be   :  { %4271 = vmatprep.subr.bf16.mxu0 %v7298_v16  ;;  %v7309_v16 = vld [vmem:[#allocation73_spill] sm:$0xff] }
 0x4c1   :  { %4273 = vmatpush1.bf16.msra.mxu0 %v7299_v46  ;;  %v7310_v46 = vld [vmem:[#allocation75_spill] sm:$0xff] }
 0x4c2   :  { %4275 = vmatprep.subr.bf16.mxu0 %v7300_v48  ;;  %v7311_v48 = vld [vmem:[#allocation77_spill] sm:$0xff] }
 0x4c5   :  { %4277 = vmatpush1.bf16.msra.mxu0 %v7301_v38  ;;  %v7312_v38 = vld [vmem:[#allocation79_spill] sm:$0xff] }
 0x4c6   :  { %4279 = vmatprep.subr.bf16.mxu0 %v7302_v6  ;;  %v7313_v6 = vld [vmem:[#allocation81_spill] sm:$0xff] }
 0x4c9   :  { %4281 = vmatpush1.bf16.msra.mxu0 %v7303_v23  ;;  %v7314_v23 = vld [vmem:[#allocation83_spill] sm:$0xff] }
 0x4ca   :  { %4283 = vmatprep.subr.bf16.mxu0 %v7304_v55  ;;  %v7315_v55 = vld [vmem:[#allocation85_spill] sm:$0xff] }
 0x4cd   :  { %4285 = vmatpush1.bf16.msra.mxu0 %v7305_v43  ;;  %v7316_v43 = vld [vmem:[#allocation87_spill] sm:$0xff] }
 0x4ce   :  { %4287 = vmatprep.subr.bf16.mxu0 %v7306_v1  ;;  %v7317_v1 = vld [vmem:[#allocation89_spill] sm:$0xff] }
 0x4d1   :  { %4289 = vmatpush1.bf16.msra.mxu0 %v7307_v59  ;;  %v7318_v59 = vld [vmem:[#allocation91_spill] sm:$0xff] }
 0x4d2   :  { %4291 = vmatprep.subr.bf16.mxu0 %v7308_v12  ;;  %v7319_v12 = vld [vmem:[#allocation93_spill] sm:$0xff] }
 0x4d5   :  { %4293 = vmatpush1.bf16.msra.mxu0 %v7309_v16  ;;  %v7320_v16 = vld [vmem:[#allocation95_spill] sm:$0xff] }
 0x4d6   :  { %4295 = vmatprep.subr.bf16.mxu0 %v7310_v46  ;;  %v7321_v46 = vld [vmem:[#allocation97_spill] sm:$0xff] }
 0x4d9   :  { %4297 = vmatpush1.bf16.msra.mxu0 %v7311_v48  ;;  %v7322_v48 = vld [vmem:[#allocation99_spill] sm:$0xff] }
 0x4da   :  { %4299 = vmatprep.subr.bf16.mxu0 %v7312_v38  ;;  %v7323_v38 = vld [vmem:[#allocation101_spill] sm:$0xff] }
 0x4dd   :  { %4301 = vmatpush1.bf16.msra.mxu0 %v7313_v6  ;;  %v7324_v6 = vld [vmem:[#allocation21_spill] sm:$0xff] }
 0x4de   :  { %4303 = vmatprep.subr.bf16.mxu0 %v7314_v23 }
 0x4e1   :  { %4305 = vmatpush1.bf16.msra.mxu0 %v7315_v55 }
 0x4e2   :  { %4307 = vmatprep.subr.bf16.mxu0 %v7316_v43 }
 0x4e5   :  { %4309 = vmatpush1.bf16.msra.mxu0 %v7317_v1 }
 0x4e6   :  { %4311 = vmatprep.subr.bf16.mxu0 %v7318_v59 }
 0x4e9   :  { %4313 = vmatpush1.bf16.msra.mxu0 %v7319_v12 }
 0x4ea   :  { %4315 = vmatprep.subr.bf16.mxu0 %v7320_v16 }
 0x4ed   :  { %4317 = vmatpush1.bf16.msra.mxu0 %v7321_v46 }
 0x4ee   :  { %4319 = vmatprep.subr.bf16.mxu0 %v7322_v48 }
 0x4f1   :  { %4321 = vmatpush1.bf16.msra.mxu0 %v7323_v38 }
 0x4f2   :  { %4387 = vmatprep.subr.bf16.mxu0 %v7324_v6 }
 0x547   :  { %v1795_v23 = vpop.f32.mrb[12].mxu0  ;;  %v1866_v55 = vpop.f32.mrb[12].mxu1 }
 0x548   :  { %v1867_v43 = vadd.f32 %v1866_v55, %v7325_v42  ;;  %v1797_v56 = vpop.f32.mrb[13].mxu0  ;;  %v1868_v1 = vpop.f32.mrb[13].mxu1  ;;  %v7329_v55 = vld [vmem:[#allocation20_spill] sm:$0xff] }
 0x549   :  { %v1869_v59 = vadd.f32 %v1868_v1, %v7326_v15  ;;  %v1796_v42 = vadd.f32 %v1795_v23, %v7329_v55  ;;  %v1798_v1 = vadd.f32 %v1797_v56, %v7330_v35 }
 0x54a   :  { %v1893_v9 = vrot.slane %v1867_v43, 5 }
 0x54b   :  { %v1894_v12 = vrot.slane %v1869_v59, 5  ;;  %v1873_v43 = vrot.slane %v1796_v42, 5  ;;  %v1874_v59 = vrot.slane %v1798_v1, 5  ;;  %v7333_v1 = vld [vmem:[#allocation106_spill] sm:$0xff] }
 0x54c   :  { %v1897_v16 = vadd.f32 %v1893_v9, %v7327_v50  ;;  %v1998_v9 = vrot.slane %v6200_v22, 7 }
 0x54d   :  { %v1898_v46 = vadd.f32 %v1894_v12, %v7328_v32  ;;  %v7331_v12 = vld [vmem:[#allocation103_spill] sm:$0xff] }
 0x54e   :  { %v3216_v52 = vmul.f32 -1.442695, %v1897_v16  ;;  %v1877_v16 = vadd.f32 %v1873_v43, %v7331_v12 }
 0x54f   :  { %v3217_v48 = vmul.f32 -1.442695, %v1898_v46  ;;  %v7332_v46 = vld [vmem:[#allocation104_spill] sm:$0xff] }
 0x550   :  { %5035 = vpow2.f32 %v3216_v52  ;;  %v1878_v52 = vadd.f32 %v1874_v59, %v7332_v46 }
 0x551   :  { %5037 = vpow2.f32 %v3217_v48  ;;  %v1999_v48 = vrot.slane %v6205_v62, 7 }
 0x552   :  { %v3215_v15 = vmul.f32 -1.442695, %v1878_v52 }
 0x55a   :  { %v5036_v38 = vpop.eup %5035 }
 0x55b   :  { %v1905_v6 = vadd.f32 1.0, %v5036_v38  ;;  %v5038_v47 = vpop.eup %5037 }
 0x55c   :  { %v1906_v45 = vadd.f32 1.0, %v5038_v47  ;;  %v3214_v47 = vmul.f32 -1.442695, %v1877_v16 }
 0x55d   :  { %5039 = vrcp.f32 %v1905_v6 }
 0x55e   :  { %5041 = vrcp.f32 %v1906_v45 }
 0x55f   :  { %5043 = vpow2.f32 %v3214_v47 }
 0x560   :  { %5045 = vpow2.f32 %v3215_v15 }
 0x567   :  { %v5040_v50 = vpop.eup %5039 }
 0x568   :  { %v2002_v38 = vmul.f32 %v5040_v50, %v1998_v9  ;;  %v5042_v32 = vpop.eup %5041 }
 0x569   :  { %v2003_v6 = vmul.f32 %v5042_v32, %v1999_v48  ;;  %v5044_v45 = vpop.eup %5043 }
 0x56a   :  { %v5046_v56 = vpop.eup %5045  ;;  %v1885_v42 = vadd.f32 1.0, %v5044_v45  ;;  %v1994_v45 = vsub.f32 1.0, %v5040_v50 }
 0x56b   :  { %v1886_v23 = vadd.f32 1.0, %v5046_v56 }
 0x56c   :  { %5047 = vrcp.f32 %v1885_v42  ;;  %v1995_v42 = vsub.f32 1.0, %v5042_v32 }
 0x56d   :  { %5049 = vrcp.f32 %v1886_v23 }
 0x576   :  { %v5048_v9 = vpop.eup %5047 }
 0x577   :  { %v5050_v48 = vpop.eup %5049 }
 0x587   :  { %v1977_v22 = vpop.f32.mrb[14].mxu0 }
 0x588   :  { %v1978_v43 = vadd.f32 %v1977_v22, %v7333_v1  ;;  %v1979_v12 = vpop.f32.mrb[15].mxu0 }
 0x589   :  { %v1980_v59 = vadd.f32 %v1979_v12, %v7199_v26 }
 0x58a   :  { %v1984_v62 = vrot.slane %v1978_v43, 5 }
 0x58b   :  { %v1985_v46 = vrot.slane %v1980_v59, 5  ;;  %v7339_v59 = vld [vmem:[#allocation84_spill] sm:$0xff] }
 0x58c   :  { %v1988_v16 = vmul.f32 %v5048_v9, %v1984_v62  ;;  %v7340_v62 = vld [vmem:[#allocation28_spill] sm:$0xff]  ;;  %v7341_v9 = vld [vmem:[#allocation29_spill] sm:$0xff] }
 0x58d   :  { %v1989_v52 = vmul.f32 %v5050_v48, %v1985_v46  ;;  %v7342_v48 = vld [vmem:[#allocation86_spill] sm:$0xff] }
 0x58e   :  { %v1990_v15 = vadd.f32 %v1988_v16, %v5951_v34  ;;  %v7343_v16 = vld [vmem:[#allocation88_spill] sm:$0xff] }
 0x58f   :  { %v1991_v47 = vadd.f32 %v1989_v52, %v5954_v36  ;;  %v7344_v52 = vld [vmem:[#allocation30_spill] sm:$0xff] }
 0x590   :  { %5051 = vtanh.f32 %v1990_v15  ;;  %v7345_v15 = vld [vmem:[#allocation31_spill] sm:$0xff] }
 0x591   :  { %5053 = vtanh.f32 %v1991_v47  ;;  %v7346_v47 = vld [vmem:[#allocation90_spill] sm:$0xff] }
 0x59a   :  { %v5052_v56 = vpop.eup %5051 }
 0x59b   :  { %v5054_v23 = vpop.eup %5053  ;;  %v1996_v22 = vmul.f32 %v5052_v56, %v1994_v45  ;;  %v7347_v45 = vld [vmem:[#allocation92_spill] sm:$0xff] }
 0x59c   :  { %v1997_v1 = vmul.f32 %v5054_v23, %v1995_v42  ;;  %v7348_v56 = vld [vmem:[#allocation32_spill] sm:$0xff]  ;;  %v7349_v42 = vld [vmem:[#allocation33_spill] sm:$0xff]  ;;  %v7350_v23 = vld [vmem:[#allocation94_spill] sm:$0xff] }
 0x59d   :  { %v6335_v35 = vadd.f32 %v2002_v38, %v1996_v22  ;;  %v7336_v38 = vld [vmem:[#allocation26_spill] sm:$0xff]  ;;  %v7351_v22 = vld [vmem:[#allocation96_spill] sm:$0xff] }
 0x59e   :  { %v6337_v12 = vadd.f32 %v2003_v6, %v1997_v1  ;;  %v7337_v6 = vld [vmem:[#allocation27_spill] sm:$0xff]  ;;  %v7338_v1 = vld [vmem:[#allocation82_spill] sm:$0xff] }
 0x59f   :  { %v6342_v46 = vsel %vm216_vm2, %v6212_v11, %v6335_v35  ;;  %v6351_v32 = vrot.slane %v6335_v35, 3  ;;  %v7334_v11 = vld [vmem:[#allocation78_spill] sm:$0xff] }
 0x5a0   :  { %v2009_v43 = vrot.slane %v6337_v12, 3  ;;  %v6348_v50 = vsel %vm216_vm2, %v6217_v4, %v6337_v12  ;;  %v7335_v4 = vld [vmem:[#allocation80_spill] sm:$0xff] }
 0x5a2   :  { %2076 = vmatprep.mubr.f32.mxu1 %v2009_v43  ;;  %2147 = vmatprep.mubr.f32.mxu0 %v2009_v43 }
 0x5a3   :  { %2077 = vmatmul.mubr.f32.vlgmr.msra.gmra.mrb[14].mxu1 %v6351_v32  ;;  %2148 = vmatmul.mubr.f32.vlgmr.msra.gmra.mrb[16].mxu0 %v6351_v32 }
 0x5a4   :  { %4325 = vmatpush1.bf16.msra.mxu1 %v7134_v30  ;;  %2258 = vmatprep.mubr.f32.mxu1 %v2009_v43  ;;  %v7352_v43 = vld [vmem:[#allocation34_spill] sm:$0xff] }
 0x5a5   :  { %4327 = vmatprep.subr.bf16.mxu1 %v7135_v33  ;;  %4389 = vmatpush1.bf16.msra.mxu0 %v5527_v61 }
 0x5a6   :  { %4391 = vmatprep.subr.bf16.mxu0 %v5530_v2 }
 0x5a8   :  { %4329 = vmatpush1.bf16.msra.mxu1 %v7136_v31 }
 0x5a9   :  { %4331 = vmatprep.subr.bf16.mxu1 %v7137_v8  ;;  %4393 = vmatpush1.bf16.msra.mxu0 %v5535_v10 }
 0x5aa   :  { %4395 = vmatprep.subr.bf16.mxu0 %v5538_v17 }
 0x5ac   :  { %4333 = vmatpush1.bf16.msra.mxu1 %v7138_v19 }
 0x5ad   :  { %4335 = vmatprep.subr.bf16.mxu1 %v7139_v51  ;;  %4397 = vmatpush1.bf16.msra.mxu0 %v5542_v24 }
 0x5ae   :  { %4399 = vmatprep.subr.bf16.mxu0 %v5545_v29 }
 0x5b0   :  { %4337 = vmatpush1.bf16.msra.mxu1 %v7140_v21 }
 0x5b1   :  { %4339 = vmatprep.subr.bf16.mxu1 %v7141_v13  ;;  %4401 = vmatpush1.bf16.msra.mxu0 %v5548_v37 }
 0x5b2   :  { %4403 = vmatprep.subr.bf16.mxu0 %v5551_v41 }
 0x5b4   :  { %4341 = vmatpush1.bf16.msra.mxu1 %v7142_v7 }
 0x5b5   :  { %4343 = vmatprep.subr.bf16.mxu1 %v7143_v14  ;;  %4405 = vmatpush1.bf16.msra.mxu0 %v5554_v49 }
 0x5b6   :  { %4407 = vmatprep.subr.bf16.mxu0 %v5557_v54 }
 0x5b8   :  { %4345 = vmatpush1.bf16.msra.mxu1 %v7144_v20 }
 0x5b9   :  { %4347 = vmatprep.subr.bf16.mxu1 %v7145_v53  ;;  %4409 = vmatpush1.bf16.msra.mxu0 %v5560_v63 }
 0x5ba   :  { %4411 = vmatprep.subr.bf16.mxu0 %v5563_v5 }
 0x5bc   :  { %4349 = vmatpush1.bf16.msra.mxu1 %v7146_v3 }
 0x5bd   :  { %4351 = vmatprep.subr.bf16.mxu1 %v7147_v57  ;;  %4413 = vmatpush1.bf16.msra.mxu0 %v5571_v18 }
 0x5be   :  { %4415 = vmatprep.subr.bf16.mxu0 %v5578_v25 }
 0x5c0   :  { %4353 = vmatpush1.bf16.msra.mxu1 %v7148_v40 }
 0x5c1   :  { %4355 = vmatprep.subr.bf16.mxu1 %v7200_v58  ;;  %4417 = vmatpush1.bf16.msra.mxu0 %v7201_v28 }
 0x5c2   :  { %4419 = vmatprep.subr.bf16.mxu0 %v5585_v39 }
 0x5c4   :  { %4357 = vmatpush1.bf16.msra.mxu1 %v7150_v44 }
 0x5c5   :  { %4359 = vmatprep.subr.bf16.mxu1 %v7202_v27  ;;  %4421 = vmatpush1.bf16.msra.mxu0 %v7203_v60 }
 0x5c6   :  { %4423 = vmatprep.subr.bf16.mxu0 %v7264_v0 }
 0x5c8   :  { %4361 = vmatpush1.bf16.msra.mxu1 %v7334_v11 }
 0x5c9   :  { %4363 = vmatprep.subr.bf16.mxu1 %v7335_v4  ;;  %4425 = vmatpush1.bf16.msra.mxu0 %v7336_v38 }
 0x5ca   :  { %4427 = vmatprep.subr.bf16.mxu0 %v7337_v6  ;;  %v7397_v6 = vld [vmem:[#allocation109_spill] sm:$0xff] }
 0x5cc   :  { %4365 = vmatpush1.bf16.msra.mxu1 %v7338_v1  ;;  %v7396_v1 = vld [vmem:[#allocation108_spill] sm:$0xff] }
 0x5cd   :  { %4367 = vmatprep.subr.bf16.mxu1 %v7339_v59  ;;  %4429 = vmatpush1.bf16.msra.mxu0 %v7340_v62  ;;  %v7395_v62 = vld [vmem:[#allocation105_spill] sm:$0xff] }
 0x5ce   :  { %4431 = vmatprep.subr.bf16.mxu0 %v7341_v9 }
 0x5d0   :  { %4369 = vmatpush1.bf16.msra.mxu1 %v7342_v48  ;;  %v7353_v48 = vld [vmem:[#allocation35_spill] sm:$0xff] }
 0x5d1   :  { %4371 = vmatprep.subr.bf16.mxu1 %v7343_v16  ;;  %4433 = vmatpush1.bf16.msra.mxu0 %v7344_v52  ;;  %v7354_v16 = vld [vmem:[#allocation98_spill] sm:$0xff]  ;;  %v7355_v52 = vld [vmem:[#allocation100_spill] sm:$0xff] }
 0x5d2   :  { %4435 = vmatprep.subr.bf16.mxu0 %v7345_v15  ;;  %v7356_v15 = vld [vmem:[#allocation36_spill] sm:$0xff] }
 0x5d4   :  { %4373 = vmatpush1.bf16.msra.mxu1 %v7346_v47  ;;  %v7357_v47 = vld [vmem:[#allocation37_spill] sm:$0xff] }
 0x5d5   :  { %4375 = vmatprep.subr.bf16.mxu1 %v7347_v45  ;;  %4437 = vmatpush1.bf16.msra.mxu0 %v7348_v56  ;;  %v7358_v45 = vld [vmem:[#allocation102_spill] sm:$0xff]  ;;  %v7359_v56 = vld [vmem:[#allocation39_spill] sm:$0xff] }
 0x5d6   :  { %4439 = vmatprep.subr.bf16.mxu0 %v7349_v42  ;;  %v7360_v42 = vld [vmem:[#allocation38_spill] sm:$0xff] }
 0x5d8   :  { %4377 = vmatpush1.bf16.msra.mxu1 %v7350_v23  ;;  %v7361_v23 = vld [vmem:[#allocation40_spill] sm:$0xff] }
 0x5d9   :  { %4379 = vmatprep.subr.bf16.mxu1 %v7351_v22  ;;  %4441 = vmatpush1.bf16.msra.mxu0 %v7352_v43  ;;  %v7362_v43 = vld [vmem:[#allocation41_spill] sm:$0xff]  ;;  %v7394_v22 = vld [vmem:[#allocation18_spill] sm:$0xff] }
 0x5da   :  { %4443 = vmatprep.subr.bf16.mxu0 %v7353_v48  ;;  %v7363_v48 = vld [vmem:[#allocation43_spill] sm:$0xff] }
 0x5dc   :  { %4381 = vmatpush1.bf16.msra.mxu1 %v7354_v16  ;;  %v7364_v16 = vld [vmem:[#allocation45_spill] sm:$0xff] }
 0x5dd   :  { %4383 = vmatprep.subr.bf16.mxu1 %v7355_v52  ;;  %4445 = vmatpush1.bf16.msra.mxu0 %v7356_v15  ;;  %v7365_v52 = vld [vmem:[#allocation47_spill] sm:$0xff]  ;;  %v7366_v15 = vld [vmem:[#allocation49_spill] sm:$0xff] }
 0x5de   :  { %4447 = vmatprep.subr.bf16.mxu0 %v7357_v47  ;;  %v7367_v47 = vld [vmem:[#allocation51_spill] sm:$0xff] }
 0x5e0   :  { %4385 = vmatpush1.bf16.msra.mxu1 %v7358_v45  ;;  %v7368_v45 = vld [vmem:[#allocation53_spill] sm:$0xff] }
 0x5e1   :  { %4451 = vmatprep.subr.bf16.mxu1 %v7359_v56  ;;  %4449 = vmatpush1.bf16.msra.mxu0 %v7360_v42  ;;  %v7369_v56 = vld [vmem:[#allocation55_spill] sm:$0xff]  ;;  %v7370_v42 = vld [vmem:[#allocation57_spill] sm:$0xff] }
 0x5e2   :  { %4515 = vmatprep.subr.bf16.mxu0 %v7361_v23  ;;  %v7371_v23 = vld [vmem:[#allocation59_spill] sm:$0xff] }
 0x5e3   :  { %2259 = vmatmul.mubr.f32.vlgmr.msra.gmra.mrb[16].mxu1 %v6351_v32  ;;  %v7372_v32 = vld [vmem:[#allocation61_spill] sm:$0xff] }
 0x5e4   :  { %4453 = vmatpush1.bf16.msra.mxu1 %v7362_v43  ;;  %v7373_v43 = vld [vmem:[#allocation63_spill] sm:$0xff] }
 0x5e5   :  { %4455 = vmatprep.subr.bf16.mxu1 %v7363_v48  ;;  %v7374_v48 = vld [vmem:[#allocation65_spill] sm:$0xff] }
 0x5e8   :  { %4457 = vmatpush1.bf16.msra.mxu1 %v7364_v16  ;;  %v7375_v16 = vld [vmem:[#allocation67_spill] sm:$0xff] }
 0x5e9   :  { %4459 = vmatprep.subr.bf16.mxu1 %v7365_v52  ;;  %v7376_v52 = vld [vmem:[#allocation69_spill] sm:$0xff] }
 0x5ec   :  { %4461 = vmatpush1.bf16.msra.mxu1 %v7366_v15  ;;  %v7377_v15 = vld [vmem:[#allocation71_spill] sm:$0xff] }
 0x5ed   :  { %4463 = vmatprep.subr.bf16.mxu1 %v7367_v47  ;;  %v7378_v47 = vld [vmem:[#allocation73_spill] sm:$0xff] }
 0x5f0   :  { %4465 = vmatpush1.bf16.msra.mxu1 %v7368_v45  ;;  %v7379_v45 = vld [vmem:[#allocation75_spill] sm:$0xff] }
 0x5f1   :  { %4467 = vmatprep.subr.bf16.mxu1 %v7369_v56  ;;  %v7380_v56 = vld [vmem:[#allocation77_spill] sm:$0xff] }
 0x5f4   :  { %4469 = vmatpush1.bf16.msra.mxu1 %v7370_v42  ;;  %v7381_v42 = vld [vmem:[#allocation79_spill] sm:$0xff] }
 0x5f5   :  { %4471 = vmatprep.subr.bf16.mxu1 %v7371_v23  ;;  %v7382_v23 = vld [vmem:[#allocation81_spill] sm:$0xff] }
 0x5f8   :  { %4473 = vmatpush1.bf16.msra.mxu1 %v7372_v32  ;;  %v7383_v32 = vld [vmem:[#allocation83_spill] sm:$0xff] }
 0x5f9   :  { %4475 = vmatprep.subr.bf16.mxu1 %v7373_v43  ;;  %v7384_v43 = vld [vmem:[#allocation85_spill] sm:$0xff] }
 0x5fc   :  { %4477 = vmatpush1.bf16.msra.mxu1 %v7374_v48  ;;  %v7385_v48 = vld [vmem:[#allocation87_spill] sm:$0xff] }
 0x5fd   :  { %4479 = vmatprep.subr.bf16.mxu1 %v7375_v16  ;;  %v7386_v16 = vld [vmem:[#allocation89_spill] sm:$0xff] }
 0x600   :  { %4481 = vmatpush1.bf16.msra.mxu1 %v7376_v52  ;;  %v7387_v52 = vld [vmem:[#allocation91_spill] sm:$0xff] }
 0x601   :  { %4483 = vmatprep.subr.bf16.mxu1 %v7377_v15  ;;  %v7388_v15 = vld [vmem:[#allocation93_spill] sm:$0xff] }
 0x604   :  { %4485 = vmatpush1.bf16.msra.mxu1 %v7378_v47  ;;  %v7389_v47 = vld [vmem:[#allocation95_spill] sm:$0xff] }
 0x605   :  { %4487 = vmatprep.subr.bf16.mxu1 %v7379_v45  ;;  %v7390_v45 = vld [vmem:[#allocation97_spill] sm:$0xff] }
 0x608   :  { %4489 = vmatpush1.bf16.msra.mxu1 %v7380_v56  ;;  %v7391_v56 = vld [vmem:[#allocation99_spill] sm:$0xff] }
 0x609   :  { %4491 = vmatprep.subr.bf16.mxu1 %v7381_v42  ;;  %v7392_v42 = vld [vmem:[#allocation101_spill] sm:$0xff] }
 0x60c   :  { %4493 = vmatpush1.bf16.msra.mxu1 %v7382_v23  ;;  %v7393_v23 = vld [vmem:[#allocation21_spill] sm:$0xff] }
 0x60d   :  { %4495 = vmatprep.subr.bf16.mxu1 %v7383_v32 }
 0x610   :  { %4497 = vmatpush1.bf16.msra.mxu1 %v7384_v43 }
 0x611   :  { %4499 = vmatprep.subr.bf16.mxu1 %v7385_v48 }
 0x614   :  { %4501 = vmatpush1.bf16.msra.mxu1 %v7386_v16 }
 0x615   :  { %4503 = vmatprep.subr.bf16.mxu1 %v7387_v52 }
 0x618   :  { %4505 = vmatpush1.bf16.msra.mxu1 %v7388_v15 }
 0x619   :  { %4507 = vmatprep.subr.bf16.mxu1 %v7389_v47 }
 0x61c   :  { %4509 = vmatpush1.bf16.msra.mxu1 %v7390_v45 }
 0x61d   :  { %4511 = vmatprep.subr.bf16.mxu1 %v7391_v56 }
 0x620   :  { %4513 = vmatpush1.bf16.msra.mxu1 %v7392_v42 }
 0x621   :  { %4579 = vmatprep.subr.bf16.mxu1 %v7393_v23 }
 0x676   :  { %v2078_v32 = vpop.f32.mrb[14].mxu1  ;;  %v2149_v43 = vpop.f32.mrb[16].mxu0 }
 0x677   :  { %v2150_v48 = vadd.f32 %v2149_v43, %v7394_v22  ;;  %v2080_v9 = vpop.f32.mrb[15].mxu1  ;;  %v2151_v16 = vpop.f32.mrb[17].mxu0  ;;  %v2079_v43 = vadd.f32 %v2078_v32, %v7329_v55  ;;  %v7398_v22 = vld [vmem:[#allocation19_spill] sm:$0xff] }
 0x678   :  { %v2152_v52 = vadd.f32 %v2151_v16, %v7395_v62  ;;  %v2081_v16 = vadd.f32 %v2080_v9, %v7398_v22 }
 0x679   :  { %v2176_v59 = vrot.slane %v2150_v48, 4  ;;  %v2156_v48 = vrot.slane %v2079_v43, 4 }
 0x67a   :  { %v2177_v15 = vrot.slane %v2152_v52, 4  ;;  %v2157_v52 = vrot.slane %v2081_v16, 4  ;;  %v7401_v16 = vld [vmem:[#allocation106_spill] sm:$0xff] }
 0x67b   :  { %v2180_v47 = vadd.f32 %v2176_v59, %v7396_v1  ;;  %v2281_v59 = vrot.slane %v6335_v35, 7 }
 0x67c   :  { %v2181_v45 = vadd.f32 %v2177_v15, %v7397_v6  ;;  %v7399_v15 = vld [vmem:[#allocation103_spill] sm:$0xff] }
 0x67d   :  { %v3220_v38 = vmul.f32 -1.442695, %v2180_v47  ;;  %v2160_v47 = vadd.f32 %v2156_v48, %v7399_v15 }
 0x67e   :  { %v3221_v56 = vmul.f32 -1.442695, %v2181_v45  ;;  %v7400_v45 = vld [vmem:[#allocation104_spill] sm:$0xff] }
 0x67f   :  { %5055 = vpow2.f32 %v3220_v38  ;;  %v2161_v38 = vadd.f32 %v2157_v52, %v7400_v45 }
 0x680   :  { %5057 = vpow2.f32 %v3221_v56  ;;  %v2282_v56 = vrot.slane %v6337_v12, 7 }
 0x681   :  { %v3219_v62 = vmul.f32 -1.442695, %v2161_v38 }
 0x689   :  { %v5056_v42 = vpop.eup %5055 }
 0x68a   :  { %v2188_v23 = vadd.f32 1.0, %v5056_v42  ;;  %v5058_v4 = vpop.eup %5057 }
 0x68b   :  { %v2189_v11 = vadd.f32 1.0, %v5058_v4  ;;  %v3218_v4 = vmul.f32 -1.442695, %v2160_v47 }
 0x68c   :  { %5059 = vrcp.f32 %v2188_v23 }
 0x68d   :  { %5061 = vrcp.f32 %v2189_v11 }
 0x68e   :  { %5063 = vpow2.f32 %v3218_v4 }
 0x68f   :  { %5065 = vpow2.f32 %v3219_v62 }
 0x696   :  { %v5060_v1 = vpop.eup %5059 }
 0x697   :  { %v2285_v42 = vmul.f32 %v5060_v1, %v2281_v59  ;;  %v5062_v6 = vpop.eup %5061 }
 0x698   :  { %v2286_v23 = vmul.f32 %v5062_v6, %v2282_v56  ;;  %v5064_v11 = vpop.eup %5063 }
 0x699   :  { %v5066_v9 = vpop.eup %5065  ;;  %v2168_v32 = vadd.f32 1.0, %v5064_v11  ;;  %v2277_v11 = vsub.f32 1.0, %v5060_v1 }
 0x69a   :  { %v2169_v43 = vadd.f32 1.0, %v5066_v9 }
 0x69b   :  { %5067 = vrcp.f32 %v2168_v32  ;;  %v2278_v32 = vsub.f32 1.0, %v5062_v6 }
 0x69c   :  { %5069 = vrcp.f32 %v2169_v43 }
 0x6a5   :  { %v5068_v59 = vpop.eup %5067 }
 0x6a6   :  { %v5070_v56 = vpop.eup %5069 }
 0x6b6   :  { %v2260_v35 = vpop.f32.mrb[16].mxu1 }
 0x6b7   :  { %v2261_v48 = vadd.f32 %v2260_v35, %v7401_v16  ;;  %v2262_v15 = vpop.f32.mrb[17].mxu1 }
 0x6b8   :  { %v2263_v52 = vadd.f32 %v2262_v15, %v7199_v26 }
 0x6b9   :  { %v2267_v12 = vrot.slane %v2261_v48, 4 }
 0x6ba   :  { %v2268_v45 = vrot.slane %v2263_v52, 4  ;;  %v7407_v52 = vld [vmem:[#allocation84_spill] sm:$0xff] }
 0x6bb   :  { %v2271_v47 = vmul.f32 %v5068_v59, %v2267_v12  ;;  %v7408_v12 = vld [vmem:[#allocation28_spill] sm:$0xff]  ;;  %v7409_v59 = vld [vmem:[#allocation29_spill] sm:$0xff] }
 0x6bc   :  { %v2272_v38 = vmul.f32 %v5070_v56, %v2268_v45  ;;  %v7410_v56 = vld [vmem:[#allocation86_spill] sm:$0xff] }
 0x6bd   :  { %v2273_v62 = vadd.f32 %v2271_v47, %v5951_v34  ;;  %v7411_v47 = vld [vmem:[#allocation88_spill] sm:$0xff] }
 0x6be   :  { %v2274_v4 = vadd.f32 %v2272_v38, %v5954_v36  ;;  %v7412_v38 = vld [vmem:[#allocation30_spill] sm:$0xff] }
 0x6bf   :  { %5071 = vtanh.f32 %v2273_v62  ;;  %v7413_v62 = vld [vmem:[#allocation31_spill] sm:$0xff] }
 0x6c0   :  { %5073 = vtanh.f32 %v2274_v4  ;;  %v7414_v4 = vld [vmem:[#allocation90_spill] sm:$0xff] }
 0x6c9   :  { %v5072_v9 = vpop.eup %5071 }
 0x6ca   :  { %v5074_v43 = vpop.eup %5073  ;;  %v2279_v35 = vmul.f32 %v5072_v9, %v2277_v11  ;;  %v7415_v11 = vld [vmem:[#allocation92_spill] sm:$0xff] }
 0x6cb   :  { %v2280_v16 = vmul.f32 %v5074_v43, %v2278_v32  ;;  %v7416_v9 = vld [vmem:[#allocation32_spill] sm:$0xff]  ;;  %v7417_v32 = vld [vmem:[#allocation33_spill] sm:$0xff]  ;;  %v7418_v43 = vld [vmem:[#allocation94_spill] sm:$0xff] }
 0x6cc   :  { %v6466_v22 = vadd.f32 %v2285_v42, %v2279_v35  ;;  %v7404_v42 = vld [vmem:[#allocation26_spill] sm:$0xff]  ;;  %v7419_v35 = vld [vmem:[#allocation96_spill] sm:$0xff] }
 0x6cd   :  { %v6468_v15 = vadd.f32 %v2286_v23, %v2280_v16  ;;  %v7405_v23 = vld [vmem:[#allocation27_spill] sm:$0xff]  ;;  %v7406_v16 = vld [vmem:[#allocation82_spill] sm:$0xff] }
 0x6ce   :  { %v6473_v45 = vsel %vm219_vm3, %v6342_v46, %v6466_v22  ;;  %v6482_v6 = vrot.slane %v6466_v22, 4  ;;  %v7402_v46 = vld [vmem:[#allocation78_spill] sm:$0xff] }
 0x6cf   :  { %v2292_v48 = vrot.slane %v6468_v15, 4  ;;  %v6479_v1 = vsel %vm219_vm3, %v6348_v50, %v6468_v15  ;;  %v7403_v50 = vld [vmem:[#allocation80_spill] sm:$0xff] }
 0x6d1   :  { %2359 = vmatprep.mubr.f32.mxu0 %v2292_v48  ;;  %2430 = vmatprep.mubr.f32.mxu1 %v2292_v48 }
 0x6d2   :  { %2360 = vmatmul.mubr.f32.vlgmr.msra.gmra.mrb[18].mxu0 %v6482_v6  ;;  %2431 = vmatmul.mubr.f32.vlgmr.msra.gmra.mrb[18].mxu1 %v6482_v6 }
 0x6d3   :  { %4517 = vmatpush1.bf16.msra.mxu0 %v7134_v30  ;;  %2541 = vmatprep.mubr.f32.mxu0 %v2292_v48  ;;  %v7420_v48 = vld [vmem:[#allocation34_spill] sm:$0xff] }
 0x6d4   :  { %4519 = vmatprep.subr.bf16.mxu0 %v7135_v33  ;;  %4581 = vmatpush1.bf16.msra.mxu1 %v5527_v61 }
 0x6d5   :  { %4583 = vmatprep.subr.bf16.mxu1 %v5530_v2 }
 0x6d7   :  { %4521 = vmatpush1.bf16.msra.mxu0 %v7136_v31 }
 0x6d8   :  { %4523 = vmatprep.subr.bf16.mxu0 %v7137_v8  ;;  %4585 = vmatpush1.bf16.msra.mxu1 %v5535_v10 }
 0x6d9   :  { %4587 = vmatprep.subr.bf16.mxu1 %v5538_v17 }
 0x6db   :  { %4525 = vmatpush1.bf16.msra.mxu0 %v7138_v19 }
 0x6dc   :  { %4527 = vmatprep.subr.bf16.mxu0 %v7139_v51  ;;  %4589 = vmatpush1.bf16.msra.mxu1 %v5542_v24 }
 0x6dd   :  { %4591 = vmatprep.subr.bf16.mxu1 %v5545_v29 }
 0x6df   :  { %4529 = vmatpush1.bf16.msra.mxu0 %v7140_v21 }
 0x6e0   :  { %4531 = vmatprep.subr.bf16.mxu0 %v7141_v13  ;;  %4593 = vmatpush1.bf16.msra.mxu1 %v5548_v37 }
 0x6e1   :  { %4595 = vmatprep.subr.bf16.mxu1 %v5551_v41 }
 0x6e3   :  { %4533 = vmatpush1.bf16.msra.mxu0 %v7142_v7 }
 0x6e4   :  { %4535 = vmatprep.subr.bf16.mxu0 %v7143_v14  ;;  %4597 = vmatpush1.bf16.msra.mxu1 %v5554_v49 }
 0x6e5   :  { %4599 = vmatprep.subr.bf16.mxu1 %v5557_v54 }
 0x6e7   :  { %4537 = vmatpush1.bf16.msra.mxu0 %v7144_v20 }
 0x6e8   :  { %4539 = vmatprep.subr.bf16.mxu0 %v7145_v53  ;;  %4601 = vmatpush1.bf16.msra.mxu1 %v5560_v63 }
 0x6e9   :  { %4603 = vmatprep.subr.bf16.mxu1 %v5563_v5 }
 0x6eb   :  { %4541 = vmatpush1.bf16.msra.mxu0 %v7146_v3 }
 0x6ec   :  { %4543 = vmatprep.subr.bf16.mxu0 %v7147_v57  ;;  %4605 = vmatpush1.bf16.msra.mxu1 %v5571_v18 }
 0x6ed   :  { %4607 = vmatprep.subr.bf16.mxu1 %v5578_v25 }
 0x6ef   :  { %4545 = vmatpush1.bf16.msra.mxu0 %v7148_v40 }
 0x6f0   :  { %4547 = vmatprep.subr.bf16.mxu0 %v7200_v58  ;;  %4609 = vmatpush1.bf16.msra.mxu1 %v7201_v28 }
 0x6f1   :  { %4611 = vmatprep.subr.bf16.mxu1 %v5585_v39 }
 0x6f3   :  { %4549 = vmatpush1.bf16.msra.mxu0 %v7150_v44 }
 0x6f4   :  { %4551 = vmatprep.subr.bf16.mxu0 %v7202_v27  ;;  %4613 = vmatpush1.bf16.msra.mxu1 %v7203_v60 }
 0x6f5   :  { %4615 = vmatprep.subr.bf16.mxu1 %v7264_v0 }
 0x6f7   :  { %4553 = vmatpush1.bf16.msra.mxu0 %v7402_v46 }
 0x6f8   :  { %4555 = vmatprep.subr.bf16.mxu0 %v7403_v50  ;;  %4617 = vmatpush1.bf16.msra.mxu1 %v7404_v42 }
 0x6f9   :  { %4619 = vmatprep.subr.bf16.mxu1 %v7405_v23  ;;  %v7465_v23 = vld [vmem:[#allocation109_spill] sm:$0xff] }
 0x6fb   :  { %4557 = vmatpush1.bf16.msra.mxu0 %v7406_v16  ;;  %v7464_v16 = vld [vmem:[#allocation108_spill] sm:$0xff] }
 0x6fc   :  { %4559 = vmatprep.subr.bf16.mxu0 %v7407_v52  ;;  %4621 = vmatpush1.bf16.msra.mxu1 %v7408_v12  ;;  %v7463_v12 = vld [vmem:[#allocation105_spill] sm:$0xff] }
 0x6fd   :  { %4623 = vmatprep.subr.bf16.mxu1 %v7409_v59 }
 0x6ff   :  { %4561 = vmatpush1.bf16.msra.mxu0 %v7410_v56  ;;  %v7421_v56 = vld [vmem:[#allocation35_spill] sm:$0xff] }
 0x700   :  { %4563 = vmatprep.subr.bf16.mxu0 %v7411_v47  ;;  %4625 = vmatpush1.bf16.msra.mxu1 %v7412_v38  ;;  %v7422_v47 = vld [vmem:[#allocation98_spill] sm:$0xff]  ;;  %v7423_v38 = vld [vmem:[#allocation100_spill] sm:$0xff] }
 0x701   :  { %4627 = vmatprep.subr.bf16.mxu1 %v7413_v62  ;;  %v7424_v62 = vld [vmem:[#allocation36_spill] sm:$0xff] }
 0x703   :  { %4565 = vmatpush1.bf16.msra.mxu0 %v7414_v4  ;;  %v7425_v4 = vld [vmem:[#allocation37_spill] sm:$0xff] }
 0x704   :  { %4567 = vmatprep.subr.bf16.mxu0 %v7415_v11  ;;  %4629 = vmatpush1.bf16.msra.mxu1 %v7416_v9  ;;  %v7426_v11 = vld [vmem:[#allocation102_spill] sm:$0xff]  ;;  %v7427_v9 = vld [vmem:[#allocation39_spill] sm:$0xff] }
 0x705   :  { %4631 = vmatprep.subr.bf16.mxu1 %v7417_v32  ;;  %v7428_v32 = vld [vmem:[#allocation38_spill] sm:$0xff] }
 0x707   :  { %4569 = vmatpush1.bf16.msra.mxu0 %v7418_v43  ;;  %v7429_v43 = vld [vmem:[#allocation40_spill] sm:$0xff] }
 0x708   :  { %4571 = vmatprep.subr.bf16.mxu0 %v7419_v35  ;;  %4633 = vmatpush1.bf16.msra.mxu1 %v7420_v48  ;;  %v7430_v48 = vld [vmem:[#allocation41_spill] sm:$0xff]  ;;  %v7462_v35 = vld [vmem:[#allocation18_spill] sm:$0xff] }
 0x709   :  { %4635 = vmatprep.subr.bf16.mxu1 %v7421_v56  ;;  %v7431_v56 = vld [vmem:[#allocation43_spill] sm:$0xff] }
 0x70b   :  { %4573 = vmatpush1.bf16.msra.mxu0 %v7422_v47  ;;  %v7432_v47 = vld [vmem:[#allocation45_spill] sm:$0xff] }
 0x70c   :  { %4575 = vmatprep.subr.bf16.mxu0 %v7423_v38  ;;  %4637 = vmatpush1.bf16.msra.mxu1 %v7424_v62  ;;  %v7433_v38 = vld [vmem:[#allocation47_spill] sm:$0xff]  ;;  %v7434_v62 = vld [vmem:[#allocation49_spill] sm:$0xff] }
 0x70d   :  { %4639 = vmatprep.subr.bf16.mxu1 %v7425_v4  ;;  %v7435_v4 = vld [vmem:[#allocation51_spill] sm:$0xff] }
 0x70f   :  { %4577 = vmatpush1.bf16.msra.mxu0 %v7426_v11  ;;  %v7436_v11 = vld [vmem:[#allocation53_spill] sm:$0xff] }
 0x710   :  { %4643 = vmatprep.subr.bf16.mxu0 %v7427_v9  ;;  %4641 = vmatpush1.bf16.msra.mxu1 %v7428_v32  ;;  %v7437_v9 = vld [vmem:[#allocation55_spill] sm:$0xff]  ;;  %v7438_v32 = vld [vmem:[#allocation57_spill] sm:$0xff] }
 0x711   :  { %4707 = vmatprep.subr.bf16.mxu1 %v7429_v43  ;;  %v7439_v43 = vld [vmem:[#allocation59_spill] sm:$0xff] }
 0x712   :  { %2542 = vmatmul.mubr.f32.vlgmr.msra.gmra.mrb[20].mxu0 %v6482_v6  ;;  %v7440_v6 = vld [vmem:[#allocation61_spill] sm:$0xff] }
 0x713   :  { %4645 = vmatpush1.bf16.msra.mxu0 %v7430_v48  ;;  %v7441_v48 = vld [vmem:[#allocation63_spill] sm:$0xff] }
 0x714   :  { %4647 = vmatprep.subr.bf16.mxu0 %v7431_v56  ;;  %v7442_v56 = vld [vmem:[#allocation65_spill] sm:$0xff] }
 0x717   :  { %4649 = vmatpush1.bf16.msra.mxu0 %v7432_v47  ;;  %v7443_v47 = vld [vmem:[#allocation67_spill] sm:$0xff] }
 0x718   :  { %4651 = vmatprep.subr.bf16.mxu0 %v7433_v38  ;;  %v7444_v38 = vld [vmem:[#allocation69_spill] sm:$0xff] }
 0x71b   :  { %4653 = vmatpush1.bf16.msra.mxu0 %v7434_v62  ;;  %v7445_v62 = vld [vmem:[#allocation71_spill] sm:$0xff] }
 0x71c   :  { %4655 = vmatprep.subr.bf16.mxu0 %v7435_v4  ;;  %v7446_v4 = vld [vmem:[#allocation73_spill] sm:$0xff] }
 0x71f   :  { %4657 = vmatpush1.bf16.msra.mxu0 %v7436_v11  ;;  %v7447_v11 = vld [vmem:[#allocation75_spill] sm:$0xff] }
 0x720   :  { %4659 = vmatprep.subr.bf16.mxu0 %v7437_v9  ;;  %v7448_v9 = vld [vmem:[#allocation77_spill] sm:$0xff] }
 0x723   :  { %4661 = vmatpush1.bf16.msra.mxu0 %v7438_v32  ;;  %v7449_v32 = vld [vmem:[#allocation79_spill] sm:$0xff] }
 0x724   :  { %4663 = vmatprep.subr.bf16.mxu0 %v7439_v43  ;;  %v7450_v43 = vld [vmem:[#allocation81_spill] sm:$0xff] }
 0x727   :  { %4665 = vmatpush1.bf16.msra.mxu0 %v7440_v6  ;;  %v7451_v6 = vld [vmem:[#allocation83_spill] sm:$0xff] }
 0x728   :  { %4667 = vmatprep.subr.bf16.mxu0 %v7441_v48  ;;  %v7452_v48 = vld [vmem:[#allocation85_spill] sm:$0xff] }
 0x72b   :  { %4669 = vmatpush1.bf16.msra.mxu0 %v7442_v56  ;;  %v7453_v56 = vld [vmem:[#allocation87_spill] sm:$0xff] }
 0x72c   :  { %4671 = vmatprep.subr.bf16.mxu0 %v7443_v47  ;;  %v7454_v47 = vld [vmem:[#allocation89_spill] sm:$0xff] }
 0x72f   :  { %4673 = vmatpush1.bf16.msra.mxu0 %v7444_v38  ;;  %v7455_v38 = vld [vmem:[#allocation91_spill] sm:$0xff] }
 0x730   :  { %4675 = vmatprep.subr.bf16.mxu0 %v7445_v62  ;;  %v7456_v62 = vld [vmem:[#allocation93_spill] sm:$0xff] }
 0x733   :  { %4677 = vmatpush1.bf16.msra.mxu0 %v7446_v4  ;;  %v7457_v4 = vld [vmem:[#allocation95_spill] sm:$0xff] }
 0x734   :  { %4679 = vmatprep.subr.bf16.mxu0 %v7447_v11  ;;  %v7458_v11 = vld [vmem:[#allocation97_spill] sm:$0xff] }
 0x737   :  { %4681 = vmatpush1.bf16.msra.mxu0 %v7448_v9  ;;  %v7459_v9 = vld [vmem:[#allocation99_spill] sm:$0xff] }
 0x738   :  { %4683 = vmatprep.subr.bf16.mxu0 %v7449_v32  ;;  %v7460_v32 = vld [vmem:[#allocation101_spill] sm:$0xff] }
 0x73b   :  { %4685 = vmatpush1.bf16.msra.mxu0 %v7450_v43  ;;  %v7461_v43 = vld [vmem:[#allocation21_spill] sm:$0xff] }
 0x73c   :  { %4687 = vmatprep.subr.bf16.mxu0 %v7451_v6 }
 0x73f   :  { %4689 = vmatpush1.bf16.msra.mxu0 %v7452_v48 }
 0x740   :  { %4691 = vmatprep.subr.bf16.mxu0 %v7453_v56 }
 0x743   :  { %4693 = vmatpush1.bf16.msra.mxu0 %v7454_v47 }
 0x744   :  { %4695 = vmatprep.subr.bf16.mxu0 %v7455_v38 }
 0x747   :  { %4697 = vmatpush1.bf16.msra.mxu0 %v7456_v62 }
 0x748   :  { %4699 = vmatprep.subr.bf16.mxu0 %v7457_v4 }
 0x74b   :  { %4701 = vmatpush1.bf16.msra.mxu0 %v7458_v11 }
 0x74c   :  { %4703 = vmatprep.subr.bf16.mxu0 %v7459_v9 }
 0x74f   :  { %4705 = vmatpush1.bf16.msra.mxu0 %v7460_v32 }
 0x750   :  { %4771 = vmatprep.subr.bf16.mxu0 %v7461_v43 }
 0x7a5   :  { %v2361_v6 = vpop.f32.mrb[18].mxu0  ;;  %v2432_v48 = vpop.f32.mrb[18].mxu1 }
 0x7a6   :  { %v2433_v56 = vadd.f32 %v2432_v48, %v7462_v35  ;;  %v2363_v59 = vpop.f32.mrb[19].mxu0  ;;  %v2434_v47 = vpop.f32.mrb[19].mxu1  ;;  %v2362_v48 = vadd.f32 %v2361_v6, %v7329_v55  ;;  %v7466_v35 = vld [vmem:[#allocation19_spill] sm:$0xff] }
 0x7a7   :  { %v2435_v38 = vadd.f32 %v2434_v47, %v7463_v12  ;;  %v2364_v47 = vadd.f32 %v2363_v59, %v7466_v35 }
 0x7a8   :  { %v2459_v52 = vrot.slane %v2433_v56, 3  ;;  %v2439_v56 = vrot.slane %v2362_v48, 3 }
 0x7a9   :  { %v2460_v62 = vrot.slane %v2435_v38, 3  ;;  %v2440_v38 = vrot.slane %v2364_v47, 3  ;;  %v7469_v47 = vld [vmem:[#allocation106_spill] sm:$0xff] }
 0x7aa   :  { %v2463_v4 = vadd.f32 %v2459_v52, %v7464_v16  ;;  %v2564_v52 = vrot.slane %v6466_v22, 7 }
 0x7ab   :  { %v2464_v11 = vadd.f32 %v2460_v62, %v7465_v23  ;;  %v7467_v62 = vld [vmem:[#allocation103_spill] sm:$0xff] }
 0x7ac   :  { %v3224_v42 = vmul.f32 -1.442695, %v2463_v4  ;;  %v2443_v4 = vadd.f32 %v2439_v56, %v7467_v62 }
 0x7ad   :  { %v3225_v9 = vmul.f32 -1.442695, %v2464_v11  ;;  %v7468_v11 = vld [vmem:[#allocation104_spill] sm:$0xff] }
 0x7ae   :  { %5075 = vpow2.f32 %v3224_v42  ;;  %v2444_v42 = vadd.f32 %v2440_v38, %v7468_v11 }
 0x7af   :  { %5077 = vpow2.f32 %v3225_v9  ;;  %v2565_v9 = vrot.slane %v6468_v15, 7 }
 0x7b0   :  { %v3223_v12 = vmul.f32 -1.442695, %v2444_v42 }
 0x7b8   :  { %v5076_v32 = vpop.eup %5075 }
 0x7b9   :  { %v2471_v43 = vadd.f32 1.0, %v5076_v32  ;;  %v5078_v50 = vpop.eup %5077 }
 0x7ba   :  { %v2472_v46 = vadd.f32 1.0, %v5078_v50  ;;  %v3222_v50 = vmul.f32 -1.442695, %v2443_v4 }
 0x7bb   :  { %5079 = vrcp.f32 %v2471_v43 }
 0x7bc   :  { %5081 = vrcp.f32 %v2472_v46 }
 0x7bd   :  { %5083 = vpow2.f32 %v3222_v50 }
 0x7be   :  { %5085 = vpow2.f32 %v3223_v12 }
 0x7c5   :  { %v5080_v16 = vpop.eup %5079 }
 0x7c6   :  { %v2568_v32 = vmul.f32 %v5080_v16, %v2564_v52  ;;  %v5082_v23 = vpop.eup %5081 }
 0x7c7   :  { %v2569_v43 = vmul.f32 %v5082_v23, %v2565_v9  ;;  %v5084_v46 = vpop.eup %5083 }
 0x7c8   :  { %v5086_v59 = vpop.eup %5085  ;;  %v2451_v6 = vadd.f32 1.0, %v5084_v46  ;;  %v2560_v46 = vsub.f32 1.0, %v5080_v16 }
 0x7c9   :  { %v2452_v48 = vadd.f32 1.0, %v5086_v59 }
 0x7ca   :  { %5087 = vrcp.f32 %v2451_v6  ;;  %v2561_v6 = vsub.f32 1.0, %v5082_v23 }
 0x7cb   :  { %5089 = vrcp.f32 %v2452_v48 }
 0x7d4   :  { %v5088_v52 = vpop.eup %5087 }
 0x7d5   :  { %v5090_v9 = vpop.eup %5089 }
 0x7e5   :  { %v2543_v22 = vpop.f32.mrb[20].mxu0 }
 0x7e6   :  { %v2544_v56 = vadd.f32 %v2543_v22, %v7469_v47  ;;  %v2545_v62 = vpop.f32.mrb[21].mxu0 }
 0x7e7   :  { %v2546_v38 = vadd.f32 %v2545_v62, %v7199_v26 }
 0x7e8   :  { %v2550_v15 = vrot.slane %v2544_v56, 3 }
 0x7e9   :  { %v2551_v11 = vrot.slane %v2546_v38, 3  ;;  %v7493_v38 = vld [vmem:[#allocation37_spill] sm:$0xff] }
 0x7ea   :  { %v2554_v4 = vmul.f32 %v5088_v52, %v2550_v15  ;;  %v7494_v15 = vld [vmem:[#allocation102_spill] sm:$0xff]  ;;  %v7495_v52 = vld [vmem:[#allocation39_spill] sm:$0xff] }
 0x7eb   :  { %v2555_v42 = vmul.f32 %v5090_v9, %v2551_v11  ;;  %v7496_v9 = vld [vmem:[#allocation38_spill] sm:$0xff] }
 0x7ec   :  { %v2556_v12 = vadd.f32 %v2554_v4, %v5951_v34  ;;  %v7497_v4 = vld [vmem:[#allocation40_spill] sm:$0xff] }
 0x7ed   :  { %v2557_v50 = vadd.f32 %v2555_v42, %v5954_v36  ;;  %v7498_v42 = vld [vmem:[#allocation41_spill] sm:$0xff] }
 0x7ee   :  { %5091 = vtanh.f32 %v2556_v12  ;;  %v7499_v12 = vld [vmem:[#allocation43_spill] sm:$0xff] }
 0x7ef   :  { %5093 = vtanh.f32 %v2557_v50  ;;  %v7500_v50 = vld [vmem:[#allocation45_spill] sm:$0xff] }
 0x7f8   :  { %v5092_v59 = vpop.eup %5091 }
 0x7f9   :  { %v5094_v48 = vpop.eup %5093  ;;  %v2562_v22 = vmul.f32 %v5092_v59, %v2560_v46  ;;  %v7501_v46 = vld [vmem:[#allocation47_spill] sm:$0xff]  ;;  %v7502_v59 = vld [vmem:[#allocation49_spill] sm:$0xff] }
 0x7fa   :  { %v2563_v47 = vmul.f32 %v5094_v48, %v2561_v6  ;;  %v7503_v6 = vld [vmem:[#allocation51_spill] sm:$0xff]  ;;  %v7504_v48 = vld [vmem:[#allocation53_spill] sm:$0xff] }
 0x7fb   :  { %v6597_v35 = vadd.f32 %v2568_v32, %v2562_v22  ;;  %v7490_v32 = vld [vmem:[#allocation98_spill] sm:$0xff]  ;;  %v7505_v22 = vld [vmem:[#allocation55_spill] sm:$0xff] }
 0x7fc   :  { %v6599_v62 = vadd.f32 %v2569_v43, %v2563_v47  ;;  %v7491_v43 = vld [vmem:[#allocation100_spill] sm:$0xff] }
 0x7fd   :  { %v6604_v11 = vsel %vm222_vm4, %v6473_v45, %v6597_v35  ;;  %v6613_v23 = vrot.slane %v6597_v35, 5  ;;  %v7488_v45 = vld [vmem:[#allocation34_spill] sm:$0xff]  ;;  %v7492_v47 = vld [vmem:[#allocation36_spill] sm:$0xff] }
 0x7fe   :  { %v2575_v56 = vrot.slane %v6599_v62, 5  ;;  %v6610_v16 = vsel %vm222_vm4, %v6479_v1, %v6599_v62  ;;  %v7489_v1 = vld [vmem:[#allocation35_spill] sm:$0xff] }
 0x800   :  { %2642 = vmatprep.mubr.f32.mxu1 %v2575_v56  ;;  %2713 = vmatprep.mubr.f32.mxu0 %v2575_v56 }
 0x801   :  { %2643 = vmatmul.mubr.f32.vlgmr.msra.gmra.mrb[20].mxu1 %v6613_v23  ;;  %2714 = vmatmul.mubr.f32.vlgmr.msra.gmra.mrb[22].mxu0 %v6613_v23 }
 0x802   :  { %4709 = vmatpush1.bf16.msra.mxu1 %v7134_v30  ;;  %2824 = vmatprep.mubr.f32.mxu1 %v2575_v56  ;;  %v7506_v56 = vld [vmem:[#allocation57_spill] sm:$0xff] }
 0x803   :  { %4711 = vmatprep.subr.bf16.mxu1 %v7135_v33  ;;  %4773 = vmatpush1.bf16.msra.mxu0 %v5527_v61  ;;  %v7470_v61 = vld [vmem:[#allocation78_spill] sm:$0xff] }
 0x804   :  { %4775 = vmatprep.subr.bf16.mxu0 %v5530_v2  ;;  %v7471_v2 = vld [vmem:[#allocation80_spill] sm:$0xff] }
 0x806   :  { %4713 = vmatpush1.bf16.msra.mxu1 %v7136_v31 }
 0x807   :  { %4715 = vmatprep.subr.bf16.mxu1 %v7137_v8  ;;  %4777 = vmatpush1.bf16.msra.mxu0 %v5535_v10  ;;  %v7472_v10 = vld [vmem:[#allocation26_spill] sm:$0xff] }
 0x808   :  { %4779 = vmatprep.subr.bf16.mxu0 %v5538_v17  ;;  %v7473_v17 = vld [vmem:[#allocation27_spill] sm:$0xff] }
 0x80a   :  { %4717 = vmatpush1.bf16.msra.mxu1 %v7138_v19 }
 0x80b   :  { %4719 = vmatprep.subr.bf16.mxu1 %v7139_v51  ;;  %4781 = vmatpush1.bf16.msra.mxu0 %v5542_v24  ;;  %v7474_v24 = vld [vmem:[#allocation82_spill] sm:$0xff] }
 0x80c   :  { %4783 = vmatprep.subr.bf16.mxu0 %v5545_v29  ;;  %v7475_v29 = vld [vmem:[#allocation84_spill] sm:$0xff] }
 0x80e   :  { %4721 = vmatpush1.bf16.msra.mxu1 %v7140_v21 }
 0x80f   :  { %4723 = vmatprep.subr.bf16.mxu1 %v7141_v13  ;;  %4785 = vmatpush1.bf16.msra.mxu0 %v5548_v37  ;;  %v7476_v37 = vld [vmem:[#allocation28_spill] sm:$0xff] }
 0x810   :  { %4787 = vmatprep.subr.bf16.mxu0 %v5551_v41  ;;  %v7477_v41 = vld [vmem:[#allocation29_spill] sm:$0xff] }
 0x812   :  { %4725 = vmatpush1.bf16.msra.mxu1 %v7142_v7 }
 0x813   :  { %4727 = vmatprep.subr.bf16.mxu1 %v7143_v14  ;;  %4789 = vmatpush1.bf16.msra.mxu0 %v5554_v49  ;;  %v7478_v49 = vld [vmem:[#allocation86_spill] sm:$0xff] }
 0x814   :  { %4791 = vmatprep.subr.bf16.mxu0 %v5557_v54  ;;  %v7479_v54 = vld [vmem:[#allocation88_spill] sm:$0xff] }
 0x816   :  { %4729 = vmatpush1.bf16.msra.mxu1 %v7144_v20 }
 0x817   :  { %4731 = vmatprep.subr.bf16.mxu1 %v7145_v53  ;;  %4793 = vmatpush1.bf16.msra.mxu0 %v5560_v63  ;;  %v7480_v63 = vld [vmem:[#allocation30_spill] sm:$0xff] }
 0x818   :  { %4795 = vmatprep.subr.bf16.mxu0 %v5563_v5  ;;  %v7481_v5 = vld [vmem:[#allocation31_spill] sm:$0xff] }
 0x81a   :  { %4733 = vmatpush1.bf16.msra.mxu1 %v7146_v3 }
 0x81b   :  { %4735 = vmatprep.subr.bf16.mxu1 %v7147_v57  ;;  %4797 = vmatpush1.bf16.msra.mxu0 %v5571_v18  ;;  %v7482_v18 = vld [vmem:[#allocation90_spill] sm:$0xff] }
 0x81c   :  { %4799 = vmatprep.subr.bf16.mxu0 %v5578_v25  ;;  %v7483_v25 = vld [vmem:[#allocation92_spill] sm:$0xff] }
 0x81e   :  { %4737 = vmatpush1.bf16.msra.mxu1 %v7148_v40 }
 0x81f   :  { %4739 = vmatprep.subr.bf16.mxu1 %v7200_v58  ;;  %4801 = vmatpush1.bf16.msra.mxu0 %v7201_v28  ;;  %v7485_v28 = vld [vmem:[#allocation33_spill] sm:$0xff] }
 0x820   :  { %4803 = vmatprep.subr.bf16.mxu0 %v5585_v39  ;;  %v7484_v39 = vld [vmem:[#allocation32_spill] sm:$0xff] }
 0x822   :  { %4741 = vmatpush1.bf16.msra.mxu1 %v7150_v44 }
 0x823   :  { %4743 = vmatprep.subr.bf16.mxu1 %v7202_v27  ;;  %4805 = vmatpush1.bf16.msra.mxu0 %v7203_v60  ;;  %v7486_v60 = vld [vmem:[#allocation94_spill] sm:$0xff] }
 0x824   :  { %4807 = vmatprep.subr.bf16.mxu0 %v7264_v0  ;;  %v7487_v0 = vld [vmem:[#allocation96_spill] sm:$0xff] }
 0x826   :  { %4745 = vmatpush1.bf16.msra.mxu1 %v7470_v61 }
 0x827   :  { %4747 = vmatprep.subr.bf16.mxu1 %v7471_v2  ;;  %4809 = vmatpush1.bf16.msra.mxu0 %v7472_v10  ;;  %v7507_v10 = vld [vmem:[#allocation59_spill] sm:$0xff] }
 0x828   :  { %4811 = vmatprep.subr.bf16.mxu0 %v7473_v17  ;;  %v7509_v17 = vld [vmem:[#allocation63_spill] sm:$0xff] }
 0x82a   :  { %4749 = vmatpush1.bf16.msra.mxu1 %v7474_v24 }
 0x82b   :  { %4751 = vmatprep.subr.bf16.mxu1 %v7475_v29  ;;  %4813 = vmatpush1.bf16.msra.mxu0 %v7476_v37  ;;  %v7510_v37 = vld [vmem:[#allocation65_spill] sm:$0xff] }
 0x82c   :  { %4815 = vmatprep.subr.bf16.mxu0 %v7477_v41  ;;  %v7511_v41 = vld [vmem:[#allocation67_spill] sm:$0xff] }
 0x82e   :  { %4753 = vmatpush1.bf16.msra.mxu1 %v7478_v49 }
 0x82f   :  { %4755 = vmatprep.subr.bf16.mxu1 %v7479_v54  ;;  %4817 = vmatpush1.bf16.msra.mxu0 %v7480_v63  ;;  %v7512_v63 = vld [vmem:[#allocation69_spill] sm:$0xff] }
 0x830   :  { %4819 = vmatprep.subr.bf16.mxu0 %v7481_v5  ;;  %v7513_v5 = vld [vmem:[#allocation71_spill] sm:$0xff] }
 0x832   :  { %4757 = vmatpush1.bf16.msra.mxu1 %v7482_v18 }
 0x833   :  { %4759 = vmatprep.subr.bf16.mxu1 %v7483_v25  ;;  %4821 = vmatpush1.bf16.msra.mxu0 %v7484_v39  ;;  %v7514_v39 = vld [vmem:[#allocation73_spill] sm:$0xff] }
 0x834   :  { %4823 = vmatprep.subr.bf16.mxu0 %v7485_v28  ;;  %v7515_v28 = vld [vmem:[#allocation75_spill] sm:$0xff] }
 0x836   :  { %4761 = vmatpush1.bf16.msra.mxu1 %v7486_v60 }
 0x837   :  { %4763 = vmatprep.subr.bf16.mxu1 %v7487_v0  ;;  %4825 = vmatpush1.bf16.msra.mxu0 %v7488_v45  ;;  %v7516_v45 = vld [vmem:[#allocation77_spill] sm:$0xff] }
 0x838   :  { %4827 = vmatprep.subr.bf16.mxu0 %v7489_v1  ;;  %v7517_v1 = vld [vmem:[#allocation79_spill] sm:$0xff] }
 0x83a   :  { %4765 = vmatpush1.bf16.msra.mxu1 %v7490_v32 }
 0x83b   :  { %4767 = vmatprep.subr.bf16.mxu1 %v7491_v43  ;;  %4829 = vmatpush1.bf16.msra.mxu0 %v7492_v47  ;;  %v7518_v47 = vld [vmem:[#allocation81_spill] sm:$0xff] }
 0x83c   :  { %4831 = vmatprep.subr.bf16.mxu0 %v7493_v38  ;;  %v7519_v38 = vld [vmem:[#allocation83_spill] sm:$0xff] }
 0x83e   :  { %4769 = vmatpush1.bf16.msra.mxu1 %v7494_v15 }
 0x83f   :  { %4835 = vmatprep.subr.bf16.mxu1 %v7495_v52  ;;  %4833 = vmatpush1.bf16.msra.mxu0 %v7496_v9  ;;  %v7520_v52 = vld [vmem:[#allocation85_spill] sm:$0xff]  ;;  %v7521_v9 = vld [vmem:[#allocation87_spill] sm:$0xff] }
 0x840   :  { %4899 = vmatprep.subr.bf16.mxu0 %v7497_v4  ;;  %v7522_v4 = vld [vmem:[#allocation89_spill] sm:$0xff] }
 0x841   :  { %2825 = vmatmul.mubr.f32.vlgmr.msra.gmra.mrb[22].mxu1 %v6613_v23  ;;  %v7508_v23 = vld [vmem:[#allocation61_spill] sm:$0xff] }
 0x842   :  { %4837 = vmatpush1.bf16.msra.mxu1 %v7498_v42  ;;  %v7523_v42 = vld [vmem:[#allocation91_spill] sm:$0xff] }
 0x843   :  { %4839 = vmatprep.subr.bf16.mxu1 %v7499_v12  ;;  %v7524_v12 = vld [vmem:[#allocation93_spill] sm:$0xff] }
 0x846   :  { %4841 = vmatpush1.bf16.msra.mxu1 %v7500_v50  ;;  %v7525_v50 = vld [vmem:[#allocation95_spill] sm:$0xff] }
 0x847   :  { %4843 = vmatprep.subr.bf16.mxu1 %v7501_v46  ;;  %v7526_v46 = vld [vmem:[#allocation97_spill] sm:$0xff] }
 0x84a   :  { %4845 = vmatpush1.bf16.msra.mxu1 %v7502_v59  ;;  %v7527_v59 = vld [vmem:[#allocation99_spill] sm:$0xff] }
 0x84b   :  { %4847 = vmatprep.subr.bf16.mxu1 %v7503_v6  ;;  %v7528_v6 = vld [vmem:[#allocation101_spill] sm:$0xff] }
 0x84e   :  { %4849 = vmatpush1.bf16.msra.mxu1 %v7504_v48 }
 0x84f   :  { %4851 = vmatprep.subr.bf16.mxu1 %v7505_v22 }
 0x852   :  { %4853 = vmatpush1.bf16.msra.mxu1 %v7506_v56  ;;  %v7529_v56 = vld [vmem:[#allocation18_spill] sm:$0xff] }
 0x853   :  { %4855 = vmatprep.subr.bf16.mxu1 %v7507_v10 }
 0x856   :  { %4857 = vmatpush1.bf16.msra.mxu1 %v7508_v23 }
 0x857   :  { %4859 = vmatprep.subr.bf16.mxu1 %v7509_v17 }
 0x85a   :  { %4861 = vmatpush1.bf16.msra.mxu1 %v7510_v37  ;;  %v7530_v37 = vld [vmem:[#allocation105_spill] sm:$0xff] }
 0x85b   :  { %4863 = vmatprep.subr.bf16.mxu1 %v7511_v41 }
 0x85e   :  { %4865 = vmatpush1.bf16.msra.mxu1 %v7512_v63 }
 0x85f   :  { %4867 = vmatprep.subr.bf16.mxu1 %v7513_v5 }
 0x862   :  { %4869 = vmatpush1.bf16.msra.mxu1 %v7514_v39  ;;  %v7531_v39 = vld [vmem:[#allocation108_spill] sm:$0xff] }
 0x863   :  { %4871 = vmatprep.subr.bf16.mxu1 %v7515_v28 }
 0x866   :  { %4873 = vmatpush1.bf16.msra.mxu1 %v7516_v45  ;;  %v7532_v45 = vld [vmem:[#allocation109_spill] sm:$0xff] }
 0x867   :  { %4875 = vmatprep.subr.bf16.mxu1 %v7517_v1 }
 0x86a   :  { %4877 = vmatpush1.bf16.msra.mxu1 %v7518_v47 }
 0x86b   :  { %4879 = vmatprep.subr.bf16.mxu1 %v7519_v38 }
 0x86e   :  { %4881 = vmatpush1.bf16.msra.mxu1 %v7520_v52 }
 0x86f   :  { %4883 = vmatprep.subr.bf16.mxu1 %v7521_v9 }
 0x872   :  { %4885 = vmatpush1.bf16.msra.mxu1 %v7522_v4 }
 0x873   :  { %4887 = vmatprep.subr.bf16.mxu1 %v7523_v42 }
 0x876   :  { %4889 = vmatpush1.bf16.msra.mxu1 %v7524_v12 }
 0x877   :  { %4891 = vmatprep.subr.bf16.mxu1 %v7525_v50  ;;  %v7533_v50 = vld [vmem:[#allocation19_spill] sm:$0xff] }
 0x87a   :  { %4893 = vmatpush1.bf16.msra.mxu1 %v7526_v46 }
 0x87b   :  { %4895 = vmatprep.subr.bf16.mxu1 %v7527_v59 }
 0x87e   :  { %4897 = vmatpush1.bf16.msra.mxu1 %v7528_v6 }
 0x8d4   :  { %v2644_v48 = vpop.f32.mrb[20].mxu1  ;;  %v2715_v22 = vpop.f32.mrb[22].mxu0 }
 0x8d5   :  { %v2716_v10 = vadd.f32 %v2715_v22, %v7529_v56  ;;  %v2646_v23 = vpop.f32.mrb[21].mxu1  ;;  %v2717_v17 = vpop.f32.mrb[23].mxu0  ;;  %v2645_v12 = vadd.f32 %v2644_v48, %v7329_v55  ;;  %v2847_v22 = vrot.slane %v6597_v35, 7 }
 0x8d6   :  { %v2718_v41 = vadd.f32 %v2717_v17, %v7530_v37  ;;  %v2647_v46 = vadd.f32 %v2646_v23, %v7533_v50  ;;  %v7534_v17 = vld [vmem:[#allocation103_spill] sm:$0xff] }
 0x8d7   :  { %v2742_v63 = vrot.slane %v2716_v10, 2  ;;  %v2722_v59 = vrot.slane %v2645_v12, 2  ;;  %v7536_v12 = vld [vmem:[#allocation106_spill] sm:$0xff] }
 0x8d8   :  { %v2743_v5 = vrot.slane %v2718_v41, 2  ;;  %v2723_v6 = vrot.slane %v2647_v46, 2 }
 0x8d9   :  { %v2746_v28 = vadd.f32 %v2742_v63, %v7531_v39  ;;  %v2726_v41 = vadd.f32 %v2722_v59, %v7534_v17  ;;  %v7535_v63 = vld [vmem:[#allocation104_spill] sm:$0xff] }
 0x8da   :  { %v2747_v1 = vadd.f32 %v2743_v5, %v7532_v45  ;;  %v2727_v5 = vadd.f32 %v2723_v6, %v7535_v63 }
 0x8db   :  { %v3228_v47 = vmul.f32 -1.442695, %v2746_v28  ;;  %v2848_v28 = vrot.slane %v6599_v62, 7 }
 0x8dc   :  { %v3229_v38 = vmul.f32 -1.442695, %v2747_v1 }
 0x8dd   :  { %5095 = vpow2.f32 %v3228_v47 }
 0x8de   :  { %5097 = vpow2.f32 %v3229_v38 }
 0x8e7   :  { %v5096_v52 = vpop.eup %5095 }
 0x8e8   :  { %v2754_v9 = vadd.f32 1.0, %v5096_v52  ;;  %v5098_v4 = vpop.eup %5097  ;;  %v3226_v52 = vmul.f32 -1.442695, %v2726_v41 }
 0x8e9   :  { %v2755_v42 = vadd.f32 1.0, %v5098_v4 }
 0x8ea   :  { %5099 = vrcp.f32 %v2754_v9  ;;  %v3227_v9 = vmul.f32 -1.442695, %v2727_v5 }
 0x8eb   :  { %5101 = vrcp.f32 %v2755_v42 }
 0x8ec   :  { %5103 = vpow2.f32 %v3226_v52 }
 0x8ed   :  { %5105 = vpow2.f32 %v3227_v9 }
 0x8f4   :  { %v5100_v10 = vpop.eup %5099 }
 0x8f5   :  { %v2851_v1 = vmul.f32 %v5100_v10, %v2847_v22  ;;  %v5102_v47 = vpop.eup %5101 }
 0x8f6   :  { %v2852_v38 = vmul.f32 %v5102_v47, %v2848_v28  ;;  %v5104_v48 = vpop.eup %5103 }
 0x8f7   :  { %v5106_v23 = vpop.eup %5105  ;;  %v2734_v4 = vadd.f32 1.0, %v5104_v48  ;;  %v2843_v48 = vsub.f32 1.0, %v5100_v10 }
 0x8f8   :  { %v2735_v42 = vadd.f32 1.0, %v5106_v23 }
 0x8f9   :  { %5107 = vrcp.f32 %v2734_v4  ;;  %v2844_v4 = vsub.f32 1.0, %v5102_v47 }
 0x8fa   :  { %5109 = vrcp.f32 %v2735_v42 }
 0x903   :  { %v5108_v22 = vpop.eup %5107 }
 0x904   :  { %v5110_v28 = vpop.eup %5109 }
 0x914   :  { %v2826_v35 = vpop.f32.mrb[22].mxu1 }
 0x915   :  { %v2827_v46 = vadd.f32 %v2826_v35, %v7536_v12  ;;  %v2828_v59 = vpop.f32.mrb[23].mxu1 }
 0x916   :  { %v2829_v6 = vadd.f32 %v2828_v59, %v7199_v26 }
 0x917   :  { %v2833_v62 = vrot.slane %v2827_v46, 2 }
 0x918   :  { %v2834_v63 = vrot.slane %v2829_v6, 2 }
 0x919   :  { %v2837_v41 = vmul.f32 %v5108_v22, %v2833_v62 }
 0x91a   :  { %v2838_v5 = vmul.f32 %v5110_v28, %v2834_v63 }
 0x91b   :  { %v2839_v52 = vadd.f32 %v2837_v41, %v5951_v34 }
 0x91c   :  { %v2840_v9 = vadd.f32 %v2838_v5, %v5954_v36 }
 0x91d   :  { %5111 = vtanh.f32 %v2839_v52 }
 0x91e   :  { %5113 = vtanh.f32 %v2840_v9 }
 0x927   :  { %v5112_v23 = vpop.eup %5111 }
 0x928   :  { %v5114_v42 = vpop.eup %5113  ;;  %v2845_v35 = vmul.f32 %v5112_v23, %v2843_v48 }
 0x929   :  { %v2846_v12 = vmul.f32 %v5114_v42, %v2844_v4 }
 0x92a   :  { %v6727_v17 = vadd.f32 %v2851_v1, %v2845_v35 }
 0x92b   :  { %v6729_v46 = vadd.f32 %v2852_v38, %v2846_v12 }
 0x92c   :  { %v6734_v63 = vsel %vm225_vm5, %v6604_v11, %v6727_v17  ;;  %v2857_v47 = vrot.slane %v6727_v17, 6 }
 0x92d   :  { %v2858_v59 = vrot.slane %v6729_v46, 6  ;;  %v6740_v10 = vsel %vm225_vm5, %v6610_v16, %v6729_v46 }
 0x92f   :  { %2925 = vmatprep.mubr.f32.mxu0 %v2858_v59  ;;  %2996 = vmatprep.mubr.f32.mxu1 %v2858_v59 }
 0x930   :  { %2926 = vmatmul.mubr.f32.vlgmr.msra.gmra.mrb[24].mxu0 %v2857_v47  ;;  %2997 = vmatmul.mubr.f32.vlgmr.msra.gmra.mrb[24].mxu1 %v2857_v47 }
 0x931   :  { %4901 = vmatpush1.bf16.msra.mxu0 %v7134_v30  ;;  %3107 = vmatprep.mubr.f32.mxu0 %v2858_v59 }
 0x932   :  { %4903 = vmatprep.subr.bf16.mxu0 %v7135_v33 }
 0x935   :  { %4905 = vmatpush1.bf16.msra.mxu0 %v7136_v31 }
 0x936   :  { %4907 = vmatprep.subr.bf16.mxu0 %v7137_v8 }
 0x939   :  { %4909 = vmatpush1.bf16.msra.mxu0 %v7138_v19 }
 0x93a   :  { %4911 = vmatprep.subr.bf16.mxu0 %v7139_v51 }
 0x93d   :  { %4913 = vmatpush1.bf16.msra.mxu0 %v7140_v21 }
 0x93e   :  { %4915 = vmatprep.subr.bf16.mxu0 %v7141_v13 }
 0x941   :  { %4917 = vmatpush1.bf16.msra.mxu0 %v7142_v7 }
 0x942   :  { %4919 = vmatprep.subr.bf16.mxu0 %v7143_v14 }
 0x945   :  { %4921 = vmatpush1.bf16.msra.mxu0 %v7144_v20 }
 0x946   :  { %4923 = vmatprep.subr.bf16.mxu0 %v7145_v53 }
 0x949   :  { %4925 = vmatpush1.bf16.msra.mxu0 %v7146_v3 }
 0x94a   :  { %4927 = vmatprep.subr.bf16.mxu0 %v7147_v57 }
 0x94d   :  { %4929 = vmatpush1.bf16.msra.mxu0 %v7148_v40 }
 0x94e   :  { %4931 = vmatprep.subr.bf16.mxu0 %v7200_v58 }
 0x951   :  { %4933 = vmatpush1.bf16.msra.mxu0 %v7150_v44 }
 0x952   :  { %4935 = vmatprep.subr.bf16.mxu0 %v7202_v27 }
 0x955   :  { %4937 = vmatpush1.bf16.msra.mxu0 %v7470_v61  ;;  %v3130_v61 = vrot.slane %v6727_v17, 7 }
 0x956   :  { %4939 = vmatprep.subr.bf16.mxu0 %v7471_v2 }
 0x959   :  { %4941 = vmatpush1.bf16.msra.mxu0 %v7474_v24  ;;  %v7537_v24 = vld [vmem:[#allocation103_spill] sm:$0xff] }
 0x95a   :  { %4943 = vmatprep.subr.bf16.mxu0 %v7475_v29 }
 0x95d   :  { %4945 = vmatpush1.bf16.msra.mxu0 %v7478_v49  ;;  %v7538_v49 = vld [vmem:[#allocation104_spill] sm:$0xff] }
 0x95e   :  { %4947 = vmatprep.subr.bf16.mxu0 %v7479_v54 }
 0x961   :  { %4949 = vmatpush1.bf16.msra.mxu0 %v7482_v18  ;;  %v3131_v18 = vrot.slane %v6729_v46, 7 }
 0x962   :  { %4951 = vmatprep.subr.bf16.mxu0 %v7483_v25 }
 0x965   :  { %4953 = vmatpush1.bf16.msra.mxu0 %v7486_v60 }
 0x966   :  { %4955 = vmatprep.subr.bf16.mxu0 %v7487_v0 }
 0x969   :  { %4957 = vmatpush1.bf16.msra.mxu0 %v7490_v32 }
 0x96a   :  { %4959 = vmatprep.subr.bf16.mxu0 %v7491_v43 }
 0x96d   :  { %4961 = vmatpush1.bf16.msra.mxu0 %v7494_v15 }
 0x970   :  { %3108 = vmatmul.mubr.f32.vlgmr.msra.gmra.mrb[26].mxu0 %v2857_v47 }
 0xa03   :  { %v2927_v30 = vpop.f32.mrb[24].mxu0  ;;  %v2998_v33 = vpop.f32.mrb[24].mxu1 }
 0xa04   :  { %v2999_v31 = vadd.f32 %v2998_v33, %v7529_v56  ;;  %v2929_v8 = vpop.f32.mrb[25].mxu0  ;;  %v3000_v19 = vpop.f32.mrb[25].mxu1  ;;  %v2928_v58 = vadd.f32 %v2927_v30, %v7329_v55 }
 0xa05   :  { %v3001_v51 = vadd.f32 %v3000_v19, %v7530_v37  ;;  %v2930_v27 = vadd.f32 %v2929_v8, %v7533_v50 }
 0xa06   :  { %v3025_v21 = vrot.slane %v2999_v31, 1  ;;  %v3005_v11 = vrot.slane %v2928_v58, 1 }
 0xa07   :  { %v3026_v13 = vrot.slane %v3001_v51, 1  ;;  %v3006_v16 = vrot.slane %v2930_v27, 1 }
 0xa08   :  { %v3029_v7 = vadd.f32 %v3025_v21, %v7531_v39  ;;  %v3009_v29 = vadd.f32 %v3005_v11, %v7537_v24 }
 0xa09   :  { %v3030_v14 = vadd.f32 %v3026_v13, %v7532_v45  ;;  %v3010_v54 = vadd.f32 %v3006_v16, %v7538_v49  ;;  %v7539_v45 = vld [vmem:[#allocation106_spill] sm:$0xff] }
 0xa0a   :  { %v3232_v20 = vmul.f32 -1.442695, %v3029_v7  ;;  %v3230_v32 = vmul.f32 -1.442695, %v3009_v29 }
 0xa0b   :  { %v3233_v53 = vmul.f32 -1.442695, %v3030_v14  ;;  %v3231_v43 = vmul.f32 -1.442695, %v3010_v54 }
 0xa0c   :  { %5115 = vpow2.f32 %v3232_v20 }
 0xa0d   :  { %5117 = vpow2.f32 %v3233_v53 }
 0xa16   :  { %v5116_v3 = vpop.eup %5115 }
 0xa17   :  { %v3037_v57 = vadd.f32 1.0, %v5116_v3  ;;  %v5118_v40 = vpop.eup %5117 }
 0xa18   :  { %v3038_v44 = vadd.f32 1.0, %v5118_v40 }
 0xa19   :  { %5119 = vrcp.f32 %v3037_v57 }
 0xa1a   :  { %5121 = vrcp.f32 %v3038_v44 }
 0xa1b   :  { %5123 = vpow2.f32 %v3230_v32 }
 0xa1c   :  { %5125 = vpow2.f32 %v3231_v43 }
 0xa23   :  { %v5120_v2 = vpop.eup %5119 }
 0xa24   :  { %v3134_v25 = vmul.f32 %v5120_v2, %v3130_v61  ;;  %v5122_v60 = vpop.eup %5121  ;;  %v3126_v52 = vsub.f32 1.0, %v5120_v2 }
 0xa25   :  { %v3135_v0 = vmul.f32 %v5122_v60, %v3131_v18  ;;  %v5124_v55 = vpop.eup %5123  ;;  %v3127_v48 = vsub.f32 1.0, %v5122_v60 }
 0xa26   :  { %v5126_v15 = vpop.eup %5125  ;;  %v3017_v56 = vadd.f32 1.0, %v5124_v55 }
 0xa27   :  { %v3018_v37 = vadd.f32 1.0, %v5126_v15 }
 0xa28   :  { %5127 = vrcp.f32 %v3017_v56 }
 0xa29   :  { %5129 = vrcp.f32 %v3018_v37 }
 0xa32   :  { %v5128_v12 = vpop.eup %5127 }
 0xa33   :  { %v5130_v62 = vpop.eup %5129 }
 0xa43   :  { %v3109_v39 = vpop.f32.mrb[26].mxu0 }
 0xa44   :  { %v3110_v50 = vadd.f32 %v3109_v39, %v7539_v45  ;;  %v3111_v17 = vpop.f32.mrb[27].mxu0 }
 0xa45   :  { %v3112_v1 = vadd.f32 %v3111_v17, %v7199_v26 }
 0xa46   :  { %v3116_v38 = vrot.slane %v3110_v50, 1 }
 0xa47   :  { %v3117_v6 = vrot.slane %v3112_v1, 1 }
 0xa48   :  { %v3120_v22 = vmul.f32 %v5128_v12, %v3116_v38 }
 0xa49   :  { %v3121_v28 = vmul.f32 %v5130_v62, %v3117_v6 }
 0xa4a   :  { %v3122_v41 = vadd.f32 %v3120_v22, %v5951_v34 }
 0xa4b   :  { %v3123_v5 = vadd.f32 %v3121_v28, %v5954_v36 }
 0xa4c   :  { %5131 = vtanh.f32 %v3122_v41 }
 0xa4d   :  { %5133 = vtanh.f32 %v3123_v5 }
 0xa56   :  { %v5132_v9 = vpop.eup %5131 }
 0xa57   :  { %v5134_v23 = vpop.eup %5133  ;;  %v3128_v4 = vmul.f32 %v5132_v9, %v3126_v52 }
 0xa58   :  { %v3129_v42 = vmul.f32 %v5134_v23, %v3127_v48 }
 0xa59   :  { %v3136_v26 = vadd.f32 %v3134_v25, %v3128_v4 }
 0xa5a   :  { %v3137_v35 = vadd.f32 %v3135_v0, %v3129_v42 }
 0xa5b   :  { %v3150_v46 = vsel %vm228_vm6, %v6734_v63, %v3136_v26 }
 0xa5c   :  { %v3151_v34 = vsel %vm228_vm6, %v6740_v10, %v3137_v35  ;;  %3152 = vst [vmem:[#allocation12] sm:$0xff] %v3150_v46 }
 0xa5d   :  { %3153 = vst [vmem:[#allocation12 + $0x8] sm:$0xff] %v3151_v34 }
 0xa5e   :  { %5244 = shalt.err (!%p5241_p11)
}
 0xa5f   :  { %s5245_s10 = scalar_lea.hbm %s6813_s9, 256 }
 0xa60   :  { %p5246_p12 = scmp.ne.s32.totalorder %s6813_s9, %s5245_s10  ;;  %p5249_p13 = scmp.lt.u32.totalorder %s5245_s10, %s6813_s9 }
 0xa62   :  { %p5251_p0 = pnand %p5249_p13, %p5246_p12 }
 0xa64   :  { %5254 = shalt.err (!%p5251_p0)
}
 0xa65   :  { %3163 = dma.vmem_to_hbm [thread:$0]  %s3161_s27, 256, %s6813_s9, [#allocation6]  }
 0xa66   :  { %5263 = dma.done.wait [#allocation6], 256  }
 0xa67   :  { %5264 = vsyncadd [#allocation6], 4294967040 }
 0xa68   :  { %3167 = vsyncpa [#allocation5], 1 }
 0xa69   :  { %3168 = vsyncpa [#allocation8], 1 }
 0xa6a   :  { %3169 = vsyncpa [#allocation11], 1 }
 0xa6b   :  { %3170 = vsyncpa [#allocation6], 1 }

</bundles_post_ra>
